<compile_context>
chip_gen: v7x
topology: tpu7x:2x2x1
jax: 0.10.0
libtpu: 0.0.40
codegen_flags: <defaults>
</compile_context>

<pallas_src>
import functools

import numpy as np
import jax
import jax.numpy as jnp
from jax import lax
from jax.experimental import pallas as pl
from jax.experimental.pallas import tpu as pltpu

EPS = 1e-5
NUM_GROUPS = 32


# ----------------------------------------------------------------------------
# in-kernel helpers (operate on values already resident in VMEM)
# ----------------------------------------------------------------------------
def _group_matrices(c, num_groups):
    """0/1 channel->group (C,G) and group->channel (G,C) membership matrices."""
    cg = c // num_groups
    if cg == 1:
        return None
    ch = lax.broadcasted_iota(jnp.int32, (c, num_groups), 0)
    gr = lax.broadcasted_iota(jnp.int32, (c, num_groups), 1)
    m = ((ch >= gr * cg) & (ch < (gr + 1) * cg)).astype(jnp.float32)        # (C, G)
    gr_t = lax.broadcasted_iota(jnp.int32, (num_groups, c), 0)
    ch_t = lax.broadcasted_iota(jnp.int32, (num_groups, c), 1)
    mt = ((ch_t >= gr_t * cg) & (ch_t < (gr_t + 1) * cg)).astype(jnp.float32)  # (G, C)
    return m, mt


def _gn_normalize(x, num_groups, eps, gmats):
    """Two-pass GroupNorm normalization of x: (HW, C) f32, channels on lanes."""
    hw, c = x.shape
    cg = c // num_groups
    n = float(hw * cg)
    s = jnp.sum(x, axis=0, keepdims=True)                       # (1, C)
    if gmats is None:                                           # cg == 1 (per-channel groups)
        mu = s / n
        d = x - mu
        var = jnp.sum(d * d, axis=0, keepdims=True) / n
        return d * lax.rsqrt(var + eps)
    m, mt = gmats
    mu_g = jnp.dot(s, m, preferred_element_type=jnp.float32) / n       # (1, G)
    mu_c = jnp.dot(mu_g, mt, preferred_element_type=jnp.float32)       # (1, C)
    d = x - mu_c
    s2 = jnp.sum(d * d, axis=0, keepdims=True)                         # (1, C)
    var_g = jnp.dot(s2, m, preferred_element_type=jnp.float32) / n     # (1, G)
    rs_c = jnp.dot(lax.rsqrt(var_g + eps), mt,
                   preferred_element_type=jnp.float32)                 # (1, C)
    return d * rs_c


def _padded_flat(h_flat, H, W):
    """(HW, C) -> ((H+4)*W, C): two zero rows above/below, flattened row-major."""
    C = h_flat.shape[-1]
    z = jnp.zeros((2, W, C), jnp.float32)
    return jnp.concatenate([z, h_flat.reshape(H, W, C), z], axis=0).reshape(
        (H + 4) * W, C)


def _conv3x3_im2col(h_flat, w_ref, b_row, H, W, mask_l, mask_r):
    """3x3 same-conv (zero padding): (HW, C) f32 -> (HW, Cout) f32.

    The 9 shifted taps are lane-concatenated into one (HW, 9C) im2col matrix
    (single bf16 cast) and contracted against the (9C, Cout) weight in one
    deep-K MXU matmul.  Column wrap-around of the dx=0 / dx=2 taps is removed
    by zeroing those taps at the image borders before the concat.
    w_ref: (9*C, Cout) bf16 ref with K ordered (dy, dx, c); b_row: (1, Cout).
    """
    HW = H * W
    flat = _padded_flat(h_flat, H, W)
    taps = []
    for dy in range(3):
        for dx in range(3):
            start = (dy + 1) * W + dx - 1
            tap = flat[start:start + HW]
            if dx == 0:
                tap = tap * mask_l
            elif dx == 2:
                tap = tap * mask_r
            taps.append(tap)
    cols = jnp.concatenate(taps, axis=-1).astype(jnp.bfloat16)    # (HW, 9C)
    return jnp.dot(cols, w_ref[...], preferred_element_type=jnp.float32) + b_row


def _avgpool3x3(h_flat, H, W, mask_l, mask_r):
    """3x3 stride-1 avg-pool, count_include_pad=True: (HW, C) -> (HW, C)."""
    HW = H * W
    flat = _padded_flat(h_flat, H, W)
    acc = None
    for dx in range(3):
        part = None
        for dy in range(3):
            start = (dy + 1) * W + dx - 1
            tap = flat[start:start + HW]
            part = tap if part is None else part + tap
        if dx == 0:
            part = part * mask_l
        elif dx == 2:
            part = part * mask_r
        acc = part if acc is None else acc + part
    return acc * (1.0 / 9.0)


# ----------------------------------------------------------------------------
# the fused InceptionBlock kernel (one grid step per batch element)
# ----------------------------------------------------------------------------
def _inception_kernel(x_ref, gin_g_ref, gin_b_ref, win_ref, bin_ref, temb_ref,
                      gam_ref, bet_ref, w1x1_ref, b1x1_ref,
                      w12_ref, b12_ref, w13_ref, b13_ref, w22_ref, b22_ref,
                      o_ref, *, num_groups, eps, H, W):
    HW = H * W
    cin = x_ref.shape[-1]

    # grid-invariant constants, hoisted once (shared by every conv/pool/GN below)
    col = lax.broadcasted_iota(jnp.int32, (H, W, 1), 1).reshape(HW, 1)
    mask_l = (col > 0).astype(jnp.float32)          # left neighbour exists
    mask_r = (col < (W - 1)).astype(jnp.float32)    # right neighbour exists
    gmats = _group_matrices(cin, num_groups)

    # ---- in_layers: GroupNorm -> SiLU -> Conv3x3 (+ t_emb projection) ----
    x = x_ref[0].astype(jnp.float32)                # (HW, Cin), f32 for GN stats
    xn = _gn_normalize(x, num_groups, eps, gmats)
    y = xn * gin_g_ref[...] + gin_b_ref[...]
    h = y * jax.nn.sigmoid(y)                       # SiLU
    out = _conv3x3_im2col(h, win_ref, bin_ref[...], H, W, mask_l, mask_r)
    out = out + temb_ref[0]                         # (1, Cin) broadcast

    # TODO(synk): Dropout(p=drop_rate) treated as identity (eval mode / p=0.0).

    # ---- shared GroupNorm statistics for all four branches ----
    on = _gn_normalize(out, num_groups, eps, gmats)

    def gn_silu(j):
        t = on * gam_ref[j][None, :] + bet_ref[j][None, :]
        return t * jax.nn.sigmoid(t)

    def conv1x1(a, j):
        return jnp.dot(a.astype(jnp.bfloat16), w1x1_ref[j],
                       preferred_element_type=jnp.float32)

    # branch 1: 1x1 -> 3x3 -> 3x3
    g = gn_silu(0)
    t = conv1x1(g, 0) + b1x1_ref[0][None, :]
    t = _conv3x3_im2col(t, w12_ref, b12_ref[...], H, W, mask_l, mask_r)
    b1 = _conv3x3_im2col(t, w13_ref, b13_ref[...], H, W, mask_l, mask_r)

    # branch 2: 1x1 -> 3x3
    g = gn_silu(1)
    t = conv1x1(g, 1) + b1x1_ref[1][None, :]
    b2 = _conv3x3_im2col(t, w22_ref, b22_ref[...], H, W, mask_l, mask_r)

    # branch 3: avgpool -> 1x1  ==  1x1 (no bias) -> avgpool -> +bias
    g = gn_silu(2)
    b3 = _avgpool3x3(conv1x1(g, 2), H, W, mask_l, mask_r) + b1x1_ref[2][None, :]

    # branch 4: 1x1
    g = gn_silu(3)
    b4 = conv1x1(g, 3) + b1x1_ref[3][None, :]

    # lane-dense concat of the four branches -> one store of (HW, 4*Co4)
    o_ref[0] = jnp.concatenate([b1, b2, b3, b4], axis=-1).astype(o_ref.dtype)


# ----------------------------------------------------------------------------
# Full InceptionBlock forward (wrapper: layout plumbing only)
# ----------------------------------------------------------------------------
def _vmem_limit_bytes(HW, Cin, Co4):
    f32, bf16 = 4, 2
    blk = (HW * Cin * bf16                 # x block
           + HW * 4 * Co4 * f32            # output block
           + 9 * Cin * Cin * bf16          # conv_in weight
           + 3 * 9 * Co4 * Co4 * bf16      # w12 / w13 / w22
           + 4 * Cin * Co4 * bf16          # 1x1 weights
           + (12 * Cin + 10 * Co4) * f32)  # biases / gammas / betas / temb
    # padded flats, im2col matrices and live f32 activations inside the body
    work = HW * (22 * Cin + 22 * Co4) * f32
    est = 2 * blk + work                   # x2: double-buffered pipeline blocks
    return int(min(max(2 * est, 32 << 20), 56 << 20))


def inception_block_forward(x, t_emb, p):
    """x: (B, Cin, H, W) NCHW; t_emb: (B, d_t_emb) or None -> (B, Cout, H, W)."""
    B, Cin, H, W = x.shape
    HW = H * W
    Co4 = p['w11'].shape[1]

    # bf16 input halves the kernel's input DMA; GN stats are recomputed in f32.
    xf = jnp.transpose(x, (0, 2, 3, 1)).reshape(B, HW, Cin).astype(jnp.bfloat16)

    # emb_layers (SiLU -> Linear): tiny matmul, not worth a kernel launch.
    if t_emb is not None:
        temb = jax.nn.silu(t_emb.astype(jnp.float32)) @ p['emb_w'] + p['emb_b']
    else:
        temb = jnp.zeros((B, Cin), jnp.float32)
    temb = temb.reshape(B, 1, Cin)

    def w3x3(w):  # torch (Cout, Cin, 3, 3) -> (9*Cin, Cout) bf16, K = (dy, dx, cin)
        return jnp.transpose(w, (2, 3, 1, 0)).reshape(
            9 * w.shape[1], w.shape[0]).astype(jnp.bfloat16)

    def row(v):
        return v.reshape(1, -1).astype(jnp.float32)

    win = w3x3(p['conv_in_w'])
    w12k, w13k, w22k = w3x3(p['w12']), w3x3(p['w13']), w3x3(p['w22'])
    w1x1 = jnp.stack([p['w11'], p['w21'], p['w31'], p['w41']], 0).astype(jnp.bfloat16)
    b1x1 = jnp.stack([p['b11'], p['b21'], p['b31'], p['b41']], 0).astype(jnp.float32)
    gam = jnp.stack([p['gn1_g'], p['gn2_g'], p['gn3_g'], p['gn4_g']], 0).astype(jnp.float32)
    bet = jnp.stack([p['gn1_b'], p['gn2_b'], p['gn3_b'], p['gn4_b']], 0).astype(jnp.float32)

    y = pl.pallas_call(
        functools.partial(_inception_kernel, num_groups=NUM_GROUPS, eps=EPS,
                          H=H, W=W),
        out_shape=jax.ShapeDtypeStruct((B, HW, 4 * Co4), jnp.float32),
        grid=(B,),
        in_specs=[
            pl.BlockSpec((1, HW, Cin), lambda b: (b, 0, 0)),       # x (bf16, NHWC flat)
            pl.BlockSpec((1, Cin), lambda b: (0, 0)),              # gn_in gamma
            pl.BlockSpec((1, Cin), lambda b: (0, 0)),              # gn_in beta
            pl.BlockSpec((9 * Cin, Cin), lambda b: (0, 0)),        # conv_in weight (im2col K)
            pl.BlockSpec((1, Cin), lambda b: (0, 0)),              # conv_in bias
            pl.BlockSpec((1, 1, Cin), lambda b: (b, 0, 0)),        # t_emb projection
            pl.BlockSpec((4, Cin), lambda b: (0, 0)),              # branch gammas
            pl.BlockSpec((4, Cin), lambda b: (0, 0)),              # branch betas
            pl.BlockSpec((4, Cin, Co4), lambda b: (0, 0, 0)),      # 1x1 weights
            pl.BlockSpec((4, Co4), lambda b: (0, 0)),              # 1x1 biases
            pl.BlockSpec((9 * Co4, Co4), lambda b: (0, 0)),        # w12
            pl.BlockSpec((1, Co4), lambda b: (0, 0)),              # b12
            pl.BlockSpec((9 * Co4, Co4), lambda b: (0, 0)),        # w13
            pl.BlockSpec((1, Co4), lambda b: (0, 0)),              # b13
            pl.BlockSpec((9 * Co4, Co4), lambda b: (0, 0)),        # w22
            pl.BlockSpec((1, Co4), lambda b: (0, 0)),              # b22
        ],
        out_specs=pl.BlockSpec((1, HW, 4 * Co4), lambda b: (b, 0, 0)),
        compiler_params=pltpu.CompilerParams(
            dimension_semantics=("parallel",),
            vmem_limit_bytes=_vmem_limit_bytes(HW, Cin, Co4)),
    )(xf, row(p['gn_in_g']), row(p['gn_in_b']), win, row(p['conv_in_b']), temb,
      gam, bet, w1x1, b1x1, w12k, row(p['b12']), w13k, row(p['b13']),
      w22k, row(p['b22']))

    # (B, HW, 4*Co4) already realizes the branch concat (lane-dense); a single
    # well-shaped NHWC->NCHW transpose finishes the layout.
    return jnp.transpose(y.reshape(B, H, W, 4 * Co4), (0, 3, 1, 2))


# ----------------------------------------------------------------------------
# Pure-JAX reference (independent path through lax.conv / reduce_window)
# ----------------------------------------------------------------------------
def _ref_gn_silu(x, gamma, beta):
    B, C, H, W = x.shape
    G = NUM_GROUPS
    xg = x.reshape(B, G, C // G, H, W)
    mu = jnp.mean(xg, axis=(2, 3, 4), keepdims=True)
    var = jnp.mean((xg - mu) ** 2, axis=(2, 3, 4), keepdims=True)
    xn = ((xg - mu) / jnp.sqrt(var + EPS)).reshape(B, C, H, W)
    y = xn * gamma[None, :, None, None] + beta[None, :, None, None]
    return y * jax.nn.sigmoid(y)


def _ref_conv(x, w, b, pad):
    y = lax.conv_general_dilated(x, w, (1, 1), [(pad, pad), (pad, pad)],
                                 dimension_numbers=('NCHW', 'OIHW', 'NCHW'))
    return y + b[None, :, None, None]


def _ref_conv1x1(x, w, b):
    wo = jnp.transpose(w, (1, 0))[:, :, None, None]
    return _ref_conv(x, wo, b, 0)


def _ref_avgpool(x):
    s = lax.reduce_window(x, 0.0, lax.add, (1, 1, 3, 3), (1, 1, 1, 1),
                          [(0, 0), (0, 0), (1, 1), (1, 1)])
    return s / 9.0


def ref_forward(x, t_emb, p):
    h = _ref_gn_silu(x, p['gn_in_g'], p['gn_in_b'])
    out = _ref_conv(h, p['conv_in_w'], p['conv_in_b'], 1)
    te = jax.nn.silu(t_emb) @ p['emb_w'] + p['emb_b']
    out = out + te[:, :, None, None]
    g1 = _ref_gn_silu(out, p['gn1_g'], p['gn1_b'])
    b1 = _ref_conv(_ref_conv(_ref_conv1x1(g1, p['w11'], p['b11']),
                             p['w12'], p['b12'], 1), p['w13'], p['b13'], 1)
    g2 = _ref_gn_silu(out, p['gn2_g'], p['gn2_b'])
    b2 = _ref_conv(_ref_conv1x1(g2, p['w21'], p['b21']), p['w22'], p['b22'], 1)
    g3 = _ref_gn_silu(out, p['gn3_g'], p['gn3_b'])
    b3 = _ref_conv1x1(_ref_avgpool(g3), p['w31'], p['b31'])
    g4 = _ref_gn_silu(out, p['gn4_g'], p['gn4_b'])
    b4 = _ref_conv1x1(g4, p['w41'], p['b41'])
    return jnp.concatenate([b1, b2, b3, b4], axis=1)


# ----------------------------------------------------------------------------
if __name__ == "__main__":
    B, Cin, H, W = 2, 32, 8, 8          # GroupNorm(32) requires Cin % 32 == 0
    Cout_total, d_t_emb = 32, 16
    Co4 = Cout_total // 4

    key = jax.random.PRNGKey(0)
    keys = iter(jax.random.split(key, 40))

    def nrm(shape, scale=0.1):
        return scale * jax.random.normal(next(keys), shape, jnp.float32)

    params = dict(
        gn_in_g=1.0 + nrm((Cin,)), gn_in_b=nrm((Cin,)),
        conv_in_w=nrm((Cin, Cin, 3, 3)), conv_in_b=nrm((Cin,)),
        emb_w=nrm((d_t_emb, Cin)), emb_b=nrm((Cin,)),
        gn1_g=1.0 + nrm((Cin,)), gn1_b=nrm((Cin,)),
        w11=nrm((Cin, Co4)), b11=nrm((Co4,)),
        w12=nrm((Co4, Co4, 3, 3)), b12=nrm((Co4,)),
        w13=nrm((Co4, Co4, 3, 3)), b13=nrm((Co4,)),
        gn2_g=1.0 + nrm((Cin,)), gn2_b=nrm((Cin,)),
        w21=nrm((Cin, Co4)), b21=nrm((Co4,)),
        w22=nrm((Co4, Co4, 3, 3)), b22=nrm((Co4,)),
        gn3_g=1.0 + nrm((Cin,)), gn3_b=nrm((Cin,)),
        w31=nrm((Cin, Co4)), b31=nrm((Co4,)),
        gn4_g=1.0 + nrm((Cin,)), gn4_b=nrm((Cin,)),
        w41=nrm((Cin, Co4)), b41=nrm((Co4,)),
    )

    kx, kt = jax.random.split(jax.random.PRNGKey(1))
    x = jax.random.normal(kx, (B, Cin, H, W), jnp.float32)
    t_emb = jax.random.normal(kt, (B, d_t_emb), jnp.float32)

    y = inception_block_forward(x, t_emb, params)
    y = jax.block_until_ready(y)

    assert y.shape == (B, Cout_total, H, W), y.shape
    y_ref = jax.block_until_ready(ref_forward(x, t_emb, params))
    # bf16 kernel input + bf16 matmul operands (f32 accumulation / f32 GN stats)
    # -> loosened tolerance vs the pure-f32 reference.
    np.testing.assert_allclose(np.asarray(y), np.asarray(y_ref),
                               rtol=5e-2, atol=2e-2)

    print("KERNEL_OK")
</pallas_src>

<mosaic_0001>
module attributes {stable_mosaic.version = 11 : i64} {
  func.func @_inception_kernel(%arg0: i32, %arg1: memref<1x64x32xbf16, #tpu.memory_space<vmem>>, %arg2: memref<1x32xf32, #tpu.memory_space<vmem>>, %arg3: memref<1x32xf32, #tpu.memory_space<vmem>>, %arg4: memref<288x32xbf16, #tpu.memory_space<vmem>>, %arg5: memref<1x32xf32, #tpu.memory_space<vmem>>, %arg6: memref<1x1x32xf32, #tpu.memory_space<vmem>>, %arg7: memref<4x32xf32, #tpu.memory_space<vmem>>, %arg8: memref<4x32xf32, #tpu.memory_space<vmem>>, %arg9: memref<4x32x8xbf16, #tpu.memory_space<vmem>>, %arg10: memref<4x8xf32, #tpu.memory_space<vmem>>, %arg11: memref<72x8xbf16, #tpu.memory_space<vmem>>, %arg12: memref<1x8xf32, #tpu.memory_space<vmem>>, %arg13: memref<72x8xbf16, #tpu.memory_space<vmem>>, %arg14: memref<1x8xf32, #tpu.memory_space<vmem>>, %arg15: memref<72x8xbf16, #tpu.memory_space<vmem>>, %arg16: memref<1x8xf32, #tpu.memory_space<vmem>>, %arg17: memref<1x64x32xf32, #tpu.memory_space<vmem>>) attributes {dimension_semantics = [#tpu.dimension_semantics<parallel>], iteration_bounds = array<i64: 2>, scalar_prefetch = 0 : i64, scratch_operands = 0 : i64, tpu.core_type = #tpu.core_type<tc>, window_params = [{transform_indices = @transform_0, window_bounds = array<i64: 1, 64, 32>}, {pipeline_mode = #tpu.pipeline_mode<synchronous>, transform_indices = @transform_1, window_bounds = array<i64: 1, 32>}, {pipeline_mode = #tpu.pipeline_mode<synchronous>, transform_indices = @transform_2, window_bounds = array<i64: 1, 32>}, {pipeline_mode = #tpu.pipeline_mode<synchronous>, transform_indices = @transform_3, window_bounds = array<i64: 288, 32>}, {pipeline_mode = #tpu.pipeline_mode<synchronous>, transform_indices = @transform_4, window_bounds = array<i64: 1, 32>}, {transform_indices = @transform_5, window_bounds = array<i64: 1, 1, 32>}, {pipeline_mode = #tpu.pipeline_mode<synchronous>, transform_indices = @transform_6, window_bounds = array<i64: 4, 32>}, {pipeline_mode = #tpu.pipeline_mode<synchronous>, transform_indices = @transform_7, window_bounds = array<i64: 4, 32>}, {pipeline_mode = #tpu.pipeline_mode<synchronous>, transform_indices = @transform_8, window_bounds = array<i64: 4, 32, 8>}, {pipeline_mode = #tpu.pipeline_mode<synchronous>, transform_indices = @transform_9, window_bounds = array<i64: 4, 8>}, {pipeline_mode = #tpu.pipeline_mode<synchronous>, transform_indices = @transform_10, window_bounds = array<i64: 72, 8>}, {pipeline_mode = #tpu.pipeline_mode<synchronous>, transform_indices = @transform_11, window_bounds = array<i64: 1, 8>}, {pipeline_mode = #tpu.pipeline_mode<synchronous>, transform_indices = @transform_12, window_bounds = array<i64: 72, 8>}, {pipeline_mode = #tpu.pipeline_mode<synchronous>, transform_indices = @transform_13, window_bounds = array<i64: 1, 8>}, {pipeline_mode = #tpu.pipeline_mode<synchronous>, transform_indices = @transform_14, window_bounds = array<i64: 72, 8>}, {pipeline_mode = #tpu.pipeline_mode<synchronous>, transform_indices = @transform_15, window_bounds = array<i64: 1, 8>}, {transform_indices = @transform_16, window_bounds = array<i64: 1, 64, 32>}]} {
    %0 = tpu.iota {dimensions = array<i32: 1>} : vector<8x8x1xi32>
    %1 = vector.shape_cast %0 : vector<8x8x1xi32> to vector<64x1xi32>
    %c0_i32 = arith.constant 0 : i32
    %2 = vector.broadcast %c0_i32 : i32 to vector<64x1xi32>
    %3 = arith.cmpi sgt, %1, %2 : vector<64x1xi32>
    %4 = arith.extui %3 : vector<64x1xi1> to vector<64x1xi32>
    %5 = arith.sitofp %4 : vector<64x1xi32> to vector<64x1xf32>
    %c7_i32 = arith.constant 7 : i32
    %6 = vector.broadcast %c7_i32 : i32 to vector<64x1xi32>
    %7 = arith.cmpi slt, %1, %6 : vector<64x1xi32>
    %8 = arith.extui %7 : vector<64x1xi1> to vector<64x1xi32>
    %9 = arith.sitofp %8 : vector<64x1xi32> to vector<64x1xf32>
    %c0 = arith.constant 0 : index
    %c0_0 = arith.constant 0 : index
    %c0_1 = arith.constant 0 : index
    %10 = vector.load %arg1[%c0, %c0_0, %c0_1] : memref<1x64x32xbf16, #tpu.memory_space<vmem>>, vector<1x64x32xbf16>
    %11 = vector.shape_cast %10 : vector<1x64x32xbf16> to vector<64x32xbf16>
    %12 = arith.extf %11 : vector<64x32xbf16> to vector<64x32xf32>
    %cst = arith.constant dense<0.000000e+00> : vector<32xf32>
    %13 = vector.multi_reduction <add>, %12, %cst [0] : vector<64x32xf32> to vector<32xf32>
    %14 = vector.shape_cast %13 : vector<32xf32> to vector<1x32xf32>
    %cst_2 = arith.constant 6.400000e+01 : f32
    %15 = vector.broadcast %cst_2 : f32 to vector<1x32xf32>
    %16 = arith.divf %14, %15 : vector<1x32xf32>
    %17 = vector.broadcast %16 : vector<1x32xf32> to vector<64x32xf32>
    %18 = arith.subf %12, %17 : vector<64x32xf32>
    %19 = arith.mulf %18, %18 : vector<64x32xf32>
    %cst_3 = arith.constant dense<0.000000e+00> : vector<32xf32>
    %20 = vector.multi_reduction <add>, %19, %cst_3 [0] : vector<64x32xf32> to vector<32xf32>
    %21 = vector.shape_cast %20 : vector<32xf32> to vector<1x32xf32>
    %cst_4 = arith.constant 6.400000e+01 : f32
    %22 = vector.broadcast %cst_4 : f32 to vector<1x32xf32>
    %23 = arith.divf %21, %22 : vector<1x32xf32>
    %cst_5 = arith.constant 9.99999974E-6 : f32
    %24 = vector.broadcast %cst_5 : f32 to vector<1x32xf32>
    %25 = arith.addf %23, %24 : vector<1x32xf32>
    %26 = math.rsqrt %25 : vector<1x32xf32>
    %27 = vector.broadcast %26 : vector<1x32xf32> to vector<64x32xf32>
    %28 = arith.mulf %18, %27 : vector<64x32xf32>
    %c0_6 = arith.constant 0 : index
    %c0_7 = arith.constant 0 : index
    %29 = vector.load %arg2[%c0_6, %c0_7] : memref<1x32xf32, #tpu.memory_space<vmem>>, vector<1x32xf32>
    %30 = vector.broadcast %29 : vector<1x32xf32> to vector<64x32xf32>
    %31 = arith.mulf %28, %30 : vector<64x32xf32>
    %c0_8 = arith.constant 0 : index
    %c0_9 = arith.constant 0 : index
    %32 = vector.load %arg3[%c0_8, %c0_9] : memref<1x32xf32, #tpu.memory_space<vmem>>, vector<1x32xf32>
    %33 = vector.broadcast %32 : vector<1x32xf32> to vector<64x32xf32>
    %34 = arith.addf %31, %33 : vector<64x32xf32>
    %35 = arith.negf %34 : vector<64x32xf32>
    %36 = math.exp %35 : vector<64x32xf32>
    %cst_10 = arith.constant 1.000000e+00 : f32
    %37 = vector.broadcast %cst_10 : f32 to vector<64x32xf32>
    %38 = arith.addf %37, %36 : vector<64x32xf32>
    %39 = arith.divf %37, %38 : vector<64x32xf32>
    %40 = arith.mulf %34, %39 : vector<64x32xf32>
    %c0_11 = arith.constant 0 : index
    %c0_12 = arith.constant 0 : index
    %41 = vector.load %arg5[%c0_11, %c0_12] : memref<1x32xf32, #tpu.memory_space<vmem>>, vector<1x32xf32>
    %cst_13 = arith.constant 0.000000e+00 : f32
    %42 = vector.broadcast %cst_13 : f32 to vector<2x8x32xf32>
    %43 = vector.shape_cast %40 : vector<64x32xf32> to vector<8x8x32xf32>
    %44 = tpu.concatenate %42, %43, %42 in 0 : vector<2x8x32xf32>, vector<8x8x32xf32>, vector<2x8x32xf32> -> vector<12x8x32xf32>
    %45 = vector.shape_cast %44 : vector<12x8x32xf32> to vector<96x32xf32>
    %46 = vector.extract_strided_slice %45 {offsets = [7, 0], sizes = [64, 32], strides = [1, 1]} : vector<96x32xf32> to vector<64x32xf32>
    %47 = vector.broadcast %5 : vector<64x1xf32> to vector<64x32xf32>
    %48 = arith.mulf %46, %47 : vector<64x32xf32>
    %49 = vector.extract_strided_slice %45 {offsets = [8, 0], sizes = [64, 32], strides = [1, 1]} : vector<96x32xf32> to vector<64x32xf32>
    %50 = vector.extract_strided_slice %45 {offsets = [9, 0], sizes = [64, 32], strides = [1, 1]} : vector<96x32xf32> to vector<64x32xf32>
    %51 = vector.broadcast %9 : vector<64x1xf32> to vector<64x32xf32>
    %52 = arith.mulf %50, %51 : vector<64x32xf32>
    %53 = vector.extract_strided_slice %45 {offsets = [15, 0], sizes = [64, 32], strides = [1, 1]} : vector<96x32xf32> to vector<64x32xf32>
    %54 = vector.broadcast %5 : vector<64x1xf32> to vector<64x32xf32>
    %55 = arith.mulf %53, %54 : vector<64x32xf32>
    %56 = vector.extract_strided_slice %45 {offsets = [16, 0], sizes = [64, 32], strides = [1, 1]} : vector<96x32xf32> to vector<64x32xf32>
    %57 = vector.extract_strided_slice %45 {offsets = [17, 0], sizes = [64, 32], strides = [1, 1]} : vector<96x32xf32> to vector<64x32xf32>
    %58 = vector.broadcast %9 : vector<64x1xf32> to vector<64x32xf32>
    %59 = arith.mulf %57, %58 : vector<64x32xf32>
    %60 = vector.extract_strided_slice %45 {offsets = [23, 0], sizes = [64, 32], strides = [1, 1]} : vector<96x32xf32> to vector<64x32xf32>
    %61 = vector.broadcast %5 : vector<64x1xf32> to vector<64x32xf32>
    %62 = arith.mulf %60, %61 : vector<64x32xf32>
    %63 = vector.extract_strided_slice %45 {offsets = [24, 0], sizes = [64, 32], strides = [1, 1]} : vector<96x32xf32> to vector<64x32xf32>
    %64 = vector.extract_strided_slice %45 {offsets = [25, 0], sizes = [64, 32], strides = [1, 1]} : vector<96x32xf32> to vector<64x32xf32>
    %65 = vector.broadcast %9 : vector<64x1xf32> to vector<64x32xf32>
    %66 = arith.mulf %64, %65 : vector<64x32xf32>
    %67 = tpu.concatenate %48, %49, %52, %55, %56, %59, %62, %63, %66 in 1 : vector<64x32xf32>, vector<64x32xf32>, vector<64x32xf32>, vector<64x32xf32>, vector<64x32xf32>, vector<64x32xf32>, vector<64x32xf32>, vector<64x32xf32>, vector<64x32xf32> -> vector<64x288xf32>
    %68 = arith.truncf %67 : vector<64x288xf32> to vector<64x288xbf16>
    %c0_14 = arith.constant 0 : index
    %c0_15 = arith.constant 0 : index
    %69 = vector.load %arg4[%c0_14, %c0_15] : memref<288x32xbf16, #tpu.memory_space<vmem>>, vector<288x32xbf16>
    %cst_16 = arith.constant dense<0.000000e+00> : vector<64x32xf32>
    %70 = tpu.matmul %68, %69, %cst_16 {dimension_numbers = #tpu.dot_dimension_numbers<[1], [0], [0], [1], [0, 0, 1, 1], [], []>} : vector<64x288xbf16>, vector<288x32xbf16>, vector<64x32xf32> -> vector<64x32xf32>
    %71 = vector.broadcast %41 : vector<1x32xf32> to vector<64x32xf32>
    %72 = arith.addf %70, %71 : vector<64x32xf32>
    %c0_17 = arith.constant 0 : index
    %c0_18 = arith.constant 0 : index
    %c0_19 = arith.constant 0 : index
    %73 = vector.load %arg6[%c0_17, %c0_18, %c0_19] : memref<1x1x32xf32, #tpu.memory_space<vmem>>, vector<1x1x32xf32>
    %74 = vector.shape_cast %73 : vector<1x1x32xf32> to vector<1x32xf32>
    %75 = vector.broadcast %74 : vector<1x32xf32> to vector<64x32xf32>
    %76 = arith.addf %72, %75 : vector<64x32xf32>
    %cst_20 = arith.constant dense<0.000000e+00> : vector<32xf32>
    %77 = vector.multi_reduction <add>, %76, %cst_20 [0] : vector<64x32xf32> to vector<32xf32>
    %78 = vector.shape_cast %77 : vector<32xf32> to vector<1x32xf32>
    %cst_21 = arith.constant 6.400000e+01 : f32
    %79 = vector.broadcast %cst_21 : f32 to vector<1x32xf32>
    %80 = arith.divf %78, %79 : vector<1x32xf32>
    %81 = vector.broadcast %80 : vector<1x32xf32> to vector<64x32xf32>
    %82 = arith.subf %76, %81 : vector<64x32xf32>
    %83 = arith.mulf %82, %82 : vector<64x32xf32>
    %cst_22 = arith.constant dense<0.000000e+00> : vector<32xf32>
    %84 = vector.multi_reduction <add>, %83, %cst_22 [0] : vector<64x32xf32> to vector<32xf32>
    %85 = vector.shape_cast %84 : vector<32xf32> to vector<1x32xf32>
    %cst_23 = arith.constant 6.400000e+01 : f32
    %86 = vector.broadcast %cst_23 : f32 to vector<1x32xf32>
    %87 = arith.divf %85, %86 : vector<1x32xf32>
    %cst_24 = arith.constant 9.99999974E-6 : f32
    %88 = vector.broadcast %cst_24 : f32 to vector<1x32xf32>
    %89 = arith.addf %87, %88 : vector<1x32xf32>
    %90 = math.rsqrt %89 : vector<1x32xf32>
    %91 = vector.broadcast %90 : vector<1x32xf32> to vector<64x32xf32>
    %92 = arith.mulf %82, %91 : vector<64x32xf32>
    %c0_25 = arith.constant 0 : index
    %c0_26 = arith.constant 0 : index
    %93 = vector.load %arg7[%c0_25, %c0_26] : memref<4x32xf32, #tpu.memory_space<vmem>>, vector<1x32xf32>
    %94 = vector.shape_cast %93 : vector<1x32xf32> to vector<32xf32>
    %95 = vector.shape_cast %94 : vector<32xf32> to vector<1x32xf32>
    %96 = vector.broadcast %95 : vector<1x32xf32> to vector<64x32xf32>
    %97 = arith.mulf %92, %96 : vector<64x32xf32>
    %c0_27 = arith.constant 0 : index
    %c0_28 = arith.constant 0 : index
    %98 = vector.load %arg8[%c0_27, %c0_28] : memref<4x32xf32, #tpu.memory_space<vmem>>, vector<1x32xf32>
    %99 = vector.shape_cast %98 : vector<1x32xf32> to vector<32xf32>
    %100 = vector.shape_cast %99 : vector<32xf32> to vector<1x32xf32>
    %101 = vector.broadcast %100 : vector<1x32xf32> to vector<64x32xf32>
    %102 = arith.addf %97, %101 : vector<64x32xf32>
    %103 = arith.negf %102 : vector<64x32xf32>
    %104 = math.exp %103 : vector<64x32xf32>
    %cst_29 = arith.constant 1.000000e+00 : f32
    %105 = vector.broadcast %cst_29 : f32 to vector<64x32xf32>
    %106 = arith.addf %105, %104 : vector<64x32xf32>
    %107 = arith.divf %105, %106 : vector<64x32xf32>
    %108 = arith.mulf %102, %107 : vector<64x32xf32>
    %109 = arith.truncf %108 : vector<64x32xf32> to vector<64x32xbf16>
    %c0_30 = arith.constant 0 : index
    %c0_31 = arith.constant 0 : index
    %c0_32 = arith.constant 0 : index
    %110 = vector.load %arg9[%c0_30, %c0_31, %c0_32] : memref<4x32x8xbf16, #tpu.memory_space<vmem>>, vector<1x32x8xbf16>
    %111 = vector.shape_cast %110 : vector<1x32x8xbf16> to vector<32x8xbf16>
    %cst_33 = arith.constant dense<0.000000e+00> : vector<64x8xf32>
    %112 = tpu.matmul %109, %111, %cst_33 {dimension_numbers = #tpu.dot_dimension_numbers<[1], [0], [0], [1], [0, 0, 1, 1], [], []>} : vector<64x32xbf16>, vector<32x8xbf16>, vector<64x8xf32> -> vector<64x8xf32>
    %c0_34 = arith.constant 0 : index
    %c0_35 = arith.constant 0 : index
    %113 = vector.load %arg10[%c0_34, %c0_35] : memref<4x8xf32, #tpu.memory_space<vmem>>, vector<1x8xf32>
    %114 = vector.shape_cast %113 : vector<1x8xf32> to vector<8xf32>
    %115 = vector.shape_cast %114 : vector<8xf32> to vector<1x8xf32>
    %116 = vector.broadcast %115 : vector<1x8xf32> to vector<64x8xf32>
    %117 = arith.addf %112, %116 : vector<64x8xf32>
    %c0_36 = arith.constant 0 : index
    %c0_37 = arith.constant 0 : index
    %118 = vector.load %arg12[%c0_36, %c0_37] : memref<1x8xf32, #tpu.memory_space<vmem>>, vector<1x8xf32>
    %cst_38 = arith.constant 0.000000e+00 : f32
    %119 = vector.broadcast %cst_38 : f32 to vector<2x8x8xf32>
    %120 = vector.shape_cast %117 : vector<64x8xf32> to vector<8x8x8xf32>
    %121 = tpu.concatenate %119, %120, %119 in 0 : vector<2x8x8xf32>, vector<8x8x8xf32>, vector<2x8x8xf32> -> vector<12x8x8xf32>
    %122 = vector.shape_cast %121 : vector<12x8x8xf32> to vector<96x8xf32>
    %123 = vector.extract_strided_slice %122 {offsets = [7, 0], sizes = [64, 8], strides = [1, 1]} : vector<96x8xf32> to vector<64x8xf32>
    %124 = vector.broadcast %5 : vector<64x1xf32> to vector<64x8xf32>
    %125 = arith.mulf %123, %124 : vector<64x8xf32>
    %126 = vector.extract_strided_slice %122 {offsets = [8, 0], sizes = [64, 8], strides = [1, 1]} : vector<96x8xf32> to vector<64x8xf32>
    %127 = vector.extract_strided_slice %122 {offsets = [9, 0], sizes = [64, 8], strides = [1, 1]} : vector<96x8xf32> to vector<64x8xf32>
    %128 = vector.broadcast %9 : vector<64x1xf32> to vector<64x8xf32>
    %129 = arith.mulf %127, %128 : vector<64x8xf32>
    %130 = vector.extract_strided_slice %122 {offsets = [15, 0], sizes = [64, 8], strides = [1, 1]} : vector<96x8xf32> to vector<64x8xf32>
    %131 = vector.broadcast %5 : vector<64x1xf32> to vector<64x8xf32>
    %132 = arith.mulf %130, %131 : vector<64x8xf32>
    %133 = vector.extract_strided_slice %122 {offsets = [16, 0], sizes = [64, 8], strides = [1, 1]} : vector<96x8xf32> to vector<64x8xf32>
    %134 = vector.extract_strided_slice %122 {offsets = [17, 0], sizes = [64, 8], strides = [1, 1]} : vector<96x8xf32> to vector<64x8xf32>
    %135 = vector.broadcast %9 : vector<64x1xf32> to vector<64x8xf32>
    %136 = arith.mulf %134, %135 : vector<64x8xf32>
    %137 = vector.extract_strided_slice %122 {offsets = [23, 0], sizes = [64, 8], strides = [1, 1]} : vector<96x8xf32> to vector<64x8xf32>
    %138 = vector.broadcast %5 : vector<64x1xf32> to vector<64x8xf32>
    %139 = arith.mulf %137, %138 : vector<64x8xf32>
    %140 = vector.extract_strided_slice %122 {offsets = [24, 0], sizes = [64, 8], strides = [1, 1]} : vector<96x8xf32> to vector<64x8xf32>
    %141 = vector.extract_strided_slice %122 {offsets = [25, 0], sizes = [64, 8], strides = [1, 1]} : vector<96x8xf32> to vector<64x8xf32>
    %142 = vector.broadcast %9 : vector<64x1xf32> to vector<64x8xf32>
    %143 = arith.mulf %141, %142 : vector<64x8xf32>
    %144 = tpu.concatenate %125, %126, %129, %132, %133, %136, %139, %140, %143 in 1 : vector<64x8xf32>, vector<64x8xf32>, vector<64x8xf32>, vector<64x8xf32>, vector<64x8xf32>, vector<64x8xf32>, vector<64x8xf32>, vector<64x8xf32>, vector<64x8xf32> -> vector<64x72xf32>
    %145 = arith.truncf %144 : vector<64x72xf32> to vector<64x72xbf16>
    %c0_39 = arith.constant 0 : index
    %c0_40 = arith.constant 0 : index
    %146 = vector.load %arg11[%c0_39, %c0_40] : memref<72x8xbf16, #tpu.memory_space<vmem>>, vector<72x8xbf16>
    %cst_41 = arith.constant dense<0.000000e+00> : vector<64x8xf32>
    %147 = tpu.matmul %145, %146, %cst_41 {dimension_numbers = #tpu.dot_dimension_numbers<[1], [0], [0], [1], [0, 0, 1, 1], [], []>} : vector<64x72xbf16>, vector<72x8xbf16>, vector<64x8xf32> -> vector<64x8xf32>
    %148 = vector.broadcast %118 : vector<1x8xf32> to vector<64x8xf32>
    %149 = arith.addf %147, %148 : vector<64x8xf32>
    %c0_42 = arith.constant 0 : index
    %c0_43 = arith.constant 0 : index
    %150 = vector.load %arg14[%c0_42, %c0_43] : memref<1x8xf32, #tpu.memory_space<vmem>>, vector<1x8xf32>
    %cst_44 = arith.constant 0.000000e+00 : f32
    %151 = vector.broadcast %cst_44 : f32 to vector<2x8x8xf32>
    %152 = vector.shape_cast %149 : vector<64x8xf32> to vector<8x8x8xf32>
    %153 = tpu.concatenate %151, %152, %151 in 0 : vector<2x8x8xf32>, vector<8x8x8xf32>, vector<2x8x8xf32> -> vector<12x8x8xf32>
    %154 = vector.shape_cast %153 : vector<12x8x8xf32> to vector<96x8xf32>
    %155 = vector.extract_strided_slice %154 {offsets = [7, 0], sizes = [64, 8], strides = [1, 1]} : vector<96x8xf32> to vector<64x8xf32>
    %156 = vector.broadcast %5 : vector<64x1xf32> to vector<64x8xf32>
    %157 = arith.mulf %155, %156 : vector<64x8xf32>
    %158 = vector.extract_strided_slice %154 {offsets = [8, 0], sizes = [64, 8], strides = [1, 1]} : vector<96x8xf32> to vector<64x8xf32>
    %159 = vector.extract_strided_slice %154 {offsets = [9, 0], sizes = [64, 8], strides = [1, 1]} : vector<96x8xf32> to vector<64x8xf32>
    %160 = vector.broadcast %9 : vector<64x1xf32> to vector<64x8xf32>
    %161 = arith.mulf %159, %160 : vector<64x8xf32>
    %162 = vector.extract_strided_slice %154 {offsets = [15, 0], sizes = [64, 8], strides = [1, 1]} : vector<96x8xf32> to vector<64x8xf32>
    %163 = vector.broadcast %5 : vector<64x1xf32> to vector<64x8xf32>
    %164 = arith.mulf %162, %163 : vector<64x8xf32>
    %165 = vector.extract_strided_slice %154 {offsets = [16, 0], sizes = [64, 8], strides = [1, 1]} : vector<96x8xf32> to vector<64x8xf32>
    %166 = vector.extract_strided_slice %154 {offsets = [17, 0], sizes = [64, 8], strides = [1, 1]} : vector<96x8xf32> to vector<64x8xf32>
    %167 = vector.broadcast %9 : vector<64x1xf32> to vector<64x8xf32>
    %168 = arith.mulf %166, %167 : vector<64x8xf32>
    %169 = vector.extract_strided_slice %154 {offsets = [23, 0], sizes = [64, 8], strides = [1, 1]} : vector<96x8xf32> to vector<64x8xf32>
    %170 = vector.broadcast %5 : vector<64x1xf32> to vector<64x8xf32>
    %171 = arith.mulf %169, %170 : vector<64x8xf32>
    %172 = vector.extract_strided_slice %154 {offsets = [24, 0], sizes = [64, 8], strides = [1, 1]} : vector<96x8xf32> to vector<64x8xf32>
    %173 = vector.extract_strided_slice %154 {offsets = [25, 0], sizes = [64, 8], strides = [1, 1]} : vector<96x8xf32> to vector<64x8xf32>
    %174 = vector.broadcast %9 : vector<64x1xf32> to vector<64x8xf32>
    %175 = arith.mulf %173, %174 : vector<64x8xf32>
    %176 = tpu.concatenate %157, %158, %161, %164, %165, %168, %171, %172, %175 in 1 : vector<64x8xf32>, vector<64x8xf32>, vector<64x8xf32>, vector<64x8xf32>, vector<64x8xf32>, vector<64x8xf32>, vector<64x8xf32>, vector<64x8xf32>, vector<64x8xf32> -> vector<64x72xf32>
    %177 = arith.truncf %176 : vector<64x72xf32> to vector<64x72xbf16>
    %c0_45 = arith.constant 0 : index
    %c0_46 = arith.constant 0 : index
    %178 = vector.load %arg13[%c0_45, %c0_46] : memref<72x8xbf16, #tpu.memory_space<vmem>>, vector<72x8xbf16>
    %cst_47 = arith.constant dense<0.000000e+00> : vector<64x8xf32>
    %179 = tpu.matmul %177, %178, %cst_47 {dimension_numbers = #tpu.dot_dimension_numbers<[1], [0], [0], [1], [0, 0, 1, 1], [], []>} : vector<64x72xbf16>, vector<72x8xbf16>, vector<64x8xf32> -> vector<64x8xf32>
    %180 = vector.broadcast %150 : vector<1x8xf32> to vector<64x8xf32>
    %181 = arith.addf %179, %180 : vector<64x8xf32>
    %c1 = arith.constant 1 : index
    %c0_48 = arith.constant 0 : index
    %182 = vector.load %arg7[%c1, %c0_48] : memref<4x32xf32, #tpu.memory_space<vmem>>, vector<1x32xf32>
    %183 = vector.shape_cast %182 : vector<1x32xf32> to vector<32xf32>
    %184 = vector.shape_cast %183 : vector<32xf32> to vector<1x32xf32>
    %185 = vector.broadcast %184 : vector<1x32xf32> to vector<64x32xf32>
    %186 = arith.mulf %92, %185 : vector<64x32xf32>
    %c1_49 = arith.constant 1 : index
    %c0_50 = arith.constant 0 : index
    %187 = vector.load %arg8[%c1_49, %c0_50] : memref<4x32xf32, #tpu.memory_space<vmem>>, vector<1x32xf32>
    %188 = vector.shape_cast %187 : vector<1x32xf32> to vector<32xf32>
    %189 = vector.shape_cast %188 : vector<32xf32> to vector<1x32xf32>
    %190 = vector.broadcast %189 : vector<1x32xf32> to vector<64x32xf32>
    %191 = arith.addf %186, %190 : vector<64x32xf32>
    %192 = arith.negf %191 : vector<64x32xf32>
    %193 = math.exp %192 : vector<64x32xf32>
    %cst_51 = arith.constant 1.000000e+00 : f32
    %194 = vector.broadcast %cst_51 : f32 to vector<64x32xf32>
    %195 = arith.addf %194, %193 : vector<64x32xf32>
    %196 = arith.divf %194, %195 : vector<64x32xf32>
    %197 = arith.mulf %191, %196 : vector<64x32xf32>
    %198 = arith.truncf %197 : vector<64x32xf32> to vector<64x32xbf16>
    %c1_52 = arith.constant 1 : index
    %c0_53 = arith.constant 0 : index
    %c0_54 = arith.constant 0 : index
    %199 = vector.load %arg9[%c1_52, %c0_53, %c0_54] : memref<4x32x8xbf16, #tpu.memory_space<vmem>>, vector<1x32x8xbf16>
    %200 = vector.shape_cast %199 : vector<1x32x8xbf16> to vector<32x8xbf16>
    %cst_55 = arith.constant dense<0.000000e+00> : vector<64x8xf32>
    %201 = tpu.matmul %198, %200, %cst_55 {dimension_numbers = #tpu.dot_dimension_numbers<[1], [0], [0], [1], [0, 0, 1, 1], [], []>} : vector<64x32xbf16>, vector<32x8xbf16>, vector<64x8xf32> -> vector<64x8xf32>
    %c1_56 = arith.constant 1 : index
    %c0_57 = arith.constant 0 : index
    %202 = vector.load %arg10[%c1_56, %c0_57] : memref<4x8xf32, #tpu.memory_space<vmem>>, vector<1x8xf32>
    %203 = vector.shape_cast %202 : vector<1x8xf32> to vector<8xf32>
    %204 = vector.shape_cast %203 : vector<8xf32> to vector<1x8xf32>
    %205 = vector.broadcast %204 : vector<1x8xf32> to vector<64x8xf32>
    %206 = arith.addf %201, %205 : vector<64x8xf32>
    %c0_58 = arith.constant 0 : index
    %c0_59 = arith.constant 0 : index
    %207 = vector.load %arg16[%c0_58, %c0_59] : memref<1x8xf32, #tpu.memory_space<vmem>>, vector<1x8xf32>
    %cst_60 = arith.constant 0.000000e+00 : f32
    %208 = vector.broadcast %cst_60 : f32 to vector<2x8x8xf32>
    %209 = vector.shape_cast %206 : vector<64x8xf32> to vector<8x8x8xf32>
    %210 = tpu.concatenate %208, %209, %208 in 0 : vector<2x8x8xf32>, vector<8x8x8xf32>, vector<2x8x8xf32> -> vector<12x8x8xf32>
    %211 = vector.shape_cast %210 : vector<12x8x8xf32> to vector<96x8xf32>
    %212 = vector.extract_strided_slice %211 {offsets = [7, 0], sizes = [64, 8], strides = [1, 1]} : vector<96x8xf32> to vector<64x8xf32>
    %213 = vector.broadcast %5 : vector<64x1xf32> to vector<64x8xf32>
    %214 = arith.mulf %212, %213 : vector<64x8xf32>
    %215 = vector.extract_strided_slice %211 {offsets = [8, 0], sizes = [64, 8], strides = [1, 1]} : vector<96x8xf32> to vector<64x8xf32>
    %216 = vector.extract_strided_slice %211 {offsets = [9, 0], sizes = [64, 8], strides = [1, 1]} : vector<96x8xf32> to vector<64x8xf32>
    %217 = vector.broadcast %9 : vector<64x1xf32> to vector<64x8xf32>
    %218 = arith.mulf %216, %217 : vector<64x8xf32>
    %219 = vector.extract_strided_slice %211 {offsets = [15, 0], sizes = [64, 8], strides = [1, 1]} : vector<96x8xf32> to vector<64x8xf32>
    %220 = vector.broadcast %5 : vector<64x1xf32> to vector<64x8xf32>
    %221 = arith.mulf %219, %220 : vector<64x8xf32>
    %222 = vector.extract_strided_slice %211 {offsets = [16, 0], sizes = [64, 8], strides = [1, 1]} : vector<96x8xf32> to vector<64x8xf32>
    %223 = vector.extract_strided_slice %211 {offsets = [17, 0], sizes = [64, 8], strides = [1, 1]} : vector<96x8xf32> to vector<64x8xf32>
    %224 = vector.broadcast %9 : vector<64x1xf32> to vector<64x8xf32>
    %225 = arith.mulf %223, %224 : vector<64x8xf32>
    %226 = vector.extract_strided_slice %211 {offsets = [23, 0], sizes = [64, 8], strides = [1, 1]} : vector<96x8xf32> to vector<64x8xf32>
    %227 = vector.broadcast %5 : vector<64x1xf32> to vector<64x8xf32>
    %228 = arith.mulf %226, %227 : vector<64x8xf32>
    %229 = vector.extract_strided_slice %211 {offsets = [24, 0], sizes = [64, 8], strides = [1, 1]} : vector<96x8xf32> to vector<64x8xf32>
    %230 = vector.extract_strided_slice %211 {offsets = [25, 0], sizes = [64, 8], strides = [1, 1]} : vector<96x8xf32> to vector<64x8xf32>
    %231 = vector.broadcast %9 : vector<64x1xf32> to vector<64x8xf32>
    %232 = arith.mulf %230, %231 : vector<64x8xf32>
    %233 = tpu.concatenate %214, %215, %218, %221, %222, %225, %228, %229, %232 in 1 : vector<64x8xf32>, vector<64x8xf32>, vector<64x8xf32>, vector<64x8xf32>, vector<64x8xf32>, vector<64x8xf32>, vector<64x8xf32>, vector<64x8xf32>, vector<64x8xf32> -> vector<64x72xf32>
    %234 = arith.truncf %233 : vector<64x72xf32> to vector<64x72xbf16>
    %c0_61 = arith.constant 0 : index
    %c0_62 = arith.constant 0 : index
    %235 = vector.load %arg15[%c0_61, %c0_62] : memref<72x8xbf16, #tpu.memory_space<vmem>>, vector<72x8xbf16>
    %cst_63 = arith.constant dense<0.000000e+00> : vector<64x8xf32>
    %236 = tpu.matmul %234, %235, %cst_63 {dimension_numbers = #tpu.dot_dimension_numbers<[1], [0], [0], [1], [0, 0, 1, 1], [], []>} : vector<64x72xbf16>, vector<72x8xbf16>, vector<64x8xf32> -> vector<64x8xf32>
    %237 = vector.broadcast %207 : vector<1x8xf32> to vector<64x8xf32>
    %238 = arith.addf %236, %237 : vector<64x8xf32>
    %c2 = arith.constant 2 : index
    %c0_64 = arith.constant 0 : index
    %239 = vector.load %arg7[%c2, %c0_64] : memref<4x32xf32, #tpu.memory_space<vmem>>, vector<1x32xf32>
    %240 = vector.shape_cast %239 : vector<1x32xf32> to vector<32xf32>
    %241 = vector.shape_cast %240 : vector<32xf32> to vector<1x32xf32>
    %242 = vector.broadcast %241 : vector<1x32xf32> to vector<64x32xf32>
    %243 = arith.mulf %92, %242 : vector<64x32xf32>
    %c2_65 = arith.constant 2 : index
    %c0_66 = arith.constant 0 : index
    %244 = vector.load %arg8[%c2_65, %c0_66] : memref<4x32xf32, #tpu.memory_space<vmem>>, vector<1x32xf32>
    %245 = vector.shape_cast %244 : vector<1x32xf32> to vector<32xf32>
    %246 = vector.shape_cast %245 : vector<32xf32> to vector<1x32xf32>
    %247 = vector.broadcast %246 : vector<1x32xf32> to vector<64x32xf32>
    %248 = arith.addf %243, %247 : vector<64x32xf32>
    %249 = arith.negf %248 : vector<64x32xf32>
    %250 = math.exp %249 : vector<64x32xf32>
    %cst_67 = arith.constant 1.000000e+00 : f32
    %251 = vector.broadcast %cst_67 : f32 to vector<64x32xf32>
    %252 = arith.addf %251, %250 : vector<64x32xf32>
    %253 = arith.divf %251, %252 : vector<64x32xf32>
    %254 = arith.mulf %248, %253 : vector<64x32xf32>
    %255 = arith.truncf %254 : vector<64x32xf32> to vector<64x32xbf16>
    %c2_68 = arith.constant 2 : index
    %c0_69 = arith.constant 0 : index
    %c0_70 = arith.constant 0 : index
    %256 = vector.load %arg9[%c2_68, %c0_69, %c0_70] : memref<4x32x8xbf16, #tpu.memory_space<vmem>>, vector<1x32x8xbf16>
    %257 = vector.shape_cast %256 : vector<1x32x8xbf16> to vector<32x8xbf16>
    %cst_71 = arith.constant dense<0.000000e+00> : vector<64x8xf32>
    %258 = tpu.matmul %255, %257, %cst_71 {dimension_numbers = #tpu.dot_dimension_numbers<[1], [0], [0], [1], [0, 0, 1, 1], [], []>} : vector<64x32xbf16>, vector<32x8xbf16>, vector<64x8xf32> -> vector<64x8xf32>
    %cst_72 = arith.constant 0.000000e+00 : f32
    %259 = vector.broadcast %cst_72 : f32 to vector<2x8x8xf32>
    %260 = vector.shape_cast %258 : vector<64x8xf32> to vector<8x8x8xf32>
    %261 = tpu.concatenate %259, %260, %259 in 0 : vector<2x8x8xf32>, vector<8x8x8xf32>, vector<2x8x8xf32> -> vector<12x8x8xf32>
    %262 = vector.shape_cast %261 : vector<12x8x8xf32> to vector<96x8xf32>
    %263 = vector.extract_strided_slice %262 {offsets = [7, 0], sizes = [64, 8], strides = [1, 1]} : vector<96x8xf32> to vector<64x8xf32>
    %264 = vector.extract_strided_slice %262 {offsets = [15, 0], sizes = [64, 8], strides = [1, 1]} : vector<96x8xf32> to vector<64x8xf32>
    %265 = arith.addf %263, %264 : vector<64x8xf32>
    %266 = vector.extract_strided_slice %262 {offsets = [23, 0], sizes = [64, 8], strides = [1, 1]} : vector<96x8xf32> to vector<64x8xf32>
    %267 = arith.addf %265, %266 : vector<64x8xf32>
    %268 = vector.broadcast %5 : vector<64x1xf32> to vector<64x8xf32>
    %269 = arith.mulf %267, %268 : vector<64x8xf32>
    %270 = vector.extract_strided_slice %262 {offsets = [8, 0], sizes = [64, 8], strides = [1, 1]} : vector<96x8xf32> to vector<64x8xf32>
    %271 = vector.extract_strided_slice %262 {offsets = [16, 0], sizes = [64, 8], strides = [1, 1]} : vector<96x8xf32> to vector<64x8xf32>
    %272 = arith.addf %270, %271 : vector<64x8xf32>
    %273 = vector.extract_strided_slice %262 {offsets = [24, 0], sizes = [64, 8], strides = [1, 1]} : vector<96x8xf32> to vector<64x8xf32>
    %274 = arith.addf %272, %273 : vector<64x8xf32>
    %275 = arith.addf %269, %274 : vector<64x8xf32>
    %276 = vector.extract_strided_slice %262 {offsets = [9, 0], sizes = [64, 8], strides = [1, 1]} : vector<96x8xf32> to vector<64x8xf32>
    %277 = vector.extract_strided_slice %262 {offsets = [17, 0], sizes = [64, 8], strides = [1, 1]} : vector<96x8xf32> to vector<64x8xf32>
    %278 = arith.addf %276, %277 : vector<64x8xf32>
    %279 = vector.extract_strided_slice %262 {offsets = [25, 0], sizes = [64, 8], strides = [1, 1]} : vector<96x8xf32> to vector<64x8xf32>
    %280 = arith.addf %278, %279 : vector<64x8xf32>
    %281 = vector.broadcast %9 : vector<64x1xf32> to vector<64x8xf32>
    %282 = arith.mulf %280, %281 : vector<64x8xf32>
    %283 = arith.addf %275, %282 : vector<64x8xf32>
    %cst_73 = arith.constant 0.111111112 : f32
    %284 = vector.broadcast %cst_73 : f32 to vector<64x8xf32>
    %285 = arith.mulf %283, %284 : vector<64x8xf32>
    %c2_74 = arith.constant 2 : index
    %c0_75 = arith.constant 0 : index
    %286 = vector.load %arg10[%c2_74, %c0_75] : memref<4x8xf32, #tpu.memory_space<vmem>>, vector<1x8xf32>
    %287 = vector.shape_cast %286 : vector<1x8xf32> to vector<8xf32>
    %288 = vector.shape_cast %287 : vector<8xf32> to vector<1x8xf32>
    %289 = vector.broadcast %288 : vector<1x8xf32> to vector<64x8xf32>
    %290 = arith.addf %285, %289 : vector<64x8xf32>
    %c3 = arith.constant 3 : index
    %c0_76 = arith.constant 0 : index
    %291 = vector.load %arg7[%c3, %c0_76] : memref<4x32xf32, #tpu.memory_space<vmem>>, vector<1x32xf32>
    %292 = vector.shape_cast %291 : vector<1x32xf32> to vector<32xf32>
    %293 = vector.shape_cast %292 : vector<32xf32> to vector<1x32xf32>
    %294 = vector.broadcast %293 : vector<1x32xf32> to vector<64x32xf32>
    %295 = arith.mulf %92, %294 : vector<64x32xf32>
    %c3_77 = arith.constant 3 : index
    %c0_78 = arith.constant 0 : index
    %296 = vector.load %arg8[%c3_77, %c0_78] : memref<4x32xf32, #tpu.memory_space<vmem>>, vector<1x32xf32>
    %297 = vector.shape_cast %296 : vector<1x32xf32> to vector<32xf32>
    %298 = vector.shape_cast %297 : vector<32xf32> to vector<1x32xf32>
    %299 = vector.broadcast %298 : vector<1x32xf32> to vector<64x32xf32>
    %300 = arith.addf %295, %299 : vector<64x32xf32>
    %301 = arith.negf %300 : vector<64x32xf32>
    %302 = math.exp %301 : vector<64x32xf32>
    %cst_79 = arith.constant 1.000000e+00 : f32
    %303 = vector.broadcast %cst_79 : f32 to vector<64x32xf32>
    %304 = arith.addf %303, %302 : vector<64x32xf32>
    %305 = arith.divf %303, %304 : vector<64x32xf32>
    %306 = arith.mulf %300, %305 : vector<64x32xf32>
    %307 = arith.truncf %306 : vector<64x32xf32> to vector<64x32xbf16>
    %c3_80 = arith.constant 3 : index
    %c0_81 = arith.constant 0 : index
    %c0_82 = arith.constant 0 : index
    %308 = vector.load %arg9[%c3_80, %c0_81, %c0_82] : memref<4x32x8xbf16, #tpu.memory_space<vmem>>, vector<1x32x8xbf16>
    %309 = vector.shape_cast %308 : vector<1x32x8xbf16> to vector<32x8xbf16>
    %cst_83 = arith.constant dense<0.000000e+00> : vector<64x8xf32>
    %310 = tpu.matmul %307, %309, %cst_83 {dimension_numbers = #tpu.dot_dimension_numbers<[1], [0], [0], [1], [0, 0, 1, 1], [], []>} : vector<64x32xbf16>, vector<32x8xbf16>, vector<64x8xf32> -> vector<64x8xf32>
    %c3_84 = arith.constant 3 : index
    %c0_85 = arith.constant 0 : index
    %311 = vector.load %arg10[%c3_84, %c0_85] : memref<4x8xf32, #tpu.memory_space<vmem>>, vector<1x8xf32>
    %312 = vector.shape_cast %311 : vector<1x8xf32> to vector<8xf32>
    %313 = vector.shape_cast %312 : vector<8xf32> to vector<1x8xf32>
    %314 = vector.broadcast %313 : vector<1x8xf32> to vector<64x8xf32>
    %315 = arith.addf %310, %314 : vector<64x8xf32>
    %316 = tpu.concatenate %181, %238, %290, %315 in 1 : vector<64x8xf32>, vector<64x8xf32>, vector<64x8xf32>, vector<64x8xf32> -> vector<64x32xf32>
    %c0_86 = arith.constant 0 : index
    %c0_87 = arith.constant 0 : index
    %c0_88 = arith.constant 0 : index
    %317 = vector.load %arg17[%c0_86, %c0_87, %c0_88] : memref<1x64x32xf32, #tpu.memory_space<vmem>>, vector<1x64x32xf32>
    %318 = vector.shape_cast %317 : vector<1x64x32xf32> to vector<64x32xf32>
    %319 = vector.shape_cast %316 : vector<64x32xf32> to vector<1x64x32xf32>
    tpu.vector_store %arg17[%c0_86, %c0_87, %c0_88], %319 {strides = array<i32>} : memref<1x64x32xf32, #tpu.memory_space<vmem>>, vector<1x64x32xf32>,
    return
  }
  func.func @transform_0(%arg0: i32) -> (i32, i32, i32) {
    %c0_i32 = arith.constant 0 : i32
    %c0_i32_0 = arith.constant 0 : i32
    %c0_i32_1 = arith.constant 0 : i32
    return %arg0, %c0_i32, %c0_i32_0 : i32, i32, i32
  }
  func.func @transform_1(%arg0: i32) -> (i32, i32) {
    %c0_i32 = arith.constant 0 : i32
    %c0_i32_0 = arith.constant 0 : i32
    %c0_i32_1 = arith.constant 0 : i32
    return %c0_i32, %c0_i32_0 : i32, i32
  }
  func.func @transform_2(%arg0: i32) -> (i32, i32) {
    %c0_i32 = arith.constant 0 : i32
    %c0_i32_0 = arith.constant 0 : i32
    %c0_i32_1 = arith.constant 0 : i32
    return %c0_i32, %c0_i32_0 : i32, i32
  }
  func.func @transform_3(%arg0: i32) -> (i32, i32) {
    %c0_i32 = arith.constant 0 : i32
    %c0_i32_0 = arith.constant 0 : i32
    %c0_i32_1 = arith.constant 0 : i32
    return %c0_i32, %c0_i32_0 : i32, i32
  }
  func.func @transform_4(%arg0: i32) -> (i32, i32) {
    %c0_i32 = arith.constant 0 : i32
    %c0_i32_0 = arith.constant 0 : i32
    %c0_i32_1 = arith.constant 0 : i32
    return %c0_i32, %c0_i32_0 : i32, i32
  }
  func.func @transform_5(%arg0: i32) -> (i32, i32, i32) {
    %c0_i32 = arith.constant 0 : i32
    %c0_i32_0 = arith.constant 0 : i32
    %c0_i32_1 = arith.constant 0 : i32
    return %arg0, %c0_i32, %c0_i32_0 : i32, i32, i32
  }
  func.func @transform_6(%arg0: i32) -> (i32, i32) {
    %c0_i32 = arith.constant 0 : i32
    %c0_i32_0 = arith.constant 0 : i32
    %c0_i32_1 = arith.constant 0 : i32
    return %c0_i32, %c0_i32_0 : i32, i32
  }
  func.func @transform_7(%arg0: i32) -> (i32, i32) {
    %c0_i32 = arith.constant 0 : i32
    %c0_i32_0 = arith.constant 0 : i32
    %c0_i32_1 = arith.constant 0 : i32
    return %c0_i32, %c0_i32_0 : i32, i32
  }
  func.func @transform_8(%arg0: i32) -> (i32, i32, i32) {
    %c0_i32 = arith.constant 0 : i32
    %c0_i32_0 = arith.constant 0 : i32
    %c0_i32_1 = arith.constant 0 : i32
    %c0_i32_2 = arith.constant 0 : i32
    return %c0_i32, %c0_i32_0, %c0_i32_1 : i32, i32, i32
  }
  func.func @transform_9(%arg0: i32) -> (i32, i32) {
    %c0_i32 = arith.constant 0 : i32
    %c0_i32_0 = arith.constant 0 : i32
    %c0_i32_1 = arith.constant 0 : i32
    return %c0_i32, %c0_i32_0 : i32, i32
  }
  func.func @transform_10(%arg0: i32) -> (i32, i32) {
    %c0_i32 = arith.constant 0 : i32
    %c0_i32_0 = arith.constant 0 : i32
    %c0_i32_1 = arith.constant 0 : i32
    return %c0_i32, %c0_i32_0 : i32, i32
  }
  func.func @transform_11(%arg0: i32) -> (i32, i32) {
    %c0_i32 = arith.constant 0 : i32
    %c0_i32_0 = arith.constant 0 : i32
    %c0_i32_1 = arith.constant 0 : i32
    return %c0_i32, %c0_i32_0 : i32, i32
  }
  func.func @transform_12(%arg0: i32) -> (i32, i32) {
    %c0_i32 = arith.constant 0 : i32
    %c0_i32_0 = arith.constant 0 : i32
    %c0_i32_1 = arith.constant 0 : i32
    return %c0_i32, %c0_i32_0 : i32, i32
  }
  func.func @transform_13(%arg0: i32) -> (i32, i32) {
    %c0_i32 = arith.constant 0 : i32
    %c0_i32_0 = arith.constant 0 : i32
    %c0_i32_1 = arith.constant 0 : i32
    return %c0_i32, %c0_i32_0 : i32, i32
  }
  func.func @transform_14(%arg0: i32) -> (i32, i32) {
    %c0_i32 = arith.constant 0 : i32
    %c0_i32_0 = arith.constant 0 : i32
    %c0_i32_1 = arith.constant 0 : i32
    return %c0_i32, %c0_i32_0 : i32, i32
  }
  func.func @transform_15(%arg0: i32) -> (i32, i32) {
    %c0_i32 = arith.constant 0 : i32
    %c0_i32_0 = arith.constant 0 : i32
    %c0_i32_1 = arith.constant 0 : i32
    return %c0_i32, %c0_i32_0 : i32, i32
  }
  func.func @transform_16(%arg0: i32) -> (i32, i32, i32) {
    %c0_i32 = arith.constant 0 : i32
    %c0_i32_0 = arith.constant 0 : i32
    %c0_i32_1 = arith.constant 0 : i32
    return %arg0, %c0_i32, %c0_i32_0 : i32, i32, i32
  }
}

</mosaic_0001>

<bundles_post_ra>
// kernel: tpu_custom_call.1
= control target key start
LH: loop header
LB: loop body
LE: loop exit
PB: predicated region body
PF: predicated region fallthrough
CT: control target
= control target key end

     0   :  { %s5663_s21 = smov 0   ;;  %s7997_s0 = inlined_call_operand.vmem [shape: bf16[2,64,32], index: 0, kind: input, shape index: {}]   ;;  %s7998_s1 = inlined_call_operand.vmem [shape: f32[1,32], index: 1, kind: input, shape index: {}]   ;;  %s7999_s2 = inlined_call_operand.vmem [shape: f32[1,32], index: 2, kind: input, shape index: {}]   ;;  %s8000_s3 = inlined_call_operand.vmem [shape: bf16[288,32], index: 3, kind: input, shape index: {}]   ;;  %s8001_s4 = inlined_call_operand.vmem [shape: f32[1,32], index: 4, kind: input, shape index: {}]   ;;  %s8002_s5 = inlined_call_operand.vmem [shape: f32[2,1,32], index: 5, kind: input, shape index: {}]   ;;  %s8003_s6 = inlined_call_operand.vmem [shape: f32[4,32], index: 6, kind: input, shape index: {}]   ;;  %s8004_s7 = inlined_call_operand.vmem [shape: f32[4,32], index: 7, kind: input, shape index: {}]   ;;  %s8005_s8 = inlined_call_operand.vmem [shape: bf16[4,32,8], index: 8, kind: input, shape index: {}]   ;;  %s8006_s9 = inlined_call_operand.vmem [shape: f32[4,8], index: 9, kind: input, shape index: {}]   ;;  %s8007_s10 = inlined_call_operand.vmem [shape: bf16[72,8], index: 10, kind: input, shape index: {}]   ;;  %s8008_s11 = inlined_call_operand.vmem [shape: f32[1,8], index: 11, kind: input, shape index: {}]   ;;  %s8009_s12 = inlined_call_operand.vmem [shape: bf16[72,8], index: 12, kind: input, shape index: {}]   ;;  %s8010_s13 = inlined_call_operand.vmem [shape: f32[1,8], index: 13, kind: input, shape index: {}]   ;;  %s8011_s14 = inlined_call_operand.vmem [shape: bf16[72,8], index: 14, kind: input, shape index: {}]   ;;  %s8012_s15 = inlined_call_operand.vmem [shape: f32[1,8], index: 15, kind: input, shape index: {}]   ;;  %s8013_s16 = inlined_call_operand.vmem [shape: f32[2,64,32], index: 16, kind: output, shape index: {}]  }
   0x1   :  { %8046 = sst [smem:[#allocation27_spill]] %s7997_s0 }
   0x2 LB: > { %s4316_s22 = sadd.s32 4294967295, %s5566_s21   ;;  %p4320_p0 = scmp.ge.s32.totalorder %s5566_s21, 1  ;;  %s5566_s21 = sphi %s5663_s21, %s26_s21  }
   0x3   : > { %p470_p1 = scmp.lt.s32.totalorder %s5566_s21, 3 }
   0x5   : > { %p471_p2 = pnand %p4320_p0, %p470_p1 }
   0x7   : > { %474 = sbr.rel (%p471_p2) target bundleno = 1931 (0x78b), region = 84 }
   0xe   : > { %p523_p3 = scmp.lt.s32.totalorder %s4316_s22, 1  ;;  %s8047_s26 = sld [smem:[#allocation27_spill]]  ;;  %vm561_vm0 = vcmask 261120   ;;  %vm721_vm2 = vcmask 1046528   ;;  %vm817_vm4 = vcmask 1045504   ;;  %vm1026_vm6 = vcmask 523264  }
   0xf   : > { %s5570_s28 = smov 96   ;;  %s5571_s18 = smov 32   ;;  %vm1130_vm5 = vsmask.f32 4352  ;;  %vm1036_vm7 = vcmask 785408   ;;  %vm2281_vm8 = vcmask 1043456  }
  0x10   : > { %s8135_s22 = smov (!%p523_p3, %s4316_s22), 1  ;;  %s5572_s29 = smov 48   ;;  %vm2099_vm9 = vcmask 64512   ;;  %vm2109_vm10 = vcmask 130048   ;;  %vm2119_vm11 = vcmask 195584   ;;  %vm2138_vm12 = vcmask 326656  }
  0x11   : > { %s4473_s23 = sshll.u32 %s8135_s22, 5  ;;  %s530_s20 = scalar_lea.vmem %s8002_s5, %s8135_s22  ;;  %vm2148_vm13 = vcmask 392192   ;;  %vm2158_vm14 = vcmask 457728   ;;  %vm2268_vm15 = vcmask 588800  }
  0x12   : > { %s8021_s30 = smov 56   ;;  %s5574_s19 = smov 24  }
  0x13   : > { %s5576_s24 = smov 16   ;;  %s5577_s25 = smov 40  }
  0x14   : > { %s527_s27 = scalar_lea.vmem %s8047_s26, %s4473_s23  ;;  %s5569_s23 = smov 64  }
  0x15   : > { %v4476_v0 = vld [vmem:[%s527_s27] sm:$0xff]   ;;  %v4491_v1 = vld [vmem:[%s527_s27 + $0x8] sm:$0xff]   ;;  %v4492_v2 = vld [vmem:[%s527_s27 + $0x10] sm:$0xff]  }
  0x16   : > { %v4477_v3 = vunpack.c.l.bf16 %v4476_v0  ;;  %v4478_v4 = vunpack.c.h.bf16 %v4476_v0  ;;  %v4481_v5 = vunpack.c.l.bf16 %v4491_v1  ;;  %v4482_v6 = vunpack.c.h.bf16 %v4491_v1  ;;  %v4493_v7 = vld [vmem:[%s527_s27 + $0x18] sm:$0xff]  }
  0x17   : > { %v4485_v8 = vunpack.c.l.bf16 %v4492_v2  ;;  %v4486_v9 = vunpack.c.h.bf16 %v4492_v2  ;;  %v4489_v10 = vunpack.c.l.bf16 %v4493_v7  ;;  %v4490_v20 = vunpack.c.h.bf16 %v4493_v7 }
  0x18   : > { %v562_v11 = vsel %vm561_vm0, %v4477_v3, 0.0  ;;  %v563_v12 = vsel %vm561_vm0, %v4478_v4, 0.0  ;;  %v565_v13 = vsel %vm561_vm0, %v4481_v5, 0.0  ;;  %v567_v15 = vsel %vm561_vm0, %v4482_v6, 0.0 }
  0x19   : > { %v564_v14 = vadd.f32 %v563_v12, %v562_v11  ;;  %v569_v17 = vsel %vm561_vm0, %v4485_v8, 0.0  ;;  %v571_v18 = vsel %vm561_vm0, %v4486_v9, 0.0  ;;  %v573_v19 = vsel %vm561_vm0, %v4489_v10, 0.0 }
  0x1a   : > { %v575_v24 = vsel %vm561_vm0, %v4490_v20, 0.0 }
  0x1b   : > { %v566_v16 = vadd.f32 %v565_v13, %v564_v14 }
  0x1d   : > { %v568_v21 = vadd.f32 %v567_v15, %v566_v16  ;;  %v4328_v15 = vld [vmem:[%s7999_s2] ss:$0 sm:$0xff] }
  0x1f   : > { %v570_v22 = vadd.f32 %v569_v17, %v568_v21 }
  0x21   : > { %v572_v23 = vadd.f32 %v571_v18, %v570_v22 }
  0x23   : > { %v574_v25 = vadd.f32 %v573_v19, %v572_v23 }
  0x25   : > { %v576_v26 = vadd.f32 %v575_v24, %v574_v25 }
  0x27   : > { %v577_v27 = vrot.slane %v576_v26, 4 }
  0x29   : > { %v578_v28 = vadd.f32 %v577_v27, %v576_v26 }
  0x2b   : > { %v579_v29 = vrot.slane %v578_v28, 2 }
  0x2d   : > { %v580_v30 = vadd.f32 %v579_v29, %v578_v28 }
  0x2f   : > { %v581_v31 = vrot.slane %v580_v30, 1 }
  0x31   : > { %v582_v32 = vadd.f32 %v581_v31, %v580_v30 }
  0x33   : > { %v584_v33 = vmul.f32 0.015625, %v582_v32 }
  0x35   : > { %v585_v34 = vsub.f32 %v4477_v3, %v584_v33  ;;  %v586_v35 = vsub.f32 %v4478_v4, %v584_v33  ;;  %v587_v36 = vsub.f32 %v4481_v5, %v584_v33  ;;  %v588_v37 = vsub.f32 %v4482_v6, %v584_v33 }
  0x36   : > { %v589_v38 = vsub.f32 %v4485_v8, %v584_v33  ;;  %v590_v39 = vsub.f32 %v4486_v9, %v584_v33  ;;  %v591_v44 = vsub.f32 %v4489_v10, %v584_v33  ;;  %v592_v50 = vsub.f32 %v4490_v20, %v584_v33  ;;  %v4327_v10 = vld [vmem:[%s7998_s1] ss:$0 sm:$0xff] }
  0x37   : > { %v593_v40 = vmul.f32 %v585_v34, %v585_v34  ;;  %v594_v41 = vmul.f32 %v586_v35, %v586_v35  ;;  %v595_v42 = vmul.f32 %v587_v36, %v587_v36  ;;  %v596_v43 = vmul.f32 %v588_v37, %v588_v37 }
  0x38   : > { %v597_v45 = vmul.f32 %v589_v38, %v589_v38  ;;  %v598_v51 = vmul.f32 %v590_v39, %v590_v39  ;;  %v599_v54 = vmul.f32 %v591_v44, %v591_v44  ;;  %v600_v57 = vmul.f32 %v592_v50, %v592_v50 }
  0x39   : > { %v601_v46 = vsel %vm561_vm0, %v593_v40, 0.0  ;;  %v602_v47 = vsel %vm561_vm0, %v594_v41, 0.0  ;;  %v604_v48 = vsel %vm561_vm0, %v595_v42, 0.0  ;;  %v606_v52 = vsel %vm561_vm0, %v596_v43, 0.0 }
  0x3a   : > { %v603_v49 = vadd.f32 %v602_v47, %v601_v46  ;;  %v608_v55 = vsel %vm561_vm0, %v597_v45, 0.0  ;;  %v610_v58 = vsel %vm561_vm0, %v598_v51, 0.0  ;;  %v612_v60 = vsel %vm561_vm0, %v599_v54, 0.0 }
  0x3b   : > { %v614_v62 = vsel %vm561_vm0, %v600_v57, 0.0  ;;  %v537_v41 = vlaneseq }
  0x3c   : > { %v605_v53 = vadd.f32 %v604_v48, %v603_v49 }
  0x3d   : > { %v538_v47 = vshrl.u32 %v537_v41, 7 }
  0x3e   : > { %v607_v56 = vadd.f32 %v606_v52, %v605_v53 }
  0x3f   : > { %vm539_vm1 = vcmp.gt.s32.totalorder %v538_v47, 0  ;;  %vm542_vm3 = vcmp.lt.s32.totalorder %v538_v47, 7 }
  0x40   : > { %v609_v59 = vadd.f32 %v608_v55, %v607_v56 }
  0x42   : > { %v611_v61 = vadd.f32 %v610_v58, %v609_v59 }
  0x44   : > { %v613_v63 = vadd.f32 %v612_v60, %v611_v61  ;;  %v5568_v60 = vmov 0.0  }
  0x45   : > { %v4325_v61 = vsel %vm539_vm1, 1.0, %v5568_v60  ;;  %vm736_vm1 = vcmask 1040384  }
  0x46   : > { %v615_v0 = vadd.f32 %v614_v62, %v613_v63  ;;  %v5711_v62 = vrot.slane %v4325_v61, 1 }
  0x48   : > { %v616_v1 = vrot.slane %v615_v0, 4 }
  0x4a   : > { %v617_v2 = vadd.f32 %v616_v1, %v615_v0 }
  0x4c   : > { %v618_v3 = vrot.slane %v617_v2, 2 }
  0x4e   : > { %v619_v4 = vadd.f32 %v618_v3, %v617_v2 }
  0x50   : > { %v620_v5 = vrot.slane %v619_v4, 1 }
  0x52   : > { %v621_v6 = vadd.f32 %v620_v5, %v619_v4 }
  0x54   : > { %v622_v7 = vmul.f32 0.015625, %v621_v6 }
  0x56   : > { %v623_v8 = vadd.f32 1e-05, %v622_v7 }
  0x58   : > { %5396 = vrsqrt.f32 %v623_v8 }
  0x62   : > { %v5397_v9 = vpop.eup %5396 }
  0x63   : > { %v627_v11 = vmul.f32 %v5397_v9, %v587_v36  ;;  %v628_v12 = vmul.f32 %v5397_v9, %v588_v37  ;;  %v625_v13 = vmul.f32 %v5397_v9, %v585_v34  ;;  %v626_v14 = vmul.f32 %v5397_v9, %v586_v35 }
  0x64   : > { %v629_v16 = vmul.f32 %v5397_v9, %v589_v38  ;;  %v630_v17 = vmul.f32 %v5397_v9, %v590_v39  ;;  %v631_v18 = vmul.f32 %v5397_v9, %v591_v44  ;;  %v632_v40 = vmul.f32 %v5397_v9, %v592_v50 }
  0x65   : > { %v642_v19 = vmul.f32 %v4327_v10, %v627_v11  ;;  %v643_v20 = vmul.f32 %v4327_v10, %v628_v12  ;;  %v640_v21 = vmul.f32 %v4327_v10, %v625_v13  ;;  %v641_v22 = vmul.f32 %v4327_v10, %v626_v14  ;;  %v5355_v11 = vld [vmem:[%s8000_s3 + $0x40] sm:$0xff]  }
  0x66   : > { %v644_v23 = vmul.f32 %v4327_v10, %v629_v16  ;;  %v645_v24 = vmul.f32 %v4327_v10, %v630_v17  ;;  %v646_v25 = vmul.f32 %v4327_v10, %v631_v18  ;;  %v647_v43 = vmul.f32 %v4327_v10, %v632_v40  ;;  %v5356_v16 = vld [vmem:[%s8000_s3] sm:$0xff]   ;;  %4494 = vmatprep.subr.bf16.mxu0 %v5355_v11 }
  0x67   : > { %v657_v26 = vadd.f32 %v4328_v15, %v642_v19  ;;  %v658_v27 = vadd.f32 %v4328_v15, %v643_v20  ;;  %v655_v28 = vadd.f32 %v4328_v15, %v640_v21  ;;  %v656_v29 = vadd.f32 %v4328_v15, %v641_v22  ;;  %4495 = vmatpush3.bf16.msra.mxu0 %v5356_v16  ;;  %v5366_v16 = vld [vmem:[%s8000_s3 + $0x28] sm:$0xff]  }
  0x68   : > { %v5699_v30 = vadd.f32 %v4328_v15, %v644_v23  ;;  %v5701_v31 = vadd.f32 %v4328_v15, %v645_v24  ;;  %v5703_v35 = vadd.f32 %v4328_v15, %v646_v25  ;;  %v5708_v54 = vadd.f32 %v4328_v15, %v647_v43  ;;  %v5357_v25 = vld [vmem:[%s8000_s3 + $0x48] sm:$0xff]   ;;  %v5360_v43 = vld [vmem:[%s8000_s3 + $0x10] sm:$0xff]  }
  0x69   : > { %v4331_v32 = vmul.f32 -1.442695, %v657_v26  ;;  %v4332_v33 = vmul.f32 -1.442695, %v658_v27  ;;  %v4329_v34 = vmul.f32 -1.442695, %v655_v28  ;;  %4496 = vmatprep.subr.bf16.mxu0 %v5357_v25 }
  0x6a   : > { %v4330_v36 = vmul.f32 -1.442695, %v656_v29  ;;  %v4333_v37 = vmul.f32 -1.442695, %v5699_v30  ;;  %v4334_v38 = vmul.f32 -1.442695, %v5701_v31 }
  0x6b   : > { %5398 = vpow2.f32 %v4331_v32  ;;  %v4335_v39 = vmul.f32 -1.442695, %v5703_v35  ;;  %v4336_v59 = vmul.f32 -1.442695, %v5708_v54  ;;  %v5725_v10 = vrot.slane %v5568_v60, 1  ;;  %v5367_v25 = vld [vmem:[%s8000_s3 + $0x70] sm:$0xff]  }
  0x6c   : > { %5400 = vpow2.f32 %v4332_v33  ;;  %v5734_v14 = vmul.f32 0.0, %v5711_v62  ;;  %v4326_v24 = vsel %vm542_vm3, 1.0, %v5568_v60 }
  0x6d   : > { %5402 = vpow2.f32 %v4329_v34 }
  0x6e   : > { %5404 = vpow2.f32 %v4330_v36  ;;  %v5781_v36 = vrot.slane %v4326_v24, 7 }
  0x6f   : > { %5406 = vpow2.f32 %v4333_v37 }
  0x70   : > { %5408 = vpow2.f32 %v4334_v38  ;;  %8048 = vst [vmem:[#allocation2_spill] sm:$0xff] %v5781_v36 }
  0x71   : > { %5410 = vpow2.f32 %v4335_v39  ;;  %v5359_v39 = vld [vmem:[%s8000_s3 + $0x50] sm:$0xff]  }
  0x75   : > { %v5399_v42 = vpop.eup %5398 }
  0x76   : > { %v5401_v44 = vpop.eup %5400  ;;  %v689_v45 = vadd.f32 1.0, %v5399_v42 }
  0x77   : > { %v5403_v46 = vpop.eup %5402  ;;  %v690_v48 = vadd.f32 1.0, %v5401_v44 }
  0x78   : > { %v5405_v49 = vpop.eup %5404  ;;  %5412 = vrcp.f32 %v689_v45  ;;  %v687_v51 = vadd.f32 1.0, %v5403_v46 }
  0x79   : > { %v5407_v52 = vpop.eup %5406  ;;  %5414 = vrcp.f32 %v690_v48  ;;  %v688_v53 = vadd.f32 1.0, %v5405_v49 }
  0x7a   : > { %v5409_v55 = vpop.eup %5408  ;;  %5416 = vrcp.f32 %v687_v51  ;;  %v691_v56 = vadd.f32 1.0, %v5407_v52  ;;  %v5361_v51 = vld [vmem:[%s8000_s3 + $0x58] sm:$0xff]  }
  0x7b   : > { %v5411_v50 = vpop.eup %5410  ;;  %5418 = vrcp.f32 %v688_v53  ;;  %v692_v57 = vadd.f32 1.0, %v5409_v55 }
  0x7c   : > { %5420 = vrcp.f32 %v691_v56  ;;  %v693_v58 = vadd.f32 1.0, %v5411_v50  ;;  %v5362_v56 = vld [vmem:[%s8000_s3 + $0x18] sm:$0xff]  }
  0x7d   : > { %5422 = vrcp.f32 %v692_v57 }
  0x7e   : > { %5424 = vrcp.f32 %v693_v58 }
  0x7f   : > { %5426 = vpow2.f32 %v4336_v59 }
  0x82   : > { %v5413_v63 = vpop.eup %5412 }
  0x83   : > { %v5415_v0 = vpop.eup %5414  ;;  %v5713_v1 = vmul.f32 %v5413_v63, %v657_v26 }
  0x84   : > { %v5417_v2 = vpop.eup %5416  ;;  %v5715_v3 = vmul.f32 %v5415_v0, %v658_v27  ;;  %v5363_v0 = vld [vmem:[%s8000_s3 + $0x60] sm:$0xff]  }
  0x85   : > { %v5419_v4 = vpop.eup %5418  ;;  %v5719_v5 = vmul.f32 %v5711_v62, %v5713_v1  ;;  %v711_v6 = vmul.f32 %v5417_v2, %v655_v28  ;;  %v744_v55 = vmul.f32 %v5781_v36, %v5713_v1  ;;  %v5364_v2 = vld [vmem:[%s8000_s3 + $0x20] sm:$0xff]  }
  0x86   : > { %v5421_v7 = vpop.eup %5420  ;;  %v5723_v8 = vmul.f32 %v5711_v62, %v5715_v3  ;;  %v712_v9 = vmul.f32 %v5419_v4, %v656_v29  ;;  %v771_v29 = vrot.slane %v5713_v1, 1  ;;  %v773_v41 = vrot.slane %v5715_v3, 1 }
  0x87   : > { %v5423_v12 = vpop.eup %5422  ;;  %v5731_v13 = vmul.f32 %v5711_v62, %v711_v6  ;;  %v5736_v15 = vrot.slane %v711_v6, 1  ;;  %v5747_v19 = vmul.f32 %v5421_v7, %v5699_v30  ;;  %v5358_v30 = vld [vmem:[%s8000_s3 + $0x8] sm:$0xff]   ;;  %v742_v47 = vmul.f32 %v5781_v36, %v711_v6 }
  0x88   : > { %v4735_v17 = vpack.i.bf16 %v5723_v8, %v5719_v5  ;;  %v5744_v18 = vmul.f32 %v5711_v62, %v712_v9  ;;  %v5750_v20 = vmul.f32 %v5423_v12, %v5701_v31  ;;  %v5425_v21 = vpop.eup %5424  ;;  %v769_v28 = vrot.slane %v712_v9, 1  ;;  %4497 = vmatpush3.bf16.msra.mxu0 %v5358_v30 }
  0x89   : > { %v5427_v26 = vpop.eup %5426  ;;  %v768_v27 = vsel %vm721_vm2, %v5725_v10, %v5736_v15  ;;  %v4740_v31 = vpack.i.bf16 %v5731_v13, %v5734_v14  ;;  %v5772_v32 = vmul.f32 %v5711_v62, %v5747_v19  ;;  %v5779_v34 = vmul.f32 %v5425_v21, %v5703_v35  ;;  %4498 = vmatprep.subr.bf16.mxu0 %v5359_v39  ;;  %v5370_v39 = vld [vmem:[%s8000_s3 + $0x80] sm:$0xff]  }
  0x8a   : > { %4736 = vrot.lane.b32.xlu1 %v4735_v17, %s5569_s23  ;;  %v4730_v22 = vpack.i.bf16 %v5744_v18, %v5731_v13  ;;  %v4745_v23 = vpack.i.bf16 %v5719_v5, %v5744_v18  ;;  %v5776_v33 = vmul.f32 %v5711_v62, %v5750_v20  ;;  %v4755_v37 = vpack.i.bf16 %v768_v27, %v5725_v10 }
  0x8b   : > { %v694_v38 = vadd.f32 1.0, %v5427_v26  ;;  %v5790_v40 = vsel %vm721_vm2, %v5736_v15, %v769_v28  ;;  %v5793_v35 = vsel %vm721_vm2, %v769_v28, %v771_v29  ;;  %v775_v42 = vrot.slane %v5747_v19, 1  ;;  %4591 = vmatprep.subr.bf16.mxu1 %v5370_v39 }
  0x8c   : > { %4731 = vrot.lane.b32.xlu0 %v4730_v22, %s5569_s23  ;;  %v4750_v44 = vpack.i.bf16 %v5776_v33, %v5772_v32  ;;  %v777_v45 = vrot.slane %v5750_v20, 1  ;;  %v5805_v46 = vrot.slane %v5779_v34, 1  ;;  %v743_v48 = vmul.f32 %v5781_v36, %v712_v9  ;;  %4499 = vmatpush3.bf16.msra.mxu0 %v5360_v43  ;;  %v5365_v9 = vld [vmem:[%s8000_s3 + $0x68] sm:$0xff]  }
  0x8d   : > { %v4760_v49 = vpack.i.bf16 %v5793_v35, %v5790_v40  ;;  %v5816_v52 = vsel %vm721_vm2, %v771_v29, %v773_v41  ;;  %v5819_v53 = vsel %vm721_vm2, %v773_v41, %v775_v42  ;;  %5428 = vrcp.f32 %v694_v38  ;;  %4500 = vmatprep.subr.bf16.mxu0 %v5361_v51  ;;  %v5369_v38 = vld [vmem:[%s8000_s3 + $0x78] sm:$0xff]   ;;  %4592 = vmatpush3.bf16.msra.mxu1 %v5370_v39 }
  0x8e   : > { %4746 = vrot.lane.b32.xlu1 %v4745_v23, %s5570_s28  ;;  %v4765_v50 = vpack.i.bf16 %v5793_v35, %v769_v28  ;;  %v745_v57 = vmul.f32 %v5781_v36, %v5715_v3  ;;  %v5831_v58 = vsel %vm721_vm2, %v775_v42, %v777_v45  ;;  %v5835_v59 = vsel %vm721_vm2, %v777_v45, %v5805_v46  ;;  %v5368_v28 = vld [vmem:[%s8000_s3 + $0x30] sm:$0xff]   ;;  %v5371_v42 = vld [vmem:[%s8000_s3 + $0x38] sm:$0xff]  }
  0x8f   : > { %v819_v60 = vrot.slane %v742_v47, 2  ;;  %v821_v61 = vrot.slane %v743_v48, 2  ;;  %v4770_v63 = vpack.i.bf16 %v5819_v53, %v5816_v52  ;;  %v823_v1 = vrot.slane %v744_v55, 2 }
  0x90   : > { %4741 = vrot.lane.b32.xlu0 %v4740_v31, %s5570_s28  ;;  %4501 = vmatpush3.bf16.msra.mxu0 %v5362_v56  ;;  %v5849_v3 = vpack.i.bf16 %v5835_v59, %v5831_v58  ;;  %v825_v6 = vrot.slane %v745_v57, 2  ;;  %v741_v7 = vmul.f32 0.0, %v5781_v36  ;;  %v746_v12 = vmul.f32 %v5781_v36, %v5747_v19 }
  0x91   : > { %4502 = vmatprep.subr.bf16.mxu0 %v5363_v0  ;;  %v822_v4 = vsel %vm817_vm4, %v819_v60, %v821_v61  ;;  %v824_v11 = vsel %vm817_vm4, %v821_v61, %v823_v1  ;;  %v747_v24 = vmul.f32 %v5781_v36, %v5750_v20  ;;  %v748_v27 = vmul.f32 %v5781_v36, %v5779_v34 }
  0x92   : > { %4756 = vrot.lane.b32.xlu1 %v4755_v37, %s5571_s18  ;;  %v4785_v17 = vpack.i.bf16 %v822_v4, %v819_v60  ;;  %v826_v22 = vsel %vm817_vm4, %v823_v1, %v825_v6  ;;  %v5866_v23 = vrot.slane %v741_v7, 2  ;;  %v4800_v19 = vpack.i.bf16 %v824_v11, %v822_v4 }
  0x93   : > { %v827_v26 = vrot.slane %v746_v12, 2  ;;  %v4790_v29 = vpack.i.bf16 %v826_v22, %v824_v11  ;;  %v829_v31 = vrot.slane %v747_v24, 2  ;;  %v4805_v37 = vpack.i.bf16 %v5772_v32, %v5723_v8 }
  0x94   : > { %4751 = vrot.lane.b32.xlu0 %v4750_v44, %s5569_s23  ;;  %4503 = vmatpush3.bf16.msra.mxu0 %v5364_v2  ;;  %v820_v30 = vsel %vm817_vm4, %v5866_v23, %v819_v60  ;;  %v831_v41 = vrot.slane %v748_v27, 2  ;;  %v5903_v48 = vmul.f32 %v5711_v62, %v5779_v34  ;;  %v1075_v51 = vpack.c.bf16 %v824_v11, %v821_v61 }
  0x95   : > { %4504 = vmatprep.subr.bf16.mxu0 %v5365_v9  ;;  %v4795_v43 = vpack.i.bf16 %v820_v30, %v5866_v23  ;;  %v830_v45 = vsel %vm817_vm4, %v827_v26, %v829_v31  ;;  %v5372_v9 = vld [vmem:[%s8000_s3 + $0x88] sm:$0xff]  }
  0x96   : > { %4761 = vrot.lane.b32.xlu1 %v4760_v49, %s5571_s18  ;;  %v832_v56 = vsel %vm817_vm4, %v829_v31, %v831_v41  ;;  %v1166_v0 = vshrl.u32 %v1075_v51, 16  ;;  %v1169_v34 = vshll.u32 %v1075_v51, 16  ;;  %4593 = vmatprep.subr.bf16.mxu1 %v5372_v9 }
  0x97   : > { %v5429_v21 = vpop.eup %5428  ;;  %v1081_v57 = vpack.c.bf16 %v832_v56, %v830_v45  ;;  %4594 = vmatpush3.bf16.msra.mxu1 %v5372_v9 }
  0x98   : > { %4766 = vrot.lane.b32.xlu0 %v4765_v50, %s5570_s28  ;;  %4505 = vmatpush3.bf16.msra.mxu0 %v5366_v16  ;;  %v718_v20 = vmul.f32 %v5429_v21, %v5708_v54  ;;  %v828_v54 = vsel %vm817_vm4, %v825_v6, %v827_v26  ;;  %v1168_v11 = vrot.slane %v1166_v0, 3  ;;  %v1171_v12 = vrot.slane %v1169_v34, 4 }
  0x99   : > { %4506 = vmatprep.subr.bf16.mxu0 %v5367_v25  ;;  %v4815_v47 = vpack.i.bf16 %v828_v54, %v826_v22  ;;  %v1078_v55 = vpack.c.bf16 %v828_v54, %v826_v22  ;;  %v4810_v50 = vpack.i.bf16 %v830_v45, %v828_v54  ;;  %v1201_v6 = vshrl.u32 %v1081_v57, 16 }
  0x9a   : > { %4771 = vrot.lane.b32.xlu1 %v4770_v63, %s5570_s28  ;;  %v749_v44 = vmul.f32 %v5781_v36, %v718_v20  ;;  %v751_v49 = vmul.f32 %v5711_v62, %v718_v20  ;;  %v5912_v4 = vrot.slane %v718_v20, 1  ;;  %v1204_v7 = vshll.u32 %v1081_v57, 16 }
  0x9b   : > { %v1174_v1 = vshrl.u32 %v1078_v55, 16  ;;  %v1177_v2 = vshll.u32 %v1078_v55, 16  ;;  %v4840_v21 = vpack.i.bf16 %v832_v56, %v830_v45  ;;  %v1203_v22 = vrot.slane %v1201_v6, 3 }
  0x9c   : > { %4781 = vrot.lane.b32.xlu0 %v5849_v3, %s5570_s28  ;;  %4507 = vmatpush3.bf16.msra.mxu0 %v5368_v28  ;;  %v833_v60 = vrot.slane %v749_v44, 2  ;;  %v1206_v24 = vrot.slane %v1204_v7, 4  ;;  %v5923_v28 = vsel %vm721_vm2, %v5805_v46, %v5912_v4  ;;  %v4845_v20 = vpack.i.bf16 %v5903_v48, %v5776_v33 }
  0x9d   : > { %4508 = vmatprep.subr.bf16.mxu0 %v5369_v38  ;;  %v1176_v16 = vrot.slane %v1174_v1, 3  ;;  %v4860_v45 = vpack.i.bf16 %v751_v49, %v5725_v10 }
  0x9e   : > { %4776 = vrot.lane.b32.xlu1 %v4770_v63, %s5571_s18  ;;  %v4825_v63 = vpack.i.bf16 %v751_v49, %v5903_v48  ;;  %v834_v61 = vsel %vm817_vm4, %v831_v41, %v833_v60  ;;  %v1207_v27 = vor.u32 %v1206_v24, %v1203_v22  ;;  %v916_v31 = vsel %vm817_vm4, %v833_v60, %v5866_v23 }
  0x9f   : > { %v4830_v26 = vpack.i.bf16 %v834_v61, %v832_v56  ;;  %v1084_v38 = vpack.c.bf16 %v916_v31, %v834_v61  ;;  %v4855_v39 = vpack.i.bf16 %v834_v61, %v5734_v14  ;;  %v4850_v54 = vpack.i.bf16 %v5805_v46, %v916_v31 }
  0xa0   : > { %4786 = vrot.lane.b32.xlu0 %v4785_v17, %s5571_s18  ;;  %4509 = vmatpush3.bf16.msra.mxu0 %v5371_v42  ;;  %v1179_v17 = vrot.slane %v1177_v2, 4 }
  0xa1   : > { %v1228_v41 = vshrl.u32 %v1084_v38, 16  ;;  %v1231_v42 = vshll.u32 %v1084_v38, 16 }
  0xa2   : > { %4801 = vrot.lane.b32.xlu1 %v4800_v19, %s5569_s23  ;;  %v1172_v19 = vor.u32 %v1171_v12, %v1168_v11  ;;  %v1180_v25 = vor.u32 %v1179_v17, %v1176_v16 }
  0xa3   : > { %v1233_v44 = vrot.slane %v1231_v42, 4 }
  0xa4   : > { %4791 = vrot.lane.b32.xlu0 %v4790_v29, %s5571_s18  ;;  %v1181_v29 = vsel %vm1130_vm5, %v1172_v19, %v1180_v25  ;;  %v1208_v30 = vsel %vm1130_vm5, %v1180_v25, %v1207_v27 }
  0xa5   : > { %4595 = vmatprep.mubr.msk.bf16.mxu1 %vm561_vm0, %v1181_v29 }
  0xa6   : > { %4806 = vrot.lane.b32.xlu1 %v4805_v37, %s5570_s28  ;;  %4596 = vmatmul.mubr.msk.bf16.vlgmr.msra.gmra.mrb[0].mxu1 %vm561_vm0, %v1208_v30 }
  0xa8   : > { %4796 = vrot.lane.b32.xlu0 %v4795_v43, %s5569_s23  ;;  %v1230_v43 = vrot.slane %v1228_v41, 3 }
  0xaa   : > { %4816 = vrot.lane.b32.xlu1 %v4815_v47, %s5569_s23  ;;  %v1087_v47 = vpack.c.bf16 %v5866_v23, %v5866_v23  ;;  %v1234_v51 = vor.u32 %v1233_v44, %v1230_v43 }
  0xac   : > { %4811 = vrot.lane.b32.xlu0 %v4810_v50, %s5571_s18  ;;  %v1255_v55 = vshrl.u32 %v1087_v47, 16  ;;  %v1258_v56 = vshll.u32 %v1087_v47, 16  ;;  %v1235_v46 = vsel %vm1130_vm5, %v1207_v27, %v1234_v51 }
  0xad   : > { %4599 = vmatprep.mubr.msk.bf16.mxu1 %vm561_vm0, %v1235_v46 }
  0xae   : > { %4821 = vrot.lane.b32.xlu1 %v5849_v3, %s5571_s18  ;;  %v973_v3 = vsel %vm721_vm2, %v5912_v4, %v5725_v10  ;;  %v1257_v50 = vrot.slane %v1255_v55, 3  ;;  %v1260_v57 = vrot.slane %v1258_v56, 4 }
  0xaf   : > { %v4835_v37 = vpack.i.bf16 %v973_v3, %v5923_v28 }
  0xb0   : > { %4826 = vrot.lane.b32.xlu0 %v4825_v63, %s5569_s23  ;;  %v1261_v60 = vor.u32 %v1260_v57, %v1257_v50 }
  0xb2   : > { %4841 = vrot.lane.b32.xlu1 %v4840_v21, %s5569_s23  ;;  %v1262_v63 = vsel %vm1130_vm5, %v1234_v51, %v1261_v60 }
  0xb3   : > { %4600 = vmatmul.mubr.msk.bf16.gmra.mrb[4].mxu1 %vm561_vm0, %v1262_v63 }
  0xb4   : > { %4831 = vrot.lane.b32.xlu0 %v4830_v26, %s5571_s18 }
  0xb6   : > { %4846 = vrot.lane.b32.xlu1 %v4845_v20, %s5570_s28 }
  0xb8   : > { %4836 = vrot.lane.b32.xlu0 %v4835_v37, %s5570_s28 }
  0xba   : > { %4856 = vrot.lane.b32.xlu1 %v4855_v39, %s5569_s23 }
  0xbc   : > { %4851 = vrot.lane.b32.xlu0 %v4850_v54, %s5571_s18 }
  0xc0   : > { %4861 = vrot.lane.b32.xlu0 %v4860_v45, %s5570_s28  ;;  %s8076_s28 = smov 56  }
  0xc4   : > { %2029 = vrot.lane.b32.xlu0 %v5734_v14, %s5572_s29 }
  0xc8   : > { %2057 = vrot.lane.b32.xlu0 %v5725_v10, %s8021_s30 }
  0xfc   : > { %v5953_v49 = vpop.permute.xlu1 %4736 }
  0xfd   : > { %v4739_v22 = vunpack.i.h.bf16 %v5953_v49  ;;  %v4738_v24 = vunpack.i.l.bf16 %v5953_v49 }
  0xfe   : > { %v4732_v0 = vpop.permute.xlu0 %4731 }
  0xff   : > { %v4734_v19 = vunpack.i.h.bf16 %v4732_v0  ;;  %v4733_v25 = vunpack.i.l.bf16 %v4732_v0 }
 0x100   : > { %v4747_v34 = vpop.permute.xlu1 %4746 }
 0x101   : > { %v4749_v26 = vunpack.i.h.bf16 %v4747_v34  ;;  %v4748_v27 = vunpack.i.l.bf16 %v4747_v34 }
 0x102   : > { %v5955_v1 = vpop.permute.xlu0 %4741 }
 0x103   : > { %v4744_v3 = vunpack.i.h.bf16 %v5955_v1  ;;  %v4743_v29 = vunpack.i.l.bf16 %v5955_v1 }
 0x104   : > { %v4757_v2 = vpop.permute.xlu1 %4756 }
 0x105   : > { %v4759_v11 = vunpack.i.h.bf16 %v4757_v2  ;;  %v4758_v12 = vunpack.i.l.bf16 %v4757_v2 }
 0x106   : > { %v5957_v61 = vpop.permute.xlu0 %4751 }
 0x107   : > { %v1018_v30 = vsel %vm561_vm0, %v5734_v14, %v4759_v11  ;;  %v1017_v31 = vsel %vm561_vm0, %v5734_v14, %v4758_v12  ;;  %v4754_v37 = vunpack.i.h.bf16 %v5957_v61  ;;  %v4753_v38 = vunpack.i.l.bf16 %v5957_v61 }
 0x108   : > { %v4762_v6 = vpop.permute.xlu1 %4761 }
 0x109   : > { %v4764_v16 = vunpack.i.h.bf16 %v4762_v6  ;;  %v4763_v17 = vunpack.i.l.bf16 %v4762_v6 }
 0x10a   : > { %v4767_v7 = vpop.permute.xlu0 %4766 }
 0x10b   : > { %v1020_v39 = vsel %vm561_vm0, %v5744_v18, %v4764_v16  ;;  %v1019_v54 = vsel %vm561_vm0, %v5731_v13, %v4763_v17  ;;  %v4769_v44 = vunpack.i.h.bf16 %v4767_v7  ;;  %v4768_v45 = vunpack.i.l.bf16 %v4767_v7 }
 0x10c   : > { %v5959_v9 = vpop.permute.xlu1 %4771 }
 0x10d   : > { %v4774_v55 = vunpack.i.h.bf16 %v5959_v9  ;;  %v4773_v56 = vunpack.i.l.bf16 %v5959_v9 }
 0x10e   : > { %v5961_v21 = vpop.permute.xlu0 %4781 }
 0x10f   : > { %v4784_v46 = vunpack.i.h.bf16 %v5961_v21  ;;  %v4783_v50 = vunpack.i.l.bf16 %v5961_v21 }
 0x110   : > { %v4777_v20 = vpop.permute.xlu1 %4776 }
 0x111   : > { %v4779_v41 = vunpack.i.h.bf16 %v4777_v20  ;;  %v4778_v42 = vunpack.i.l.bf16 %v4777_v20 }
 0x112   : > { %v4787_v43 = vpop.permute.xlu0 %4786 }
 0x113   : > { %v4789_v47 = vunpack.i.h.bf16 %v4787_v43  ;;  %v4788_v51 = vunpack.i.l.bf16 %v4787_v43  ;;  %v1022_v49 = vsel %vm561_vm0, %v5723_v8, %v4779_v41  ;;  %v1021_v0 = vsel %vm561_vm0, %v5719_v5, %v4778_v42 }
 0x114   : > { %v4802_v57 = vpop.permute.xlu1 %4801 }
 0x115   : > { %v1047_v18 = vsel %vm561_vm0, %v5790_v40, %v4789_v47  ;;  %v1046_v13 = vsel %vm561_vm0, %v5736_v15, %v4788_v51  ;;  %v4804_v60 = vunpack.i.h.bf16 %v4802_v57  ;;  %v4803_v63 = vunpack.i.l.bf16 %v4802_v57 }
 0x116   : > { %v1055_v34 = vsel %vm1026_vm6, %v1046_v13, %v4733_v25  ;;  %v1056_v2 = vsel %vm1026_vm6, %v1047_v18, %v4734_v19  ;;  %v4792_v6 = vpop.permute.xlu0 %4791 }
 0x117   : > { %v1030_v7 = vsel %vm1026_vm6, %v1020_v39, %v4804_v60  ;;  %v1029_v40 = vsel %vm1026_vm6, %v1019_v54, %v4803_v63  ;;  %v4794_v9 = vunpack.i.h.bf16 %v4792_v6  ;;  %v4793_v11 = vunpack.i.l.bf16 %v4792_v6 }
 0x118   : > { %v1040_v15 = vsel %vm1036_vm7, %v1030_v7, %v4749_v26  ;;  %v1039_v12 = vsel %vm1036_vm7, %v1029_v40, %v4748_v27  ;;  %v4807_v16 = vpop.permute.xlu1 %4806  ;;  %v1064_v8 = vsel %vm1036_vm7, %v1055_v34, %v4768_v45  ;;  %v1065_v5 = vsel %vm1036_vm7, %v1056_v2, %v4769_v44 }
 0x119   : > { %v1049_v17 = vsel %vm561_vm0, %v5816_v52, %v4794_v9  ;;  %v1048_v19 = vsel %vm561_vm0, %v5793_v35, %v4793_v11  ;;  %v4809_v25 = vunpack.i.h.bf16 %v4807_v16  ;;  %v4808_v20 = vunpack.i.l.bf16 %v4807_v16 }
 0x11a   : > { %v1058_v39 = vsel %vm1026_vm6, %v1049_v17, %v4739_v22  ;;  %v1057_v54 = vsel %vm1026_vm6, %v1048_v19, %v4738_v24  ;;  %v4797_v26 = vpop.permute.xlu0 %4796  ;;  %v1074_v41 = vpack.c.bf16 %v1065_v5, %v1064_v8  ;;  %v1076_v27 = vpack.c.bf16 %v1040_v15, %v1039_v12 }
 0x11b   : > { %v4799_v42 = vunpack.i.h.bf16 %v4797_v26  ;;  %v4798_v43 = vunpack.i.l.bf16 %v4797_v26  ;;  %v1066_v45 = vsel %vm1036_vm7, %v1057_v54, %v4773_v56  ;;  %v1067_v44 = vsel %vm1036_vm7, %v1058_v39, %v4774_v55 }
 0x11c   : > { %v4817_v47 = vpop.permute.xlu1 %4816  ;;  %v1077_v52 = vpack.c.bf16 %v1067_v44, %v1066_v45  ;;  %v1149_v51 = vshrl.u32 %v1074_v41, 16  ;;  %v1152_v57 = vshll.u32 %v1074_v41, 16  ;;  %v1140_v35 = vshrl.u32 %v1076_v27, 16 }
 0x11d   : > { %v1028_v18 = vsel %vm1026_vm6, %v1018_v30, %v4799_v42  ;;  %v1027_v22 = vsel %vm1026_vm6, %v1017_v31, %v4798_v43  ;;  %v4819_v13 = vunpack.i.h.bf16 %v4817_v47  ;;  %v4818_v24 = vunpack.i.l.bf16 %v4817_v47 }
 0x11e   : > { %v1037_v60 = vsel %vm1036_vm7, %v1027_v22, %v4743_v29  ;;  %v1038_v63 = vsel %vm1036_vm7, %v1028_v18, %v4744_v3  ;;  %v4812_v56 = vpop.permute.xlu0 %4811  ;;  %v1151_v34 = vrot.slane %v1149_v51, 3  ;;  %v1154_v55 = vrot.slane %v1152_v57, 4 }
 0x11f   : > { %v1032_v2 = vsel %vm1026_vm6, %v1022_v49, %v4819_v13  ;;  %v1031_v6 = vsel %vm1026_vm6, %v1021_v0, %v4818_v24  ;;  %v4814_v7 = vunpack.i.h.bf16 %v4812_v56  ;;  %v4813_v40 = vunpack.i.l.bf16 %v4812_v56 }
 0x120   : > { %v6014_v30 = vsel %vm1036_vm7, %v1031_v6, %v4808_v20  ;;  %v6017_v31 = vsel %vm1036_vm7, %v1032_v2, %v4809_v25  ;;  %v4822_v29 = vpop.permute.xlu1 %4821  ;;  %v1155_v9 = vor.u32 %v1154_v55, %v1151_v34  ;;  %v1157_v1 = vshrl.u32 %v1077_v52, 16 }
 0x121   : > { %v1051_v3 = vsel %vm561_vm0, %v5831_v58, %v4814_v7  ;;  %v1050_v11 = vsel %vm561_vm0, %v5819_v53, %v4813_v40  ;;  %v4824_v49 = vunpack.i.h.bf16 %v4822_v29  ;;  %v4823_v15 = vunpack.i.l.bf16 %v4822_v29 }
 0x122   : > { %v1059_v0 = vsel %vm1026_vm6, %v1050_v11, %v4753_v38  ;;  %v1060_v12 = vsel %vm1026_vm6, %v1051_v3, %v4754_v37  ;;  %v4827_v16 = vpop.permute.xlu0 %4826  ;;  %v1159_v8 = vrot.slane %v1157_v1, 3  ;;  %v1160_v5 = vshll.u32 %v1077_v52, 16 }
 0x123   : > { %v1024_v17 = vsel %vm561_vm0, %v5776_v33, %v4824_v49  ;;  %v1023_v58 = vsel %vm561_vm0, %v5772_v32, %v4823_v15  ;;  %v4829_v53 = vunpack.i.h.bf16 %v4827_v16  ;;  %v4828_v19 = vunpack.i.l.bf16 %v4827_v16 }
 0x124   : > { %v1162_v25 = vrot.slane %v1160_v5, 4  ;;  %v4842_v20 = vpop.permute.xlu1 %4841  ;;  %v1073_v39 = vpack.c.bf16 %v1038_v63, %v1037_v60  ;;  %v1142_v54 = vrot.slane %v1140_v35, 3  ;;  %v1143_v38 = vshll.u32 %v1076_v27, 16 }
 0x125   : > { %v4844_v26 = vunpack.i.h.bf16 %v4842_v20  ;;  %v4843_v61 = vunpack.i.l.bf16 %v4842_v20  ;;  %v1068_v37 = vsel %vm1036_vm7, %v1059_v0, %v4783_v50  ;;  %v1069_v33 = vsel %vm1036_vm7, %v1060_v12, %v4784_v46 }
 0x126   : > { %v1163_v41 = vor.u32 %v1162_v25, %v1159_v8  ;;  %v4832_v42 = vpop.permute.xlu0 %4831  ;;  %v1132_v32 = vshrl.u32 %v1073_v39, 16  ;;  %v1135_v43 = vshll.u32 %v1073_v39, 16  ;;  %v1145_v45 = vrot.slane %v1143_v38, 4 }
 0x127   : > { %v1033_v44 = vsel %vm1026_vm6, %v1023_v58, %v4843_v61  ;;  %v1034_v47 = vsel %vm1026_vm6, %v1024_v17, %v4844_v26  ;;  %v4834_v27 = vunpack.i.h.bf16 %v4832_v42  ;;  %v4833_v52 = vunpack.i.l.bf16 %v4832_v42 }
 0x128   : > { %v1164_v51 = vsel %vm1130_vm5, %v1155_v9, %v1163_v41  ;;  %v1134_v57 = vrot.slane %v1132_v32, 3  ;;  %v1137_v35 = vrot.slane %v1135_v43, 4  ;;  %v1146_v50 = vor.u32 %v1145_v45, %v1142_v54  ;;  %v4847_v18 = vpop.permute.xlu1 %4846 }
 0x129   : > { %1423 = vmatprep.mubr.bf16.mxu0 %v1164_v51  ;;  %v1053_v21 = vsel %vm561_vm0, %v5923_v28, %v4834_v27  ;;  %v1052_v46 = vsel %vm561_vm0, %v5835_v59, %v4833_v52  ;;  %v4849_v22 = vunpack.i.h.bf16 %v4847_v18  ;;  %v4848_v13 = vunpack.i.l.bf16 %v4847_v18 }
 0x12a   : > { %v1138_v24 = vor.u32 %v1137_v35, %v1134_v57  ;;  %v4837_v60 = vpop.permute.xlu0 %4836  ;;  %v1061_v63 = vsel %vm1026_vm6, %v1052_v46, %v4828_v19  ;;  %v1062_v56 = vsel %vm1026_vm6, %v1053_v21, %v4829_v53  ;;  %v1080_v34 = vpack.c.bf16 %v1069_v33, %v1068_v37 }
 0x12b   : > { %v1043_v55 = vsel %vm1036_vm7, %v1033_v44, %v4848_v13  ;;  %v1044_v2 = vsel %vm1036_vm7, %v1034_v47, %v4849_v22  ;;  %v4839_v6 = vunpack.i.h.bf16 %v4837_v60  ;;  %v4838_v7 = vunpack.i.l.bf16 %v4837_v60 }
 0x12c   : > { %v1147_v28 = vsel %vm1130_vm5, %v1138_v24, %v1146_v50  ;;  %v1082_v40 = vpack.c.bf16 %v1044_v2, %v1043_v55  ;;  %v1192_v29 = vshrl.u32 %v1080_v34, 16  ;;  %v1195_v59 = vshll.u32 %v1080_v34, 16  ;;  %v4857_v9 = vpop.permute.xlu1 %4856 }
 0x12d   : > { %1424 = vmatmul.mubr.bf16.vlgmr.msra.gmra.mrb[0].mxu0 %v1147_v28  ;;  %v1070_v1 = vsel %vm1036_vm7, %v1061_v63, %v4838_v7  ;;  %v1071_v3 = vsel %vm1036_vm7, %v1062_v56, %v4839_v6  ;;  %v4859_v11 = vunpack.i.h.bf16 %v4857_v9  ;;  %v1079_v16 = vpack.c.bf16 %v6017_v31, %v6014_v30 }
 0x12e   : > { %v1083_v49 = vpack.c.bf16 %v1071_v3, %v1070_v1  ;;  %v1194_v15 = vrot.slane %v1192_v29, 3  ;;  %v1197_v0 = vrot.slane %v1195_v59, 4  ;;  %v4852_v12 = vpop.permute.xlu0 %4851  ;;  %v4858_v17 = vunpack.i.l.bf16 %v4857_v9 }
 0x12f   : > { %v4854_v8 = vunpack.i.h.bf16 %v4852_v12  ;;  %v4853_v5 = vunpack.i.l.bf16 %v4852_v12  ;;  %v1210_v58 = vshrl.u32 %v1082_v40, 16  ;;  %v1183_v19 = vshrl.u32 %v1079_v16, 16 }
 0x130   : > { %v1198_v53 = vor.u32 %v1197_v0, %v1194_v15  ;;  %v1186_v25 = vshll.u32 %v1079_v16, 16  ;;  %v1219_v20 = vshrl.u32 %v1083_v49, 16  ;;  %v1222_v38 = vshll.u32 %v1083_v49, 16  ;;  %v5373_v49 = vld [vmem:[%s8005_s8] sm:$0xff]   ;;  %v5374_v15 = vld [vmem:[%s8005_s8 + $0x8] sm:$0xff]  }
 0x131   : > { %v1025_v39 = vsel %vm561_vm0, %v5903_v48, %v4854_v8  ;;  %v1054_v54 = vsel %vm561_vm0, %v5912_v4, %v4853_v5  ;;  %v1213_v26 = vshll.u32 %v1082_v40, 16  ;;  %v1185_v37 = vrot.slane %v1183_v19, 3  ;;  %4603 = vmatprep.subr.bf16.mxu1 %v5373_v49  ;;  %v4337_v16 = vld [vmem:[%s8001_s4] ss:$0 sm:$0xff] }
 0x132   : > { %v1199_v61 = vsel %vm1130_vm5, %v1163_v41, %v1198_v53  ;;  %v4862_v30 = vpop.permute.xlu0 %4861  ;;  %v1188_v31 = vrot.slane %v1186_v25, 4  ;;  %v1221_v32 = vrot.slane %v1219_v20, 3  ;;  %v1035_v43 = vsel %vm1026_vm6, %v1025_v39, %v4859_v11  ;;  %4604 = vmatpush3.bf16.msra.mxu1 %v5373_v49  ;;  %v4360_v19 = vld [vmem:[%s530_s20] ss:$0 sm:$0xff]  ;;  %s5575_s20 = smov 8  }
 0x133   : > { %1431 = vmatprep.mubr.bf16.mxu0 %v1199_v61  ;;  %v4864_v33 = vunpack.i.h.bf16 %v4862_v30  ;;  %v4863_v42 = vunpack.i.l.bf16 %v4862_v30  ;;  %v1063_v45 = vsel %vm1026_vm6, %v1054_v54, %v4858_v17  ;;  %v1224_v44 = vrot.slane %v1222_v38, 4  ;;  %4605 = vmatprep.subr.bf16.mxu1 %v5374_v15 }
 0x134   : > { %v1212_v48 = vrot.slane %v1210_v58, 3  ;;  %v1189_v47 = vor.u32 %v1188_v31, %v1185_v37  ;;  %v1215_v52 = vrot.slane %v1213_v26, 4 }
 0x135   : > { %v1045_v4 = vsel %vm1036_vm7, %v1035_v43, %v4864_v33  ;;  %v1072_v27 = vsel %vm1036_vm7, %v1063_v45, %v4863_v42  ;;  %v1225_v57 = vor.u32 %v1224_v44, %v1221_v32 }
 0x136   : > { %v1085_v41 = vpack.c.bf16 %v1045_v4, %v1045_v4  ;;  %v1086_v51 = vpack.c.bf16 %v1072_v27, %v1072_v27  ;;  %v1190_v35 = vsel %vm1130_vm5, %v1146_v50, %v1189_v47  ;;  %v1216_v22 = vor.u32 %v1215_v52, %v1212_v48  ;;  %4606 = vmatpush3.bf16.msra.mxu1 %v5374_v15 }
 0x137   : > { %1432 = vmatmul.mubr.bf16.gmra.mrb[4].mxu0 %v1190_v35  ;;  %v1226_v18 = vsel %vm1130_vm5, %v1198_v53, %v1225_v57 }
 0x138   : > { %v1246_v21 = vshrl.u32 %v1086_v51, 16  ;;  %v1249_v46 = vshll.u32 %v1086_v51, 16  ;;  %1439 = vmatprep.mubr.bf16.mxu0 %v1226_v18  ;;  %v1237_v13 = vshrl.u32 %v1085_v41, 16  ;;  %v1240_v24 = vshll.u32 %v1085_v41, 16 }
 0x139   : > { %v1217_v34 = vsel %vm1130_vm5, %v1189_v47, %v1216_v22 }
 0x13a   : > { %v1248_v60 = vrot.slane %v1246_v21, 3  ;;  %v1251_v63 = vrot.slane %v1249_v46, 4  ;;  %v1239_v55 = vrot.slane %v1237_v13, 3  ;;  %v1242_v2 = vrot.slane %v1240_v24, 4 }
 0x13c   : > { %v1252_v56 = vor.u32 %v1251_v63, %v1248_v60  ;;  %v1243_v50 = vor.u32 %v1242_v2, %v1239_v55 }
 0x13e   : > { %v1253_v6 = vsel %vm1130_vm5, %v1225_v57, %v1252_v56  ;;  %v1244_v7 = vsel %vm1130_vm5, %v1216_v22, %v1243_v50 }
 0x13f   : > { %1440 = vmatmul.mubr.bf16.gmra.mrb[8].mxu0 %v1217_v34 }
 0x140   : > { %1447 = vmatprep.mubr.bf16.mxu0 %v1253_v6 }
 0x147   : > { %1448 = vmatmul.mubr.bf16.gmra.mrb[12].mxu0 %v1244_v7 }
 0x179   : > { %v4597_v28 = vpop.f32.mrb[0].mxu1 }
 0x17a   : > { %v1490_v40 = vpop.f32.mrb[1].mxu1 }
 0x17b   : > { %v4598_v29 = vpop.f32.mrb[2].mxu1 }
 0x17c   : > { %v1493_v59 = vpop.f32.mrb[3].mxu1 }
 0x186   : > { %v6069_v9 = vpop.f32.mrb[4].mxu1 }
 0x187   : > { %v1506_v1 = vpop.f32.mrb[5].mxu1 }
 0x188   : > { %v6071_v3 = vpop.f32.mrb[6].mxu1 }
 0x189   : > { %v1509_v11 = vpop.f32.mrb[7].mxu1 }
 0x200   : > { %v4510_v0 = vpop.f32.mrb[0].mxu0 }
 0x201   : > { %v4511_v12 = vpop.f32.mrb[1].mxu0 }
 0x202   : > { %v4512_v8 = vadd.f32 %v4511_v12, %v4510_v0  ;;  %v4513_v5 = vpop.f32.mrb[2].mxu0 }
 0x203   : > { %v4514_v17 = vpop.f32.mrb[3].mxu0 }
 0x204   : > { %v4515_v58 = vadd.f32 %v4514_v17, %v4513_v5  ;;  %v1426_v53 = vadd.f32 %v4512_v8, %v4337_v16 }
 0x206   : > { %v1491_v25 = vadd.f32 %v1490_v40, %v1426_v53  ;;  %v1429_v20 = vadd.f32 %v4515_v58, %v4337_v16 }
 0x208   : > { %v1528_v39 = vadd.f32 %v4360_v19, %v1491_v25  ;;  %v1494_v54 = vadd.f32 %v1493_v59, %v1429_v20 }
 0x20a   : > { %v1529_v38 = vadd.f32 %v4360_v19, %v1494_v54  ;;  %v4516_v26 = vpop.f32.mrb[4].mxu0  ;;  %v1536_v61 = vsel %vm561_vm0, %v1528_v39, 0.0 }
 0x20b   : > { %v4517_v30 = vpop.f32.mrb[5].mxu0 }
 0x20c   : > { %v1537_v37 = vsel %vm561_vm0, %v1529_v38, 0.0  ;;  %v4518_v33 = vadd.f32 %v4517_v30, %v4516_v26  ;;  %v4519_v42 = vpop.f32.mrb[6].mxu0 }
 0x20d   : > { %v1538_v31 = vadd.f32 %v1537_v37, %v1536_v61  ;;  %v4520_v32 = vpop.f32.mrb[7].mxu0 }
 0x20e   : > { %v1434_v43 = vadd.f32 %v4518_v33, %v4337_v16  ;;  %v4521_v45 = vadd.f32 %v4520_v32, %v4519_v42 }
 0x210   : > { %v1499_v44 = vadd.f32 %v4597_v28, %v1434_v43  ;;  %v1437_v48 = vadd.f32 %v4521_v45, %v4337_v16 }
 0x212   : > { %v1530_v47 = vadd.f32 %v4360_v19, %v1499_v44  ;;  %v1502_v4 = vadd.f32 %v4598_v29, %v1437_v48  ;;  %v4522_v27 = vpop.f32.mrb[8].mxu0 }
 0x213   : > { %v4523_v52 = vpop.f32.mrb[9].mxu0 }
 0x214   : > { %v1539_v41 = vsel %vm561_vm0, %v1530_v47, 0.0  ;;  %v1531_v51 = vadd.f32 %v4360_v19, %v1502_v4  ;;  %v4524_v57 = vadd.f32 %v4523_v52, %v4522_v27  ;;  %v4525_v35 = vpop.f32.mrb[10].mxu0 }
 0x215   : > { %v4526_v18 = vpop.f32.mrb[11].mxu0  ;;  %v1540_v21 = vadd.f32 %v1539_v41, %v1538_v31 }
 0x216   : > { %v4527_v46 = vadd.f32 %v4526_v18, %v4525_v35  ;;  %v1442_v22 = vadd.f32 %v4524_v57, %v4337_v16  ;;  %v1541_v13 = vsel %vm561_vm0, %v1531_v51, 0.0 }
 0x217   : > { %v1542_v24 = vadd.f32 %v1541_v13, %v1540_v21 }
 0x218   : > { %v1507_v60 = vadd.f32 %v1506_v1, %v1442_v22  ;;  %v1445_v63 = vadd.f32 %v4527_v46, %v4337_v16 }
 0x21a   : > { %v1532_v56 = vadd.f32 %v4360_v19, %v1507_v60  ;;  %v1510_v34 = vadd.f32 %v1509_v11, %v1445_v63  ;;  %v4528_v55 = vpop.f32.mrb[12].mxu0 }
 0x21b   : > { %v4529_v2 = vpop.f32.mrb[13].mxu0 }
 0x21c   : > { %v1543_v6 = vsel %vm561_vm0, %v1532_v56, 0.0  ;;  %v1533_v50 = vadd.f32 %v4360_v19, %v1510_v34  ;;  %v4530_v7 = vadd.f32 %v4529_v2, %v4528_v55  ;;  %v4531_v28 = vpop.f32.mrb[14].mxu0 }
 0x21d   : > { %v1544_v40 = vadd.f32 %v1543_v6, %v1542_v24  ;;  %v4532_v29 = vpop.f32.mrb[15].mxu0 }
 0x21e   : > { %v1545_v59 = vsel %vm561_vm0, %v1533_v50, 0.0  ;;  %v1450_v49 = vadd.f32 %v4530_v7, %v4337_v16  ;;  %v4533_v15 = vadd.f32 %v4532_v29, %v4531_v28 }
 0x21f   : > { %v1546_v0 = vadd.f32 %v1545_v59, %v1544_v40 }
 0x220   : > { %v1515_v12 = vadd.f32 %v6069_v9, %v1450_v49  ;;  %v1453_v1 = vadd.f32 %v4533_v15, %v4337_v16  ;;  %v6107_v49 = vld [vmem:[%s8003_s6 + $0x2] ss:$0 sm:$0xff]  ;;  %v4361_v15 = vld [vmem:[%s8003_s6] ss:$0 sm:$0xff] }
 0x222   : > { %v1534_v8 = vadd.f32 %v4360_v19, %v1515_v12  ;;  %v1518_v11 = vadd.f32 %v6071_v3, %v1453_v1 }
 0x224   : > { %v1547_v5 = vsel %vm561_vm0, %v1534_v8, 0.0  ;;  %v1535_v17 = vadd.f32 %v4360_v19, %v1518_v11  ;;  %v6123_v11 = vld [vmem:[%s8004_s7 + $0x2] ss:$0 sm:$0xff] }
 0x225   : > { %v1548_v58 = vadd.f32 %v1547_v5, %v1546_v0 }
 0x226   : > { %v1549_v53 = vsel %vm561_vm0, %v1535_v17, 0.0 }
 0x227   : > { %v1550_v25 = vadd.f32 %v1549_v53, %v1548_v58 }
 0x229   : > { %v1551_v20 = vrot.slane %v1550_v25, 4 }
 0x22b   : > { %v1552_v54 = vadd.f32 %v1551_v20, %v1550_v25 }
 0x22d   : > { %v1553_v26 = vrot.slane %v1552_v54, 2 }
 0x22f   : > { %v1554_v61 = vadd.f32 %v1553_v26, %v1552_v54 }
 0x231   : > { %v1555_v37 = vrot.slane %v1554_v61, 1 }
 0x233   : > { %v1556_v30 = vadd.f32 %v1555_v37, %v1554_v61 }
 0x235   : > { %v1557_v31 = vmul.f32 0.015625, %v1556_v30 }
 0x237   : > { %v1558_v33 = vsub.f32 %v1528_v39, %v1557_v31  ;;  %v1559_v9 = vsub.f32 %v1529_v38, %v1557_v31  ;;  %v1560_v16 = vsub.f32 %v1530_v47, %v1557_v31  ;;  %v1561_v42 = vsub.f32 %v1531_v51, %v1557_v31 }
 0x238   : > { %v1562_v32 = vsub.f32 %v1532_v56, %v1557_v31  ;;  %v1563_v3 = vsub.f32 %v1533_v50, %v1557_v31  ;;  %v1564_v43 = vsub.f32 %v1534_v8, %v1557_v31  ;;  %v1565_v45 = vsub.f32 %v1535_v17, %v1557_v31  ;;  %v4362_v17 = vld [vmem:[%s8004_s7] ss:$0 sm:$0xff] }
 0x239   : > { %v1566_v19 = vmul.f32 %v1558_v33, %v1558_v33  ;;  %v1567_v44 = vmul.f32 %v1559_v9, %v1559_v9  ;;  %v1568_v48 = vmul.f32 %v1560_v16, %v1560_v16  ;;  %v1569_v4 = vmul.f32 %v1561_v42, %v1561_v42 }
 0x23a   : > { %v1570_v57 = vmul.f32 %v1562_v32, %v1562_v32  ;;  %v1571_v38 = vmul.f32 %v1563_v3, %v1563_v3  ;;  %v1572_v18 = vmul.f32 %v1564_v43, %v1564_v43  ;;  %v1573_v22 = vmul.f32 %v1565_v45, %v1565_v45 }
 0x23b   : > { %v1574_v27 = vsel %vm561_vm0, %v1566_v19, 0.0  ;;  %v1575_v52 = vsel %vm561_vm0, %v1567_v44, 0.0  ;;  %v1577_v35 = vsel %vm561_vm0, %v1568_v48, 0.0  ;;  %v1579_v47 = vsel %vm561_vm0, %v1569_v4, 0.0  ;;  %v4398_v19 = vld [vmem:[%s8003_s6 + $0x1] ss:$0 sm:$0xff] }
 0x23c   : > { %v1576_v41 = vadd.f32 %v1575_v52, %v1574_v27  ;;  %v1581_v21 = vsel %vm561_vm0, %v1570_v57, 0.0  ;;  %v1583_v13 = vsel %vm561_vm0, %v1571_v38, 0.0  ;;  %v1585_v60 = vsel %vm561_vm0, %v1572_v18, 0.0  ;;  %v6173_v57 = vld [vmem:[%s8004_s7 + $0x1] ss:$0 sm:$0xff] }
 0x23d   : > { %v1587_v56 = vsel %vm561_vm0, %v1573_v22, 0.0 }
 0x23e   : > { %v1578_v39 = vadd.f32 %v1577_v35, %v1576_v41 }
 0x240   : > { %v1580_v51 = vadd.f32 %v1579_v47, %v1578_v39 }
 0x242   : > { %v1582_v46 = vadd.f32 %v1581_v21, %v1580_v51 }
 0x244   : > { %v1584_v24 = vadd.f32 %v1583_v13, %v1582_v46 }
 0x246   : > { %v1586_v63 = vadd.f32 %v1585_v60, %v1584_v24 }
 0x248   : > { %v1588_v34 = vadd.f32 %v1587_v56, %v1586_v63 }
 0x24a   : > { %v1589_v55 = vrot.slane %v1588_v34, 4 }
 0x24c   : > { %v1590_v2 = vadd.f32 %v1589_v55, %v1588_v34 }
 0x24e   : > { %v1591_v6 = vrot.slane %v1590_v2, 2 }
 0x250   : > { %v1592_v50 = vadd.f32 %v1591_v6, %v1590_v2 }
 0x252   : > { %v1593_v7 = vrot.slane %v1592_v50, 1 }
 0x254   : > { %v1594_v28 = vadd.f32 %v1593_v7, %v1592_v50 }
 0x256   : > { %v1595_v40 = vmul.f32 0.015625, %v1594_v28 }
 0x258   : > { %v1596_v29 = vadd.f32 1e-05, %v1595_v40 }
 0x25a   : > { %5430 = vrsqrt.f32 %v1596_v29 }
 0x264   : > { %v5431_v59 = vpop.eup %5430 }
 0x265   : > { %v6112_v0 = vmul.f32 %v5431_v59, %v1560_v16  ;;  %v6114_v12 = vmul.f32 %v5431_v59, %v1561_v42  ;;  %v6116_v1 = vmul.f32 %v5431_v59, %v1565_v45  ;;  %v6118_v8 = vmul.f32 %v5431_v59, %v1558_v33 }
 0x266   : > { %v6125_v5 = vmul.f32 %v5431_v59, %v1559_v9  ;;  %v6130_v58 = vmul.f32 %v5431_v59, %v1562_v32  ;;  %v6132_v53 = vmul.f32 %v5431_v59, %v1563_v3  ;;  %v6134_v25 = vmul.f32 %v5431_v59, %v1564_v43 }
 0x267   : > { %v3609_v20 = vmul.f32 %v6107_v49, %v6116_v1  ;;  %v1611_v54 = vmul.f32 %v4361_v15, %v6118_v8  ;;  %v1613_v26 = vmul.f32 %v4361_v15, %v6112_v0  ;;  %v1614_v61 = vmul.f32 %v4361_v15, %v6114_v12 }
 0x268   : > { %v1612_v37 = vmul.f32 %v4361_v15, %v6125_v5  ;;  %v1615_v30 = vmul.f32 %v4361_v15, %v6130_v58  ;;  %v1616_v31 = vmul.f32 %v4361_v15, %v6132_v53  ;;  %v1617_v33 = vmul.f32 %v4361_v15, %v6134_v25 }
 0x269   : > { %v6146_v9 = vadd.f32 %v6123_v11, %v3609_v20  ;;  %v6148_v16 = vadd.f32 %v4362_v17, %v1611_v54  ;;  %v6150_v42 = vadd.f32 %v4362_v17, %v1613_v26  ;;  %v6152_v32 = vadd.f32 %v4362_v17, %v1614_v61 }
 0x26a   : > { %v6154_v3 = vadd.f32 %v4362_v17, %v1612_v37  ;;  %v6156_v43 = vadd.f32 %v4362_v17, %v1615_v30  ;;  %v1618_v45 = vmul.f32 %v4361_v15, %v6116_v1  ;;  %v6164_v4 = vadd.f32 %v4362_v17, %v1616_v31 }
 0x26b   : > { %v4438_v44 = vmul.f32 -1.442695, %v6146_v9  ;;  %v4363_v48 = vmul.f32 -1.442695, %v6148_v16  ;;  %v4365_v52 = vmul.f32 -1.442695, %v6150_v42  ;;  %v6168_v41 = vadd.f32 %v4362_v17, %v1617_v33 }
 0x26c   : > { %v4364_v27 = vmul.f32 -1.442695, %v6154_v3  ;;  %v4366_v35 = vmul.f32 -1.442695, %v6152_v32  ;;  %v6176_v39 = vadd.f32 %v4362_v17, %v1618_v45  ;;  %v2886_v38 = vmul.f32 %v4398_v19, %v6118_v8 }
 0x26d   : > { %5432 = vpow2.f32 %v4438_v44  ;;  %v4367_v47 = vmul.f32 -1.442695, %v6156_v43  ;;  %v2887_v51 = vmul.f32 %v4398_v19, %v6125_v5  ;;  %v2888_v18 = vmul.f32 %v4398_v19, %v6112_v0 }
 0x26e   : > { %5434 = vpow2.f32 %v4363_v48  ;;  %v4368_v21 = vmul.f32 -1.442695, %v6164_v4  ;;  %v6184_v46 = vadd.f32 %v6173_v57, %v2886_v38  ;;  %v2889_v22 = vmul.f32 %v4398_v19, %v6114_v12 }
 0x26f   : > { %5436 = vpow2.f32 %v4364_v27  ;;  %v4369_v13 = vmul.f32 -1.442695, %v6168_v41  ;;  %v6189_v24 = vadd.f32 %v6173_v57, %v2887_v51  ;;  %v6192_v60 = vadd.f32 %v6173_v57, %v2888_v18 }
 0x270   : > { %5438 = vpow2.f32 %v4365_v52  ;;  %v4370_v63 = vmul.f32 -1.442695, %v6176_v39  ;;  %v6196_v56 = vadd.f32 %v6173_v57, %v2889_v22  ;;  %v4400_v34 = vmul.f32 -1.442695, %v6184_v46 }
 0x271   : > { %5440 = vpow2.f32 %v4366_v35  ;;  %v4401_v55 = vmul.f32 -1.442695, %v6189_v24  ;;  %v4402_v2 = vmul.f32 -1.442695, %v6192_v60  ;;  %v2890_v50 = vmul.f32 %v4398_v19, %v6130_v58 }
 0x272   : > { %5442 = vpow2.f32 %v4367_v47  ;;  %v4403_v6 = vmul.f32 -1.442695, %v6196_v56  ;;  %v2891_v29 = vmul.f32 %v4398_v19, %v6132_v53  ;;  %v2892_v26 = vmul.f32 %v4398_v19, %v6134_v25 }
 0x273   : > { %5444 = vpow2.f32 %v4368_v21  ;;  %v6205_v54 = vadd.f32 %v6173_v57, %v2890_v50  ;;  %v2893_v30 = vmul.f32 %v4398_v19, %v6116_v1  ;;  %v3606_v27 = vmul.f32 %v6107_v49, %v6130_v58 }
 0x274   : > { %5446 = vpow2.f32 %v4369_v13  ;;  %v6210_v45 = vadd.f32 %v6173_v57, %v2891_v29  ;;  %v3607_v52 = vmul.f32 %v6107_v49, %v6132_v53  ;;  %v6218_v47 = vadd.f32 %v6173_v57, %v2892_v26  ;;  %v6244_v26 = vld [vmem:[%s8003_s6 + $0x3] ss:$0 sm:$0xff] }
 0x275   : > { %5448 = vpow2.f32 %v4370_v63  ;;  %v4404_v19 = vmul.f32 -1.442695, %v6205_v54  ;;  %v6221_v21 = vadd.f32 %v6173_v57, %v2893_v30  ;;  %v3602_v22 = vmul.f32 %v6107_v49, %v6118_v8 }
 0x276   : > { %5450 = vpow2.f32 %v4400_v34  ;;  %v4405_v34 = vmul.f32 -1.442695, %v6210_v45  ;;  %v6229_v50 = vadd.f32 %v6123_v11, %v3606_v27  ;;  %v6232_v57 = vadd.f32 %v6123_v11, %v3607_v52 }
 0x277   : > { %v5433_v7 = vpop.eup %5432  ;;  %5452 = vpow2.f32 %v4401_v55  ;;  %v3603_v55 = vmul.f32 %v6107_v49, %v6125_v5  ;;  %v3608_v29 = vmul.f32 %v6107_v49, %v6134_v25  ;;  %v3605_v27 = vmul.f32 %v6107_v49, %v6114_v12 }
 0x278   : > { %v5435_v28 = vpop.eup %5434  ;;  %v3654_v40 = vadd.f32 1.0, %v5433_v7  ;;  %5454 = vpow2.f32 %v4402_v2 }
 0x279   : > { %v5437_v59 = vpop.eup %5436  ;;  %v1656_v15 = vadd.f32 1.0, %v5435_v28  ;;  %5456 = vpow2.f32 %v4403_v6  ;;  %v6249_v30 = vadd.f32 %v6123_v11, %v3603_v55 }
 0x27a   : > { %v5439_v17 = vpop.eup %5438  ;;  %5458 = vrcp.f32 %v3654_v40  ;;  %v1657_v20 = vadd.f32 1.0, %v5437_v59  ;;  %v4406_v40 = vmul.f32 -1.442695, %v6218_v47 }
 0x27b   : > { %v5441_v61 = vpop.eup %5440  ;;  %5460 = vrcp.f32 %v1656_v15  ;;  %v1658_v37 = vadd.f32 1.0, %v5439_v17  ;;  %v4407_v17 = vmul.f32 -1.442695, %v6221_v21 }
 0x27c   : > { %v5443_v31 = vpop.eup %5442  ;;  %5462 = vrcp.f32 %v1657_v20  ;;  %v1659_v33 = vadd.f32 1.0, %v5441_v61  ;;  %v6239_v20 = vadd.f32 %v6123_v11, %v3602_v22 }
 0x27d   : > { %v5445_v44 = vpop.eup %5444  ;;  %5464 = vrcp.f32 %v1658_v37  ;;  %v1660_v48 = vadd.f32 1.0, %v5443_v31  ;;  %v3604_v31 = vmul.f32 %v6107_v49, %v6112_v0  ;;  %v6270_v49 = vld [vmem:[%s8004_s7 + $0x3] ss:$0 sm:$0xff] }
 0x27e   : > { %v5447_v35 = vpop.eup %5446  ;;  %5466 = vrcp.f32 %v1659_v33  ;;  %v1661_v38 = vadd.f32 1.0, %v5445_v44  ;;  %v4435_v44 = vmul.f32 -1.442695, %v6229_v50 }
 0x27f   : > { %v5449_v51 = vpop.eup %5448  ;;  %5468 = vrcp.f32 %v1660_v48  ;;  %v1662_v18 = vadd.f32 1.0, %v5447_v35  ;;  %v4436_v48 = vmul.f32 -1.442695, %v6232_v57 }
 0x280   : > { %v5451_v13 = vpop.eup %5450  ;;  %5470 = vrcp.f32 %v1661_v38  ;;  %v1663_v63 = vadd.f32 1.0, %v5449_v51  ;;  %v6259_v38 = vadd.f32 %v6123_v11, %v3608_v29  ;;  %v3926_v51 = vmul.f32 %v6244_v26, %v6118_v8 }
 0x281   : > { %v5453_v2 = vpop.eup %5452  ;;  %5472 = vrcp.f32 %v1662_v18  ;;  %v2931_v6 = vadd.f32 1.0, %v5451_v13  ;;  %v4431_v13 = vmul.f32 -1.442695, %v6239_v20  ;;  %v4432_v8 = vmul.f32 -1.442695, %v6249_v30 }
 0x282   : > { %v5455_v7 = vpop.eup %5454  ;;  %5474 = vrcp.f32 %v1663_v63  ;;  %v2932_v28 = vadd.f32 1.0, %v5453_v2  ;;  %v3927_v63 = vmul.f32 %v6244_v26, %v6125_v5  ;;  %v6275_v2 = vadd.f32 %v6123_v11, %v3604_v31 }
 0x283   : > { %v5457_v59 = vpop.eup %5456  ;;  %5476 = vrcp.f32 %v2931_v6  ;;  %v2933_v15 = vadd.f32 1.0, %v5455_v7  ;;  %v6279_v5 = vadd.f32 %v6123_v11, %v3605_v27 }
 0x284   : > { %v6246_v61 = vpop.eup %5458  ;;  %5478 = vrcp.f32 %v2932_v28  ;;  %v2934_v37 = vadd.f32 1.0, %v5457_v59 }
 0x285   : > { %v5461_v33 = vpop.eup %5460  ;;  %5480 = vrcp.f32 %v2933_v15 }
 0x286   : > { %v5463_v52 = vpop.eup %5462  ;;  %v1680_v35 = vmul.f32 %v5461_v33, %v6148_v16  ;;  %5482 = vrcp.f32 %v2934_v37  ;;  %v4434_v33 = vmul.f32 -1.442695, %v6279_v5 }
 0x287   : > { %v5465_v18 = vpop.eup %5464  ;;  %v1681_v22 = vmul.f32 %v5463_v52, %v6154_v3  ;;  %5484 = vpow2.f32 %v4404_v19 }
 0x288   : > { %v5467_v16 = vpop.eup %5466  ;;  %v1682_v55 = vmul.f32 %v5465_v18, %v6150_v42  ;;  %5486 = vpow2.f32 %v4405_v34  ;;  %v4437_v42 = vmul.f32 -1.442695, %v6259_v38  ;;  %v6284_v34 = vadd.f32 %v6270_v49, %v3926_v51 }
 0x289   : > { %v5469_v3 = vpop.eup %5468  ;;  %v1688_v19 = vpack.c.bf16 %v1681_v22, %v1680_v35  ;;  %v1683_v6 = vmul.f32 %v5467_v16, %v6152_v32  ;;  %5488 = vpow2.f32 %v4406_v40  ;;  %v6289_v32 = vadd.f32 %v6270_v49, %v3927_v63 }
 0x28a   : > { %v5471_v7 = vpop.eup %5470  ;;  %v1684_v28 = vmul.f32 %v5469_v3, %v6156_v43  ;;  %5490 = vpow2.f32 %v4407_v17  ;;  %v4433_v43 = vmul.f32 -1.442695, %v6275_v2  ;;  %v4452_v27 = vmul.f32 -1.442695, %v6284_v34 }
 0x28b   : > { %v5473_v29 = vpop.eup %5472  ;;  %4607 = vmatprep.mubr.msk.bf16.mxu1 %vm561_vm0, %v1688_v19  ;;  %v1689_v59 = vpack.c.bf16 %v1683_v6, %v1682_v55  ;;  %v1685_v15 = vmul.f32 %v5471_v7, %v6164_v4  ;;  %5492 = vpow2.f32 %v4435_v44 }
 0x28c   : > { %v5475_v11 = vpop.eup %5474  ;;  %v1686_v40 = vmul.f32 %v5473_v29, %v6168_v41  ;;  %5494 = vpow2.f32 %v4436_v48 }
 0x28d   : > { %v5477_v17 = vpop.eup %5476  ;;  %4608 = vmatmul.mubr.msk.bf16.vlgmr.msra.gmra.mrb[8].mxu1 %vm561_vm0, %v1689_v59  ;;  %v1690_v37 = vpack.c.bf16 %v1685_v15, %v1684_v28  ;;  %v1687_v31 = vmul.f32 %v5475_v11, %v6176_v39  ;;  %5496 = vpow2.f32 %v4431_v13  ;;  %v4453_v39 = vmul.f32 -1.442695, %v6289_v32 }
 0x28e   : > { %v5479_v4 = vpop.eup %5478  ;;  %v6297_v44 = vmul.f32 %v5477_v17, %v6184_v46  ;;  %5498 = vpow2.f32 %v4432_v8  ;;  %v3929_v28 = vmul.f32 %v6244_v26, %v6114_v12  ;;  %v3930_v59 = vmul.f32 %v6244_v26, %v6130_v58 }
 0x28f   : > { %v5481_v41 = vpop.eup %5480  ;;  %4611 = vmatprep.mubr.msk.bf16.mxu1 %vm561_vm0, %v1690_v37  ;;  %v1691_v48 = vpack.c.bf16 %v1687_v31, %v1686_v40  ;;  %v6302_v52 = vmul.f32 %v5479_v4, %v6189_v24  ;;  %5500 = vpow2.f32 %v4437_v42  ;;  %v3931_v40 = vmul.f32 %v6244_v26, %v6132_v53 }
 0x290   : > { %v5483_v35 = vpop.eup %5482  ;;  %v6306_v51 = vmul.f32 %v5481_v41, %v6192_v60  ;;  %5502 = vpow2.f32 %v4433_v43  ;;  %v3932_v12 = vmul.f32 %v6244_v26, %v6134_v25  ;;  %v6330_v58 = vadd.f32 %v6270_v49, %v3929_v28 }
 0x291   : > { %v5485_v46 = vpop.eup %5484  ;;  %v6311_v22 = vmul.f32 %v5483_v35, %v6196_v56  ;;  %5504 = vpow2.f32 %v4434_v33  ;;  %v3928_v56 = vmul.f32 %v6244_v26, %v6112_v0  ;;  %v3933_v33 = vmul.f32 %v6244_v26, %v6116_v1 }
 0x292   : > { %v5487_v13 = vpop.eup %5486  ;;  %v2935_v63 = vadd.f32 1.0, %v5485_v46  ;;  %5506 = vpow2.f32 %v4452_v27  ;;  %v6335_v27 = vadd.f32 %v6270_v49, %v3930_v59  ;;  %v6338_v25 = vadd.f32 %v6270_v49, %v3931_v40 }
 0x293   : > { %v5489_v24 = vpop.eup %5488  ;;  %v2936_v55 = vadd.f32 1.0, %v5487_v13  ;;  %5508 = vpow2.f32 %v4453_v39  ;;  %v6325_v17 = vadd.f32 %v6270_v49, %v3928_v56  ;;  %v6342_v13 = vadd.f32 %v6270_v49, %v3932_v12 }
 0x294   : > { %v5491_v60 = vpop.eup %5490  ;;  %5510 = vrcp.f32 %v2935_v63  ;;  %v2937_v8 = vadd.f32 1.0, %v5489_v24  ;;  %v4455_v63 = vmul.f32 -1.442695, %v6330_v58  ;;  %v6346_v24 = vadd.f32 %v6270_v49, %v3933_v33 }
 0x295   : > { %v5493_v3 = vpop.eup %5492  ;;  %4612 = vmatmul.mubr.msk.bf16.gmra.mrb[12].mxu1 %vm561_vm0, %v1691_v48  ;;  %5512 = vrcp.f32 %v2936_v55  ;;  %v2938_v19 = vadd.f32 1.0, %v5491_v60  ;;  %v4454_v46 = vmul.f32 -1.442695, %v6325_v17  ;;  %v4457_v56 = vmul.f32 -1.442695, %v6338_v25 }
 0x296   : > { %v5495_v6 = vpop.eup %5494  ;;  %5514 = vrcp.f32 %v2937_v8  ;;  %v3651_v7 = vadd.f32 1.0, %v5493_v3  ;;  %v4456_v8 = vmul.f32 -1.442695, %v6335_v27  ;;  %v4458_v49 = vmul.f32 -1.442695, %v6342_v13 }
 0x297   : > { %v5497_v42 = vpop.eup %5496  ;;  %5516 = vrcp.f32 %v2938_v19  ;;  %v3652_v29 = vadd.f32 1.0, %v5495_v6 }
 0x298   : > { %v5499_v15 = vpop.eup %5498  ;;  %5518 = vrcp.f32 %v3651_v7  ;;  %v3647_v11 = vadd.f32 1.0, %v5497_v42 }
 0x299   : > { %v5501_v43 = vpop.eup %5500  ;;  %5520 = vrcp.f32 %v3652_v29  ;;  %v3648_v0 = vadd.f32 1.0, %v5499_v15 }
 0x29a   : > { %v5503_v37 = vpop.eup %5502  ;;  %5522 = vrcp.f32 %v3647_v11  ;;  %v3653_v31 = vadd.f32 1.0, %v5501_v43  ;;  %v6379_v43 = vmul.f32 %v6246_v61, %v6146_v9 }
 0x29b   : > { %v5505_v4 = vpop.eup %5504  ;;  %5524 = vrcp.f32 %v3648_v0  ;;  %v3649_v53 = vadd.f32 1.0, %v5503_v37 }
 0x29c   : > { %v5507_v41 = vpop.eup %5506  ;;  %5526 = vrcp.f32 %v3653_v31  ;;  %v3650_v48 = vadd.f32 1.0, %v5505_v4  ;;  %8052 = vst [vmem:[#allocation6_spill] sm:$0xff] %v6379_v43 }
 0x29d   : > { %v5509_v39 = vpop.eup %5508  ;;  %5528 = vrcp.f32 %v3649_v53  ;;  %v3971_v35 = vadd.f32 1.0, %v5507_v41 }
 0x29e   : > { %v5511_v1 = vpop.eup %5510  ;;  %5530 = vrcp.f32 %v3650_v48  ;;  %v3972_v26 = vadd.f32 1.0, %v5509_v39 }
 0x29f   : > { %v5513_v55 = vpop.eup %5512  ;;  %v6349_v60 = vmul.f32 %v5511_v1, %v6205_v54  ;;  %5532 = vrcp.f32 %v3971_v35 }
 0x2a0   : > { %v5515_v3 = vpop.eup %5514  ;;  %v6353_v19 = vmul.f32 %v5513_v55, %v6210_v45  ;;  %5534 = vrcp.f32 %v3972_v26  ;;  %v4459_v45 = vmul.f32 -1.442695, %v6346_v24 }
 0x2a1   : > { %v5517_v6 = vpop.eup %5516  ;;  %v6357_v7 = vmul.f32 %v5515_v3, %v6218_v47  ;;  %5536 = vpow2.f32 %v4454_v46 }
 0x2a2   : > { %v5519_v28 = vpop.eup %5518  ;;  %v6363_v42 = vmul.f32 %v5517_v6, %v6221_v21  ;;  %5538 = vpow2.f32 %v4455_v63 }
 0x2a3   : > { %v5521_v29 = vpop.eup %5520  ;;  %v6367_v59 = vmul.f32 %v5519_v28, %v6229_v50  ;;  %5540 = vpow2.f32 %v4456_v8 }
 0x2a4   : > { %v5523_v47 = vpop.eup %5522  ;;  %v6372_v11 = vmul.f32 %v5521_v29, %v6232_v57  ;;  %5542 = vpow2.f32 %v4457_v56 }
 0x2a5   : > { %8049 = vst [vmem:[#allocation3_spill] sm:$0xff] %v6367_v59  ;;  %v5525_v40 = vpop.eup %5524  ;;  %v6375_v21 = vmul.f32 %v5523_v47, %v6239_v20  ;;  %5544 = vpow2.f32 %v4458_v49 }
 0x2a6   : > { %8050 = vst [vmem:[#allocation4_spill] sm:$0xff] %v6372_v11  ;;  %v5527_v50 = vpop.eup %5526  ;;  %v6384_v12 = vmul.f32 %v5525_v40, %v6249_v30  ;;  %5546 = vpow2.f32 %v4459_v45 }
 0x2a7   : > { %8051 = vst [vmem:[#allocation5_spill] sm:$0xff] %v6375_v21  ;;  %v5529_v57 = vpop.eup %5528  ;;  %v6387_v37 = vmul.f32 %v5527_v50, %v6259_v38 }
 0x2a8   : > { %8053 = vst [vmem:[#allocation7_spill] sm:$0xff] %v6384_v12  ;;  %v5531_v31 = vpop.eup %5530  ;;  %v6392_v9 = vmul.f32 %v5529_v57, %v6275_v2 }
 0x2a9   : > { %8054 = vst [vmem:[#allocation8_spill] sm:$0xff] %v6387_v37  ;;  %v5533_v61 = vpop.eup %5532  ;;  %v6397_v4 = vmul.f32 %v5531_v31, %v6279_v5 }
 0x2aa   : > { %8055 = vst [vmem:[#allocation9_spill] sm:$0xff] %v6392_v9  ;;  %v5535_v30 = vpop.eup %5534  ;;  %v6400_v53 = vmul.f32 %v5533_v61, %v6284_v34 }
 0x2ab   : > { %8056 = vst [vmem:[#allocation10_spill] sm:$0xff] %v6397_v4  ;;  %v5537_v38 = vpop.eup %5536  ;;  %v6405_v48 = vmul.f32 %v5535_v30, %v6289_v32 }
 0x2ac   : > { %8057 = vst [vmem:[#allocation11_spill] sm:$0xff] %v6400_v53  ;;  %v5539_v2 = vpop.eup %5538  ;;  %v3973_v39 = vadd.f32 1.0, %v5537_v38 }
 0x2ad   : > { %8058 = vst [vmem:[#allocation12_spill] sm:$0xff] %v6405_v48  ;;  %v5541_v35 = vpop.eup %5540  ;;  %v3974_v1 = vadd.f32 1.0, %v5539_v2 }
 0x2ae   : > { %v5543_v5 = vpop.eup %5542  ;;  %5548 = vrcp.f32 %v3973_v39  ;;  %v3975_v26 = vadd.f32 1.0, %v5541_v35 }
 0x2af   : > { %v5545_v63 = vpop.eup %5544  ;;  %5550 = vrcp.f32 %v3974_v1  ;;  %v3976_v34 = vadd.f32 1.0, %v5543_v5 }
 0x2b0   : > { %v5547_v55 = vpop.eup %5546  ;;  %5552 = vrcp.f32 %v3975_v26  ;;  %v3977_v8 = vadd.f32 1.0, %v5545_v63 }
 0x2b1   : > { %5554 = vrcp.f32 %v3976_v34  ;;  %v3978_v3 = vadd.f32 1.0, %v5547_v55 }
 0x2b2   : > { %5556 = vrcp.f32 %v3977_v8 }
 0x2b3   : > { %5558 = vrcp.f32 %v3978_v3 }
 0x2b8   : > { %v5549_v32 = vpop.eup %5548 }
 0x2b9   : > { %v5551_v56 = vpop.eup %5550  ;;  %v6410_v6 = vmul.f32 %v5549_v32, %v6325_v17 }
 0x2ba   : > { %v5553_v49 = vpop.eup %5552  ;;  %v6413_v28 = vmul.f32 %v5551_v56, %v6330_v58 }
 0x2bb   : > { %8059 = vst [vmem:[#allocation13_spill] sm:$0xff] %v6410_v6  ;;  %v5555_v45 = vpop.eup %5554  ;;  %v6416_v29 = vmul.f32 %v5553_v49, %v6335_v27 }
 0x2bc   : > { %8060 = vst [vmem:[#allocation14_spill] sm:$0xff] %v6413_v28  ;;  %v5557_v47 = vpop.eup %5556  ;;  %v6421_v50 = vmul.f32 %v5555_v45, %v6338_v25  ;;  %v4371_v25 = vld [vmem:[%s8006_s9] ss:$0 sm:$0xff] }
 0x2bd   : > { %8061 = vst [vmem:[#allocation15_spill] sm:$0xff] %v6416_v29  ;;  %v5559_v57 = vpop.eup %5558  ;;  %v6424_v31 = vmul.f32 %v5557_v47, %v6342_v13 }
 0x2be   : > { %8062 = vst [vmem:[#allocation16_spill] sm:$0xff] %v6421_v50  ;;  %v6429_v58 = vmul.f32 %v5559_v57, %v6346_v24 }
 0x2bf   : > { %8063 = vst [vmem:[#allocation17_spill] sm:$0xff] %v6424_v31 }
 0x2c0   : > { %8064 = vst [vmem:[#allocation18_spill] sm:$0xff] %v6429_v58 }
 0x360   : > { %v4609_v13 = vpop.f32.mrb[8].mxu1 }
 0x361   : > { %v1759_v61 = vpop.f32.mrb[9].mxu1  ;;  %v1768_v30 = vadd.f32 %v4609_v13, %v4371_v25 }
 0x362   : > { %v1760_v24 = vadd.f32 %v4371_v25, %v1759_v61  ;;  %v4610_v38 = vpop.f32.mrb[10].mxu1 }
 0x363   : > { %v6440_v2 = vadd.f32 %v4610_v38, %v4371_v25  ;;  %v1762_v39 = vpop.f32.mrb[11].mxu1  ;;  %v6449_v63 = vmul.f32 %v1768_v30, %v5711_v62  ;;  %v1800_v3 = vmul.f32 %v1768_v30, %v5781_v36  ;;  %v1824_v32 = vrot.slane %v1768_v30, 1 }
 0x364   : > { %v6443_v35 = vmul.f32 %v1760_v24, %v5711_v62  ;;  %v6445_v1 = vrot.slane %v1760_v24, 1  ;;  %v1763_v5 = vadd.f32 %v4371_v25, %v1762_v39  ;;  %v1798_v34 = vmul.f32 %v1760_v24, %v5781_v36 }
 0x365   : > { %v8014_v26 = vrot.slane %v6440_v2, 1  ;;  %v6463_v45 = vmul.f32 %v6440_v2, %v5711_v62  ;;  %v1801_v47 = vmul.f32 %v6440_v2, %v5781_v36  ;;  %v1873_v0 = vrot.slane %v1800_v3, 2 }
 0x366   : > { %v6453_v55 = vmul.f32 %v1763_v5, %v5711_v62  ;;  %v6455_v8 = vrot.slane %v1763_v5, 1  ;;  %v1799_v56 = vmul.f32 %v1763_v5, %v5781_v36  ;;  %v4865_v49 = vpack.i.bf16 %v6443_v35, %v5734_v14 }
 0x367   : > { %v1821_v61 = vsel %vm721_vm2, %v5725_v10, %v6445_v1  ;;  %v1827_v5 = vsel %vm721_vm2, %v1824_v32, %v8014_v26  ;;  %v6487_v27 = vrot.slane %v1798_v34, 2 }
 0x368   : > { %v4613_v57 = vpop.f32.mrb[12].mxu1  ;;  %v4880_v13 = vpack.i.bf16 %v6449_v63, %v6453_v55  ;;  %4866 = vrot.lane.b32.xlu1 %v4865_v49, %s5574_s19  ;;  %v6478_v38 = vsel %vm721_vm2, %v6445_v1, %v6455_v8  ;;  %v6482_v39 = vsel %vm721_vm2, %v6455_v8, %v1824_v32  ;;  %v6495_v46 = vrot.slane %v1799_v56, 2 }
 0x369   : > { %v6472_v30 = vadd.f32 %v4613_v57, %v4371_v25  ;;  %v1775_v24 = vpop.f32.mrb[13].mxu1  ;;  %v4890_v49 = vpack.i.bf16 %v6482_v39, %v6478_v38  ;;  %v4905_v40 = vpack.i.bf16 %v1827_v5, %v6482_v39  ;;  %v4870_v20 = vpack.i.bf16 %v1821_v61, %v5725_v10 }
 0x36a   : > { %v6489_v57 = vadd.f32 %v4371_v25, %v1775_v24  ;;  %v4614_v17 = vpop.f32.mrb[14].mxu1  ;;  %4881 = vrot.lane.b32.xlu0 %v4880_v13, %s5574_s19  ;;  %v1875_v32 = vrot.slane %v1801_v47, 2  ;;  %v4885_v13 = vpack.i.bf16 %v6453_v55, %v6443_v35  ;;  %v4910_v56 = vpack.i.bf16 %v6482_v39, %v6455_v8 }
 0x36b   : > { %v6497_v41 = vadd.f32 %v4614_v17, %v4371_v25  ;;  %v1778_v33 = vpop.f32.mrb[15].mxu1  ;;  %v1804_v15 = vmul.f32 %v6472_v30, %v5781_v36  ;;  %v4875_v17 = vpack.i.bf16 %v6463_v45, %v6449_v63  ;;  %v4900_v61 = vpack.i.bf16 %v6478_v38, %v6445_v1 }
 0x36c   : > { %v1802_v34 = vmul.f32 %v6489_v57, %v5781_v36  ;;  %v6502_v24 = vadd.f32 %v4371_v25, %v1778_v33  ;;  %4871 = vrot.lane.b32.xlu1 %v4870_v20, %s5575_s20  ;;  %v1828_v47 = vrot.slane %v6489_v57, 1  ;;  %v1870_v20 = vsel %vm817_vm4, %v5866_v23, %v6487_v27 }
 0x36d   : > { %v1805_v33 = vmul.f32 %v6497_v41, %v5781_v36  ;;  %v1872_v8 = vsel %vm817_vm4, %v6487_v27, %v6495_v46  ;;  %v1874_v39 = vsel %vm817_vm4, %v6495_v46, %v1873_v0  ;;  %v1881_v26 = vrot.slane %v1804_v15, 2 }
 0x36e   : > { %v1803_v25 = vmul.f32 %v6502_v24, %v5781_v36  ;;  %4886 = vrot.lane.b32.xlu0 %v4885_v13, %s5572_s29  ;;  %v1830_v3 = vrot.slane %v6502_v24, 1  ;;  %v1877_v54 = vrot.slane %v1802_v34, 2  ;;  %v4915_v16 = vpack.i.bf16 %v1874_v39, %v1872_v8 }
 0x36f   : > { %v1876_v13 = vsel %vm817_vm4, %v1873_v0, %v1875_v32  ;;  %v4920_v18 = vpack.i.bf16 %v1872_v8, %v6487_v27  ;;  %v4895_v31 = vpack.i.bf16 %v1870_v20, %v5866_v23  ;;  %v4930_v1 = vpack.i.bf16 %v1874_v39, %v6495_v46 }
 0x370   : > { %4876 = vrot.lane.b32.xlu1 %v4875_v17, %s5572_s29  ;;  %v4925_v58 = vpack.i.bf16 %v1876_v13, %v1874_v39  ;;  %v1879_v38 = vrot.slane %v1803_v25, 2  ;;  %v1832_v29 = vrot.slane %v6472_v30, 1  ;;  %v8065_v34 = vrot.slane %v6440_v2, 1 }
 0x371   : > { %v1948_v0 = vrot.slane %v6497_v41, 1  ;;  %v1883_v27 = vrot.slane %v1805_v33, 2  ;;  %v1831_v17 = vsel %vm721_vm2, %v1828_v47, %v1830_v3 }
 0x372   : > { %4891 = vrot.lane.b32.xlu0 %v4890_v49, %s5575_s20  ;;  %v1829_v50 = vsel %vm721_vm2, %v8065_v34, %v1828_v47  ;;  %v1833_v25 = vsel %vm721_vm2, %v1830_v3, %v1832_v29  ;;  %v1878_v49 = vsel %vm817_vm4, %v1875_v32, %v1877_v54  ;;  %v1880_v47 = vsel %vm817_vm4, %v1877_v54, %v1879_v38 }
 0x373   : > { %v4940_v15 = vpack.i.bf16 %v1829_v50, %v1827_v5  ;;  %v1949_v20 = vsel %vm721_vm2, %v1832_v29, %v1948_v0  ;;  %v2040_v46 = vsel %vm721_vm2, %v1948_v0, %v5725_v10  ;;  %v4980_v8 = vpack.i.bf16 %v1833_v25, %v1831_v17 }
 0x374   : > { %4906 = vrot.lane.b32.xlu1 %v4905_v40, %s5571_s18  ;;  %v4965_v2 = vpack.i.bf16 %v2040_v46, %v1949_v20  ;;  %v4970_v39 = vpack.i.bf16 %v1878_v49, %v1876_v13  ;;  %v4975_v5 = vpack.i.bf16 %v1831_v17, %v1829_v50  ;;  %v4995_v33 = vpack.i.bf16 %v1949_v20, %v1833_v25 }
 0x375   : > { %v5000_v34 = vpack.i.bf16 %v1880_v47, %v1878_v49  ;;  %v1884_v6 = vsel %vm817_vm4, %v1881_v26, %v1883_v27  ;;  %v1882_v28 = vsel %vm817_vm4, %v1879_v38, %v1881_v26  ;;  %v1983_v32 = vsel %vm817_vm4, %v1883_v27, %v5866_v23  ;;  %v5376_v26 = vld [vmem:[%s8007_s10 + $0x8] sm:$0xff]  }
 0x376   : > { %4896 = vrot.lane.b32.xlu0 %v4895_v31, %s5576_s24  ;;  %v5005_v3 = vpack.i.bf16 %v1882_v28, %v1880_v47  ;;  %v5020_v40 = vpack.i.bf16 %v1983_v32, %v1884_v6  ;;  %v5015_v46 = vpack.i.bf16 %v1884_v6, %v1882_v28  ;;  %v6560_v54 = vmul.f32 %v6489_v57, %v5711_v62  ;;  %v5378_v57 = vld [vmem:[%s8007_s10 + $0x18] sm:$0xff]  }
 0x377   : > { %v6572_v50 = vmul.f32 %v6472_v30, %v5711_v62  ;;  %v5377_v30 = vld [vmem:[%s8007_s10 + $0x10] sm:$0xff]  }
 0x378   : > { %4911 = vrot.lane.b32.xlu1 %v4910_v56, %s8021_s30  ;;  %v4935_v28 = vpack.i.bf16 %v6560_v54, %v6463_v45 }
 0x37a   : > { %4901 = vrot.lane.b32.xlu0 %v4900_v61, %s5571_s18  ;;  %v6629_v61 = vpop.permute.xlu0 %2029 }
 0x37b   : > { %8066 = vst [vmem:[#allocation19_spill] sm:$0xff] %v6629_v61 }
 0x37c   : > { %4916 = vrot.lane.b32.xlu1 %v4915_v16, %s5576_s24  ;;  %v1807_v16 = vmul.f32 %v6497_v41, %v5711_v62 }
 0x37e   : > { %4926 = vrot.lane.b32.xlu0 %v4925_v58, %s5577_s25  ;;  %v4950_v31 = vpack.i.bf16 %v1807_v16, %v6572_v50  ;;  %v5375_v58 = vld [vmem:[%s8007_s10] sm:$0xff]   ;;  %v6631_v13 = vpop.permute.xlu0 %2057 }
 0x37f   : > { %4615 = vmatprep.subr.bf16.mxu1 %v5375_v58  ;;  %8067 = vst [vmem:[#allocation20_spill] sm:$0xff] %v6631_v13 }
 0x380   : > { %4921 = vrot.lane.b32.xlu1 %v4920_v18, %s5577_s25  ;;  %v6578_v18 = vmul.f32 %v6502_v24, %v5711_v62  ;;  %4616 = vmatpush3.bf16.msra.mxu1 %v5375_v58  ;;  %v5379_v24 = vld [vmem:[%s8007_s10 + $0x20] ss:$0 sps:$4 sm:$0xff]  }
 0x381   : > { %4617 = vmatprep.subr.bf16.mxu1 %v5376_v26  ;;  %v2283_v56 = vsel %vm2281_vm8, %v5379_v24, 0 }
 0x382   : > { %4931 = vrot.lane.b32.xlu0 %v4930_v1, %s5569_s23  ;;  %v4960_v41 = vpack.i.bf16 %v6572_v50, %v6578_v18 }
 0x384   : > { %4936 = vrot.lane.b32.xlu1 %v4935_v28, %s5574_s19  ;;  %4618 = vmatpush3.bf16.msra.mxu1 %v5376_v26 }
 0x385   : > { %4619 = vmatprep.subr.bf16.mxu1 %v5377_v30 }
 0x386   : > { %1850 = vrot.lane.b32.xlu0 %v1832_v29, %s5575_s20  ;;  %v4955_v29 = vpack.i.bf16 %v6578_v18, %v6560_v54 }
 0x388   : > { %4941 = vrot.lane.b32.xlu1 %v4940_v15, %s5575_s20  ;;  %4620 = vmatpush3.bf16.msra.mxu1 %v5377_v30 }
 0x389   : > { %4621 = vmatprep.subr.bf16.mxu1 %v5378_v57 }
 0x38a   : > { %4946 = vrot.lane.b32.xlu0 %v4940_v15, %s8021_s30 }
 0x38c   : > { %4951 = vrot.lane.b32.xlu1 %v4950_v31, %s5572_s29  ;;  %4622 = vmatpush3.bf16.msra.mxu1 %v5378_v57 }
 0x38d   : > { %4709 = vmatprep.subr.msk.bf16.mxu1 %vm2281_vm8, %v5379_v24 }
 0x38e   : > { %1936 = vrot.lane.b32.xlu0 %v1807_v16, %s5574_s19 }
 0x390   : > { %4961 = vrot.lane.b32.xlu1 %v4960_v41, %s5574_s19  ;;  %4624 = vmatpush3.bf16.msra.mxu1 %v2283_v56 }
 0x392   : > { %1966 = vrot.lane.b32.xlu0 %v1948_v0, %s5571_s18 }
 0x394   : > { %4966 = vrot.lane.b32.xlu1 %v4965_v2, %s8021_s30 }
 0x396   : > { %4956 = vrot.lane.b32.xlu0 %v4955_v29, %s5572_s29 }
 0x398   : > { %4981 = vrot.lane.b32.xlu1 %v4980_v8, %s8021_s30 }
 0x39a   : > { %4971 = vrot.lane.b32.xlu0 %v4970_v39, %s5576_s24 }
 0x39c   : > { %4986 = vrot.lane.b32.xlu1 %v4970_v39, %s5569_s23 }
 0x39e   : > { %4976 = vrot.lane.b32.xlu0 %v4975_v5, %s5571_s18 }
 0x3a0   : > { %4996 = vrot.lane.b32.xlu1 %v4995_v33, %s5571_s18 }
 0x3a2   : > { %4991 = vrot.lane.b32.xlu0 %v4980_v8, %s5575_s20 }
 0x3a4   : > { %5001 = vrot.lane.b32.xlu1 %v5000_v34, %s5577_s25 }
 0x3a6   : > { %1901 = vrot.lane.b32.xlu0 %v1884_v6, %s5576_s24  ;;  %v6626_v6 = vld [vmem:[%s8005_s8 + $0x10] sm:$0xff]  }
 0x3a7   : > { %4651 = vmatprep.subr.bf16.mxu1 %v6626_v6 }
 0x3a8   : > { %5006 = vrot.lane.b32.xlu1 %v5005_v3, %s5569_s23 }
 0x3aa   : > { %2000 = vrot.lane.b32.xlu0 %v1983_v32, %s5577_s25 }
 0x3ac   : > { %5011 = vrot.lane.b32.xlu1 %v5005_v3, %s5576_s24 }
 0x3ae   : > { %2088 = vrot.lane.b32.xlu0 %v5866_v23, %s5569_s23 }
 0x3b0   : > { %5016 = vrot.lane.b32.xlu1 %v5015_v46, %s5577_s25 }
 0x3b4   : > { %5021 = vrot.lane.b32.xlu1 %v5020_v40, %s5569_s23 }
 0x3da   : > { %v4867_v1 = vpop.permute.xlu1 %4866 }
 0x3db   : > { %v4869_v26 = vunpack.i.h.bf16 %v4867_v1  ;;  %v4868_v30 = vunpack.i.l.bf16 %v4867_v1 }
 0x3dc   : > { %v6633_v38 = vpop.permute.xlu0 %4881 }
 0x3de   : > { %v4872_v0 = vpop.permute.xlu1 %4871 }
 0x3df   : > { %v4874_v33 = vunpack.i.h.bf16 %v4872_v0  ;;  %v4873_v47 = vunpack.i.l.bf16 %v4872_v0 }
 0x3e0   : > { %v4887_v27 = vpop.permute.xlu0 %4886 }
 0x3e1   : > { %v2101_v46 = vsel %vm2099_vm9, %v5734_v14, %v4874_v33  ;;  %v2100_v28 = vsel %vm2099_vm9, %v5734_v14, %v4873_v47 }
 0x3e2   : > { %v6635_v15 = vpop.permute.xlu1 %4876 }
 0x3e4   : > { %v4892_v17 = vpop.permute.xlu0 %4891 }
 0x3e5   : > { %v4893_v1 = vunpack.i.l.bf16 %v4892_v17 }
 0x3e6   : > { %v6637_v20 = vpop.permute.xlu1 %4906 }
 0x3e8   : > { %v4897_v25 = vpop.permute.xlu0 %4896 }
 0x3e9   : > { %v4899_v32 = vunpack.i.h.bf16 %v4897_v25  ;;  %v4898_v3 = vunpack.i.l.bf16 %v4897_v25 }
 0x3ea   : > { %v4912_v49 = vpop.permute.xlu1 %4911 }
 0x3eb   : > { %v2110_v31 = vsel %vm2109_vm10, %v2100_v28, %v4898_v3  ;;  %v2111_v41 = vsel %vm2109_vm10, %v2101_v46, %v4899_v32  ;;  %v4889_v46 = vunpack.i.h.bf16 %v4887_v27  ;;  %v4888_v28 = vunpack.i.l.bf16 %v4887_v27 }
 0x3ec   : > { %v4902_v2 = vpop.permute.xlu0 %4901  ;;  %v6654_v0 = vsel %vm2119_vm11, %v2110_v31, %v4868_v30  ;;  %v2121_v25 = vsel %vm2119_vm11, %v2111_v41, %v4869_v26 }
 0x3ed   : > { %v4904_v29 = vunpack.i.h.bf16 %v4902_v2  ;;  %v4903_v58 = vunpack.i.l.bf16 %v4902_v2  ;;  %v4894_v2 = vunpack.i.h.bf16 %v4892_v17 }
 0x3ee   : > { %v4917_v8 = vpop.permute.xlu1 %4916 }
 0x3ef   : > { %v2129_v47 = vsel %vm561_vm0, %v6654_v0, %v4903_v58  ;;  %v2130_v32 = vsel %vm561_vm0, %v2121_v25, %v4904_v29  ;;  %v4919_v31 = vunpack.i.h.bf16 %v4917_v8  ;;  %v4918_v30 = vunpack.i.l.bf16 %v4917_v8 }
 0x3f0   : > { %v6639_v39 = vpop.permute.xlu0 %4926  ;;  %v2103_v17 = vsel %vm2099_vm9, %v6453_v55, %v4894_v2  ;;  %v2102_v29 = vsel %vm2099_vm9, %v6443_v35, %v4893_v1  ;;  %v4909_v1 = vunpack.i.h.bf16 %v6637_v20 }
 0x3f1   : > { %v2113_v27 = vsel %vm2109_vm10, %v2103_v17, %v4919_v31  ;;  %v2112_v8 = vsel %vm2109_vm10, %v2102_v29, %v4918_v30 }
 0x3f2   : > { %v4922_v5 = vpop.permute.xlu1 %4921 }
 0x3f3   : > { %v4924_v57 = vunpack.i.h.bf16 %v4922_v5  ;;  %v4923_v24 = vunpack.i.l.bf16 %v4922_v5 }
 0x3f4   : > { %v4932_v34 = vpop.permute.xlu0 %4931 }
 0x3f5   : > { %v2139_v5 = vsel %vm2138_vm12, %v2129_v47, %v4923_v24  ;;  %v2140_v3 = vsel %vm2138_vm12, %v2130_v32, %v4924_v57  ;;  %v4914_v57 = vunpack.i.h.bf16 %v4912_v49  ;;  %v4913_v24 = vunpack.i.l.bf16 %v4912_v49 }
 0x3f6   : > { %v6641_v40 = vpop.permute.xlu1 %4936  ;;  %v2149_v26 = vsel %vm2148_vm13, %v2139_v5, %v4888_v28  ;;  %v2150_v58 = vsel %vm2148_vm13, %v2140_v3, %v4889_v46  ;;  %v4934_v25 = vunpack.i.h.bf16 %v4932_v34  ;;  %v4933_v47 = vunpack.i.l.bf16 %v4932_v34 }
 0x3f7   : > { %v4884_v5 = vunpack.i.h.bf16 %v6633_v38  ;;  %v4883_v3 = vunpack.i.l.bf16 %v6633_v38  ;;  %v2159_v46 = vsel %vm2158_vm14, %v2149_v26, %v4913_v24  ;;  %v2160_v55 = vsel %vm2158_vm14, %v2150_v58, %v4914_v57 }
 0x3f8   : > { %v6647_v16 = vpop.permute.xlu0 %1850  ;;  %v4908_v34 = vunpack.i.l.bf16 %v6637_v20  ;;  %v2168_v28 = vsel %vm1026_vm6, %v2159_v46, %v4933_v47  ;;  %v2169_v31 = vsel %vm1026_vm6, %v2160_v55, %v4934_v25  ;;  %v4929_v38 = vunpack.i.h.bf16 %v6639_v39 }
 0x3f9   : > { %v2123_v35 = vsel %vm2119_vm11, %v2113_v27, %v4884_v5  ;;  %v2122_v49 = vsel %vm2119_vm11, %v2112_v8, %v4883_v3  ;;  %v4928_v26 = vunpack.i.l.bf16 %v6639_v39  ;;  %v2177_v57 = vpack.c.bf16 %v2169_v31, %v2168_v28 }
 0x3fa   : > { %v6651_v56 = vpop.permute.xlu1 %4941  ;;  %v2131_v17 = vsel %vm561_vm0, %v2122_v49, %v4908_v34  ;;  %v2132_v29 = vsel %vm561_vm0, %v2123_v35, %v4909_v1  ;;  %v4879_v25 = vunpack.i.h.bf16 %v6635_v15  ;;  %v4878_v47 = vunpack.i.l.bf16 %v6635_v15 }
 0x3fb   : > { %v2141_v20 = vsel %vm2138_vm12, %v2131_v17, %v4928_v26  ;;  %v2142_v27 = vsel %vm2138_vm12, %v2132_v29, %v4929_v38  ;;  %v2198_v3 = vshrl.u32 %v2177_v57, 16  ;;  %v2201_v46 = vshll.u32 %v2177_v57, 16 }
 0x3fc   : > { %v6657_v33 = vpop.permute.xlu0 %4946  ;;  %v4944_v55 = vunpack.i.h.bf16 %v6651_v56  ;;  %v4943_v35 = vunpack.i.l.bf16 %v6651_v56  ;;  %v2151_v49 = vsel %vm2148_vm13, %v2141_v20, %v4878_v47  ;;  %v2152_v1 = vsel %vm2148_vm13, %v2142_v27, %v4879_v25 }
 0x3fd   : > { %v4949_v39 = vunpack.i.h.bf16 %v6657_v33  ;;  %v4948_v5 = vunpack.i.l.bf16 %v6657_v33  ;;  %v2200_v48 = vrot.slane %v2198_v3, 3  ;;  %v2203_v56 = vrot.slane %v2201_v46, 4 }
 0x3fe   : > { %v6664_v53 = vpop.permute.xlu1 %4951  ;;  %v2105_v20 = vsel %vm2099_vm9, %v6463_v45, %v4944_v55  ;;  %v2104_v27 = vsel %vm2099_vm9, %v6449_v63, %v4943_v35  ;;  %v4939_v47 = vunpack.i.h.bf16 %v6641_v40  ;;  %v4938_v45 = vunpack.i.l.bf16 %v6641_v40 }
 0x3ff   : > { %v2161_v17 = vsel %vm2158_vm14, %v2151_v49, %v4948_v5  ;;  %v2162_v33 = vsel %vm2158_vm14, %v2152_v1, %v4949_v39  ;;  %v2108_v63 = vsel %vm2099_vm9, %v6572_v50, %v6647_v16  ;;  %v2204_v35 = vor.u32 %v2203_v56, %v2200_v48 }
 0x400   : > { %v6666_v41 = vpop.permute.xlu0 %1936 }
 0x402   : > { %v6676_v32 = vpop.permute.xlu1 %4961 }
 0x404   : > { %v6682_v2 = vpop.permute.xlu0 %1966 }
 0x406   : > { %v6690_v30 = vpop.permute.xlu1 %4966 }
 0x408   : > { %v6694_v58 = vpop.permute.xlu0 %4956 }
 0x409   : > { %v4959_v55 = vunpack.i.h.bf16 %v6694_v58 }
 0x40a   : > { %v6698_v24 = vpop.permute.xlu1 %4981 }
 0x40c   : > { %v4972_v8 = vpop.permute.xlu0 %4971 }
 0x40d   : > { %v4974_v28 = vunpack.i.h.bf16 %v4972_v8  ;;  %v4973_v31 = vunpack.i.l.bf16 %v4972_v8 }
 0x40e   : > { %v4987_v34 = vpop.permute.xlu1 %4986 }
 0x40f   : > { %v4989_v38 = vunpack.i.h.bf16 %v4987_v34  ;;  %v4988_v26 = vunpack.i.l.bf16 %v4987_v34  ;;  %v2114_v5 = vsel %vm2109_vm10, %v2104_v27, %v4973_v31  ;;  %v2115_v39 = vsel %vm2109_vm10, %v2105_v20, %v4974_v28 }
 0x410   : > { %v4977_v15 = vpop.permute.xlu0 %4976  ;;  %v4984_v31 = vunpack.i.h.bf16 %v6698_v24 }
 0x411   : > { %v2170_v29 = vsel %vm1026_vm6, %v2161_v17, %v4988_v26  ;;  %v2171_v57 = vsel %vm1026_vm6, %v2162_v33, %v4989_v38  ;;  %v4979_v1 = vunpack.i.h.bf16 %v4977_v15  ;;  %v4978_v3 = vunpack.i.l.bf16 %v4977_v15 }
 0x412   : > { %v2178_v8 = vpack.c.bf16 %v2171_v57, %v2170_v29  ;;  %v6718_v25 = vpop.permute.xlu1 %4996  ;;  %v4958_v38 = vunpack.i.l.bf16 %v6694_v58  ;;  %v2124_v15 = vsel %vm2119_vm11, %v2114_v5, %v4938_v45  ;;  %v2125_v33 = vsel %vm2119_vm11, %v2115_v39, %v4939_v47 }
 0x413   : > { %v2133_v20 = vsel %vm561_vm0, %v2124_v15, %v4978_v3  ;;  %v2134_v50 = vsel %vm561_vm0, %v2125_v33, %v4979_v1  ;;  %v4983_v58 = vunpack.i.l.bf16 %v6698_v24  ;;  %v4963_v33 = vunpack.i.l.bf16 %v6676_v32 }
 0x414   : > { %v4992_v49 = vpop.permute.xlu0 %4991  ;;  %v2206_v46 = vshrl.u32 %v2178_v8, 16  ;;  %v2209_v34 = vshll.u32 %v2178_v8, 16 }
 0x416   : > { %v5002_v28 = vpop.permute.xlu1 %5001  ;;  %v2208_v26 = vrot.slane %v2206_v46, 3  ;;  %v2211_v17 = vrot.slane %v2209_v34, 4 }
 0x417   : > { %v5004_v29 = vunpack.i.h.bf16 %v5002_v28  ;;  %v5003_v40 = vunpack.i.l.bf16 %v5002_v28  ;;  %v4993_v28 = vunpack.i.l.bf16 %v4992_v49 }
 0x418   : > { %v1902_v57 = vpop.permute.xlu0 %1901  ;;  %v2212_v16 = vor.u32 %v2211_v17, %v2208_v26  ;;  %v4964_v26 = vunpack.i.h.bf16 %v6676_v32 }
 0x419   : > { %v2118_v48 = vsel %vm2109_vm10, %v2108_v63, %v1902_v57  ;;  %v2143_v56 = vsel %vm2138_vm12, %v2133_v20, %v5003_v40  ;;  %v2144_v27 = vsel %vm2138_vm12, %v2134_v50, %v5004_v29  ;;  %v2106_v50 = vsel %vm2099_vm9, %v6560_v54, %v4993_v28 }
 0x41a   : > { %v2128_v8 = vsel %vm2119_vm11, %v2118_v48, %v6666_v41  ;;  %v2153_v47 = vsel %vm2148_vm13, %v2143_v56, %v4958_v38  ;;  %v2154_v5 = vsel %vm2148_vm13, %v2144_v27, %v4959_v55  ;;  %v5007_v39 = vpop.permute.xlu1 %5006  ;;  %v2213_v3 = vsel %vm1130_vm5, %v2204_v35, %v2212_v16 }
 0x41b   : > { %v2137_v1 = vsel %vm561_vm0, %v2128_v8, %v6682_v2  ;;  %v5009_v46 = vunpack.i.h.bf16 %v5007_v39  ;;  %v5008_v34 = vunpack.i.l.bf16 %v5007_v39  ;;  %v2163_v24 = vsel %vm2158_vm14, %v2153_v47, %v4983_v58  ;;  %4625 = vmatprep.mubr.msk.bf16.mxu1 %vm2268_vm15, %v2213_v3 }
 0x41c   : > { %v2164_v45 = vsel %vm2158_vm14, %v2154_v5, %v4984_v31  ;;  %v2001_v63 = vpop.permute.xlu0 %2000  ;;  %v4994_v41 = vunpack.i.h.bf16 %v4992_v49  ;;  %v4999_v49 = vunpack.i.h.bf16 %v6718_v25  ;;  %v4998_v56 = vunpack.i.l.bf16 %v6718_v25 }
 0x41d   : > { %v2147_v38 = vsel %vm2138_vm12, %v2137_v1, %v2001_v63  ;;  %v2172_v55 = vsel %vm1026_vm6, %v2163_v24, %v5008_v34  ;;  %v2173_v35 = vsel %vm1026_vm6, %v2164_v45, %v5009_v46  ;;  %v4954_v54 = vunpack.i.h.bf16 %v6664_v53 }
 0x41e   : > { %v2157_v2 = vsel %vm2148_vm13, %v2147_v38, %v6629_v61  ;;  %v2179_v17 = vpack.c.bf16 %v2173_v35, %v2172_v55  ;;  %v5012_v15 = vpop.permute.xlu1 %5011  ;;  %v2107_v20 = vsel %vm2099_vm9, %v6578_v18, %v4994_v41  ;;  %v4953_v1 = vunpack.i.l.bf16 %v6664_v53  ;;  %v5381_v53 = vld [vmem:[%s8005_s8 + $0x18] sm:$0xff]  }
 0x41f   : > { %v2167_v31 = vsel %vm2158_vm14, %v2157_v2, %v6631_v13  ;;  %v5014_v29 = vunpack.i.h.bf16 %v5012_v15  ;;  %v5013_v40 = vunpack.i.l.bf16 %v5012_v15  ;;  %v4969_v41 = vunpack.i.h.bf16 %v6690_v30 }
 0x420   : > { %v6758_v57 = vpop.permute.xlu0 %2088  ;;  %v2215_v48 = vshrl.u32 %v2179_v17, 16  ;;  %v2218_v58 = vshll.u32 %v2179_v17, 16  ;;  %v4968_v28 = vunpack.i.l.bf16 %v6690_v30 }
 0x421   : > { %8068 = vst [vmem:[#allocation21_spill] sm:$0xff] %v6758_v57  ;;  %v2117_v27 = vsel %vm2109_vm10, %v2107_v20, %v5014_v29  ;;  %v2116_v32 = vsel %vm2109_vm10, %v2106_v50, %v5013_v40  ;;  %v2176_v8 = vsel %vm1026_vm6, %v2167_v31, %v6758_v57 }
 0x422   : > { %v2217_v47 = vrot.slane %v2215_v48, 3  ;;  %v2220_v5 = vrot.slane %v2218_v58, 4  ;;  %v2126_v39 = vsel %vm2119_vm11, %v2116_v32, %v4963_v33  ;;  %v2127_v18 = vsel %vm2119_vm11, %v2117_v27, %v4964_v26  ;;  %v5017_v3 = vpop.permute.xlu1 %5016 }
 0x423   : > { %v5019_v46 = vunpack.i.h.bf16 %v5017_v3  ;;  %v5018_v25 = vunpack.i.l.bf16 %v5017_v3  ;;  %v2181_v24 = vpack.c.bf16 %v2176_v8, %v2176_v8  ;;  %v2135_v45 = vsel %vm561_vm0, %v2126_v39, %v4998_v56 }
 0x424   : > { %v2221_v34 = vor.u32 %v2220_v5, %v2217_v47  ;;  %v2136_v63 = vsel %vm561_vm0, %v2127_v18, %v4999_v49  ;;  %v8070_v18 = vpack.c.bf16 %v6311_v22, %v6306_v51  ;;  %v8071_v3 = vpack.c.bf16 %v6353_v19, %v6349_v60 }
 0x425   : > { %v2145_v38 = vsel %vm2138_vm12, %v2135_v45, %v5018_v25  ;;  %v2146_v55 = vsel %vm2138_vm12, %v2136_v63, %v5019_v46  ;;  %v2233_v49 = vshrl.u32 %v2181_v24, 16  ;;  %v2236_v29 = vshll.u32 %v2181_v24, 16 }
 0x426   : > { %v2155_v35 = vsel %vm2148_vm13, %v2145_v38, %v4953_v1  ;;  %v2156_v2 = vsel %vm2148_vm13, %v2146_v55, %v4954_v54  ;;  %v5022_v26 = vpop.permute.xlu1 %5021  ;;  %v2222_v17 = vsel %vm1130_vm5, %v2212_v16, %v2221_v34  ;;  %v8072_v54 = vpack.c.bf16 %v6363_v42, %v6357_v7 }
 0x427   : > { %v5024_v15 = vunpack.i.h.bf16 %v5022_v26  ;;  %v5023_v31 = vunpack.i.l.bf16 %v5022_v26  ;;  %v2165_v33 = vsel %vm2158_vm14, %v2155_v35, %v4968_v28  ;;  %v2166_v30 = vsel %vm2158_vm14, %v2156_v2, %v4969_v41  ;;  %4626 = vmatmul.mubr.msk.bf16.vlgmr.msra.gmra.mrb[16].mxu1 %vm2268_vm15, %v2222_v17 }
 0x428   : > { %4652 = vmatpush3.bf16.msra.mxu1 %v6626_v6  ;;  %v2235_v48 = vrot.slane %v2233_v49, 3  ;;  %v2238_v16 = vrot.slane %v2236_v29, 4  ;;  %v8069_v6 = vpack.c.bf16 %v6302_v52, %v6297_v44  ;;  %v4378_v44 = vld [vmem:[%s8008_s11] ss:$0 sm:$0xff] }
 0x429   : > { %v2174_v40 = vsel %vm1026_vm6, %v2165_v33, %v5023_v31  ;;  %v2175_v20 = vsel %vm1026_vm6, %v2166_v30, %v5024_v15  ;;  %4653 = vmatprep.subr.bf16.mxu1 %v5381_v53 }
 0x42a   : > { %v2180_v50 = vpack.c.bf16 %v2175_v20, %v2174_v40  ;;  %v2239_v47 = vor.u32 %v2238_v16, %v2235_v48 }
 0x42c   : > { %v2224_v58 = vshrl.u32 %v2180_v50, 16  ;;  %v2227_v56 = vshll.u32 %v2180_v50, 16  ;;  %4654 = vmatpush3.bf16.msra.mxu1 %v5381_v53 }
 0x42e   : > { %v2226_v27 = vrot.slane %v2224_v58, 3  ;;  %v2229_v32 = vrot.slane %v2227_v56, 4 }
 0x430   : > { %v2230_v8 = vor.u32 %v2229_v32, %v2226_v27 }
 0x432   : > { %v2231_v5 = vsel %vm1130_vm5, %v2221_v34, %v2230_v8  ;;  %v2240_v39 = vsel %vm1130_vm5, %v2230_v8, %v2239_v47 }
 0x433   : > { %4629 = vmatprep.mubr.msk.bf16.mxu1 %vm2268_vm15, %v2231_v5 }
 0x434   : > { %4630 = vmatmul.mubr.msk.bf16.gmra.mrb[20].mxu1 %vm2268_vm15, %v2240_v39 }
 0x435   : > { %4655 = vmatprep.mubr.msk.bf16.mxu1 %vm561_vm0, %v8069_v6 }
 0x43c   : > { %4656 = vmatmul.mubr.msk.bf16.vlgmr.msra.gmra.mrb[24].mxu1 %vm561_vm0, %v8070_v18 }
 0x43d   : > { %4659 = vmatprep.mubr.msk.bf16.mxu1 %vm561_vm0, %v8071_v3 }
 0x444   : > { %4660 = vmatmul.mubr.msk.bf16.gmra.mrb[28].mxu1 %vm561_vm0, %v8072_v54 }
 0x4fa   : > { %v4627_v52 = vpop.f32.mrb[16].mxu1 }
 0x4fb   : > { %v2328_v1 = vadd.f32 %v4627_v52, %v4378_v44  ;;  %v2319_v46 = vpop.f32.mrb[17].mxu1 }
 0x4fc   : > { %v2320_v51 = vadd.f32 %v4378_v44, %v2319_v46  ;;  %v4628_v22 = vpop.f32.mrb[18].mxu1 }
 0x4fd   : > { %v6815_v25 = vmul.f32 %v2328_v1, %v5711_v62  ;;  %v2360_v60 = vmul.f32 %v2328_v1, %v5781_v36  ;;  %v2331_v19 = vadd.f32 %v4628_v22, %v4378_v44  ;;  %v2322_v34 = vpop.f32.mrb[19].mxu1  ;;  %v2384_v24 = vrot.slane %v2328_v1, 1 }
 0x4fe   : > { %v2358_v7 = vmul.f32 %v2320_v51, %v5781_v36  ;;  %v2380_v42 = vrot.slane %v2320_v51, 1  ;;  %v2323_v45 = vadd.f32 %v4378_v44, %v2322_v34  ;;  %v6820_v63 = vmul.f32 %v2320_v51, %v5711_v62 }
 0x4ff   : > { %v6823_v41 = vmul.f32 %v2331_v19, %v5711_v62  ;;  %v6826_v28 = vmul.f32 %v2331_v19, %v5781_v36  ;;  %v2386_v38 = vrot.slane %v2331_v19, 1  ;;  %v2430_v55 = vrot.slane %v2360_v60, 2 }
 0x500   : > { %v6829_v53 = vmul.f32 %v2323_v45, %v5711_v62  ;;  %v2359_v35 = vmul.f32 %v2323_v45, %v5781_v36  ;;  %v2382_v2 = vrot.slane %v2323_v45, 1  ;;  %v6832_v26 = vrot.slane %v2358_v7, 2 }
 0x501   : > { %8073 = vst [vmem:[#allocation22_spill] sm:$0xff] %v6823_v41  ;;  %v2432_v17 = vrot.slane %v6826_v28, 2  ;;  %v5025_v15 = vpack.i.bf16 %v6823_v41, %v6815_v25  ;;  %v2387_v31 = vsel %vm721_vm2, %v2384_v24, %v2386_v38  ;;  %v2381_v49 = vsel %vm721_vm2, %v5725_v10, %v2380_v42 }
 0x502   : > { %8074 = vst [vmem:[#allocation23_spill] sm:$0xff] %v6829_v53  ;;  %v6838_v33 = vrot.slane %v2359_v35, 2  ;;  %v5035_v30 = vpack.i.bf16 %v6829_v53, %v6820_v63  ;;  %v2383_v29 = vsel %vm721_vm2, %v2380_v42, %v2382_v2  ;;  %v6847_v20 = vsel %vm721_vm2, %v2382_v2, %v2384_v24 }
 0x503   : > { %5026 = vrot.lane.b32.xlu0 %v5025_v15, %s5572_s29  ;;  %v5040_v40 = vpack.i.bf16 %v2383_v29, %v2381_v49  ;;  %v5045_v50 = vpack.i.bf16 %v2383_v29, %v2380_v42  ;;  %v6850_v48 = vsel %vm817_vm4, %v2430_v55, %v2432_v17  ;;  %v5050_v16 = vpack.i.bf16 %v2387_v31, %v6847_v20  ;;  %v4412_v42 = vld [vmem:[%s8006_s9 + $0x1] ss:$0 sm:$0xff] }
 0x504   : > { %5036 = vrot.lane.b32.xlu1 %v5035_v30, %s5572_s29  ;;  %v6856_v58 = vsel %vm817_vm4, %v6838_v33, %v2430_v55  ;;  %v5055_v56 = vpack.i.bf16 %v6847_v20, %v2382_v2  ;;  %v2427_v32 = vsel %vm817_vm4, %v5866_v23, %v6832_v26  ;;  %v6867_v8 = vsel %vm817_vm4, %v6832_v26, %v6838_v33 }
 0x505   : > { %v5070_v27 = vpack.i.bf16 %v6850_v48, %v6856_v58  ;;  %v5060_v5 = vpack.i.bf16 %v6867_v8, %v2427_v32  ;;  %v5065_v39 = vpack.i.bf16 %v6867_v8, %v6832_v26 }
 0x507   : > { %v4631_v6 = vpop.f32.mrb[20].mxu1  ;;  %5031 = vrot.lane.b32.xlu0 %v5035_v30, %s5574_s19 }
 0x508   : > { %v2335_v18 = vpop.f32.mrb[21].mxu1  ;;  %5041 = vrot.lane.b32.xlu1 %v5040_v40, %s5575_s20  ;;  %v2344_v52 = vadd.f32 %v4631_v6, %v4378_v44 }
 0x509   : > { %v2336_v3 = vadd.f32 %v4378_v44, %v2335_v18  ;;  %v4632_v54 = vpop.f32.mrb[22].mxu1 }
 0x50a   : > { %v2347_v1 = vadd.f32 %v4632_v54, %v4378_v44  ;;  %v2338_v46 = vpop.f32.mrb[23].mxu1  ;;  %v6887_v45 = vrot.slane %v2344_v52, 1  ;;  %v6927_v6 = vmul.f32 %v2344_v52, %v5711_v62 }
 0x50b   : > { %v2362_v51 = vmul.f32 %v2336_v3, %v5781_v36  ;;  %v2388_v22 = vrot.slane %v2336_v3, 1  ;;  %v2339_v60 = vadd.f32 %v4378_v44, %v2338_v46  ;;  %5051 = vrot.lane.b32.xlu0 %v5050_v16, %s5571_s18  ;;  %v6882_v34 = vmul.f32 %v2336_v3, %v5711_v62 }
 0x50c   : > { %v6878_v19 = vrot.slane %v2347_v1, 1  ;;  %5046 = vrot.lane.b32.xlu1 %v5045_v50, %s5571_s18  ;;  %v6893_v44 = vmul.f32 %v2344_v52, %v5781_v36  ;;  %v6896_v55 = vmul.f32 %v2347_v1, %v5781_v36  ;;  %8077 = vst [vmem:[#allocation25_spill] sm:$0xff] %v6927_v6 }
 0x50d   : > { %8075 = vst [vmem:[#allocation24_spill] sm:$0xff] %v6882_v34  ;;  %v2434_v24 = vrot.slane %v2362_v51, 2  ;;  %v2390_v7 = vrot.slane %v2339_v60, 1  ;;  %v6890_v28 = vsel %vm721_vm2, %v2386_v38, %v2388_v22  ;;  %v2363_v15 = vmul.f32 %v2339_v60, %v5781_v36 }
 0x50e   : > { %v5085_v2 = vpack.i.bf16 %v6890_v28, %v2387_v31  ;;  %v6907_v38 = vsel %vm721_vm2, %v6887_v45, %v6878_v19  ;;  %v6912_v29 = vsel %vm721_vm2, %v6878_v19, %v5725_v10  ;;  %v5080_v31 = vpack.i.bf16 %v6882_v34, %v6823_v41 }
 0x50f   : > { %v4657_v35 = vpop.f32.mrb[24].mxu1  ;;  %5071 = vrot.lane.b32.xlu0 %v5070_v27, %s5577_s25  ;;  %v6919_v16 = vsel %vm721_vm2, %v2388_v22, %v2390_v7  ;;  %v2438_v54 = vrot.slane %v6893_v44, 2  ;;  %v2436_v46 = vrot.slane %v2363_v15, 2  ;;  %v6939_v22 = vmul.f32 %v2347_v1, %v5711_v62 }
 0x510   : > { %v6901_v30 = vadd.f32 %v4657_v35, %v4412_v42  ;;  %v3035_v49 = vpop.f32.mrb[25].mxu1  ;;  %5056 = vrot.lane.b32.xlu1 %v5055_v56, %s8076_s28  ;;  %v6922_v56 = vsel %vm817_vm4, %v2432_v17, %v2434_v24  ;;  %v6943_v35 = vmul.f32 %v2339_v60, %v5711_v62 }
 0x511   : > { %v4658_v40 = vpop.f32.mrb[26].mxu1  ;;  %v6929_v18 = vadd.f32 %v4412_v42, %v3035_v49  ;;  %v6959_v1 = vpack.i.bf16 %v6922_v56, %v6850_v48  ;;  %v6992_v9 = vsel %vm817_vm4, %v2436_v46, %v2438_v54 }
 0x512   : > { %v6924_v27 = vadd.f32 %v4658_v40, %v4412_v42  ;;  %v3038_v32 = vpop.f32.mrb[27].mxu1  ;;  %v3100_v51 = vrot.slane %v6901_v30, 1  ;;  %8078 = vst [vmem:[#allocation26_spill] sm:$0xff] %v6943_v35  ;;  %v6950_v44 = vmul.f32 %v6901_v30, %v5781_v36  ;;  %v5105_v26 = vpack.i.bf16 %v6927_v6, %v6943_v35 }
 0x513   : > { %v6931_v3 = vadd.f32 %v4412_v42, %v3038_v32  ;;  %5081 = vrot.lane.b32.xlu0 %v5080_v31, %s5574_s19  ;;  %v3074_v60 = vmul.f32 %v6929_v18, %v5781_v36  ;;  %v6970_v32 = vsel %vm721_vm2, %v2390_v7, %v6887_v45  ;;  %v6987_v7 = vsel %vm817_vm4, %v2434_v24, %v2436_v46 }
 0x514   : > { %v3102_v17 = vrot.slane %v6924_v27, 1  ;;  %5061 = vrot.lane.b32.xlu1 %v5060_v5, %s5576_s24  ;;  %v6974_v5 = vmul.f32 %v6924_v27, %v5781_v36  ;;  %v5095_v24 = vpack.i.bf16 %v6939_v22, %v6927_v6  ;;  %v5100_v46 = vpack.i.bf16 %v6943_v35, %v6882_v34 }
 0x515   : > { %v6946_v49 = vrot.slane %v6931_v3, 1  ;;  %v3075_v8 = vmul.f32 %v6931_v3, %v5781_v36  ;;  %v7014_v43 = vrot.slane %v3074_v60, 2 }
 0x516   : > { %v6953_v15 = vsel %vm721_vm2, %v3100_v51, %v3102_v17 }
 0x517   : > { %v6965_v40 = vsel %vm721_vm2, %v6946_v49, %v3100_v51  ;;  %v4661_v31 = vpop.f32.mrb[28].mxu1  ;;  %5086 = vrot.lane.b32.xlu0 %v5085_v2, %s5575_s20  ;;  %v6982_v51 = vpack.i.bf16 %v6970_v32, %v6919_v16  ;;  %v7030_v60 = vrot.slane %v3075_v8, 2 }
 0x518   : > { %v3051_v48 = vpop.f32.mrb[29].mxu1  ;;  %5066 = vrot.lane.b32.xlu1 %v5065_v39, %s5577_s25  ;;  %v6998_v39 = vadd.f32 %v4661_v31, %v4412_v42  ;;  %v3146_v31 = vrot.slane %v6950_v44, 2 }
 0x519   : > { %v6989_v52 = vadd.f32 %v4412_v42, %v3051_v48  ;;  %v4662_v47 = vpop.f32.mrb[30].mxu1 }
 0x51a   : > { %v3063_v4 = vadd.f32 %v4662_v47, %v4412_v42  ;;  %v3054_v37 = vpop.f32.mrb[31].mxu1  ;;  %v7012_v47 = vrot.slane %v6929_v18, 1  ;;  %v7033_v59 = vrot.slane %v6998_v39, 1 }
 0x51b   : > { %v3104_v48 = vrot.slane %v6989_v52, 1  ;;  %v7003_v50 = vadd.f32 %v4412_v42, %v3054_v37  ;;  %5091 = vrot.lane.b32.xlu0 %v5085_v2, %s8076_s28  ;;  %v8079_v37 = vpack.i.bf16 %v6856_v58, %v6838_v33  ;;  %v3148_v42 = vrot.slane %v6974_v5, 2 }
 0x51c   : > { %v7017_v21 = vmul.f32 %v3063_v4, %v5711_v62  ;;  %v3078_v2 = vmul.f32 %v6989_v52, %v5781_v36  ;;  %v3081_v12 = vmul.f32 %v3063_v4, %v5781_v36  ;;  %v3080_v5 = vmul.f32 %v6998_v39, %v5781_v36 }
 0x51d   : > { %5076 = vrot.lane.b32.xlu1 %v8079_v37, %s5569_s23  ;;  %v7027_v44 = vsel %vm721_vm2, %v3102_v17, %v3104_v48  ;;  %v3106_v33 = vrot.slane %v7003_v50, 1  ;;  %v7040_v37 = vrot.slane %v3063_v4, 1  ;;  %v5150_v17 = vpack.i.bf16 %v6992_v9, %v6987_v7 }
 0x51e   : > { %v3079_v8 = vmul.f32 %v7003_v50, %v5781_v36  ;;  %v8080_v4 = vrot.slane %v6896_v55, 2  ;;  %v3156_v61 = vrot.slane %v3081_v12, 2  ;;  %v7077_v12 = vsel %vm817_vm4, %v5866_v23, %v7014_v43 }
 0x51f   : > { %5101 = vrot.lane.b32.xlu0 %v5100_v46, %s5572_s29  ;;  %v7048_v57 = vsel %vm721_vm2, %v3104_v48, %v3106_v33  ;;  %v7052_v11 = vsel %vm721_vm2, %v3106_v33, %v7033_v59  ;;  %v3150_v46 = vrot.slane %v3078_v2, 2  ;;  %v7065_v48 = vsel %vm721_vm2, %v5725_v10, %v7012_v47 }
 0x520   : > { %v7058_v13 = vsel %vm817_vm4, %v2438_v54, %v8080_v4  ;;  %v7090_v33 = vsel %vm817_vm4, %v7030_v60, %v3146_v31  ;;  %v3152_v36 = vrot.slane %v3079_v8, 2  ;;  %v7104_v4 = vsel %vm817_vm4, %v7014_v43, %v7030_v60 }
 0x521   : > { %5096 = vrot.lane.b32.xlu1 %v5095_v24, %s5572_s29  ;;  %v5160_v6 = vpack.i.bf16 %v7058_v13, %v6992_v9  ;;  %v7072_v24 = vsel %vm721_vm2, %v7012_v47, %v6946_v49  ;;  %v8081_v9 = vpack.i.bf16 %v6912_v29, %v6907_v38  ;;  %v7112_v29 = vpack.i.bf16 %v7027_v44, %v6953_v15 }
 0x522   : > { %v3154_v2 = vrot.slane %v3080_v5, 2  ;;  %v8082_v8 = vpack.i.bf16 %v6919_v16, %v6890_v28  ;;  %v7139_v5 = vpack.i.bf16 %v7052_v11, %v7048_v57  ;;  %v7144_v28 = vsel %vm721_vm2, %v7033_v59, %v7040_v37 }
 0x523   : > { %5106 = vrot.lane.b32.xlu0 %v5105_v26, %s5574_s19  ;;  %v7097_v26 = vsel %vm817_vm4, %v3146_v31, %v3148_v42  ;;  %v7129_v31 = vsel %vm817_vm4, %v3148_v42, %v3150_v46  ;;  %v8083_v42 = vrot.slane %v6896_v55, 2  ;;  %v7157_v41 = vsel %vm817_vm4, %v3156_v61, %v5866_v23 }
 0x524   : > { %v7135_v54 = vpack.i.bf16 %v7129_v31, %v7097_v26  ;;  %v7147_v16 = vsel %vm817_vm4, %v3154_v2, %v3156_v61  ;;  %v5305_v53 = vpack.i.bf16 %v7144_v28, %v7052_v11  ;;  %v7166_v35 = vsel %vm817_vm4, %v3150_v46, %v3152_v36 }
 0x525   : > { %5111 = vrot.lane.b32.xlu1 %v8081_v9, %s8076_s28  ;;  %v5310_v9 = vpack.i.bf16 %v7147_v16, %v7058_v13  ;;  %v5320_v55 = vpack.i.bf16 %v7166_v35, %v7129_v31  ;;  %v7178_v61 = vsel %vm721_vm2, %v7040_v37, %v5725_v10  ;;  %v8084_v46 = vpack.i.bf16 %v6907_v38, %v6970_v32  ;;  %v7392_v31 = vld [vmem:[%s8005_s8 + $0x20] sm:$0xff]  }
 0x526   : > { %v7201_v38 = vmul.f32 %v6929_v18, %v5711_v62  ;;  %v7208_v32 = vmul.f32 %v6924_v27, %v5711_v62  ;;  %v7218_v18 = vmul.f32 %v6901_v30, %v5711_v62  ;;  %v7226_v27 = vmul.f32 %v6931_v3, %v5711_v62  ;;  %v5383_v3 = vld [vmem:[%s8009_s12 + $0x8] sm:$0xff]  }
 0x527   : > { %5121 = vrot.lane.b32.xlu0 %v8082_v8, %s5571_s18  ;;  %v7153_v8 = vsel %vm817_vm4, %v8083_v42, %v5866_v23  ;;  %v7173_v23 = vsel %vm817_vm4, %v3152_v36, %v3154_v2  ;;  %v5350_v42 = vpack.i.bf16 %v7157_v41, %v7147_v16  ;;  %v5335_v36 = vpack.i.bf16 %v7178_v61, %v7144_v28 }
 0x528   : > { %v7188_v34 = vpack.i.bf16 %v7173_v23, %v7166_v35  ;;  %v5340_v2 = vpack.i.bf16 %v7147_v16, %v7173_v23  ;;  %v5345_v10 = vpack.i.bf16 %v7153_v8, %v7058_v13  ;;  %v5180_v30 = vpack.i.bf16 %v7218_v18, %v7226_v27 }
 0x529   : > { %5116 = vrot.lane.b32.xlu1 %v6959_v1, %s5576_s24 }
 0x52b   : > { %5126 = vrot.lane.b32.xlu0 %v6982_v51, %s8076_s28 }
 0x52d   : > { %5141 = vrot.lane.b32.xlu1 %v8084_v46, %s5571_s18  ;;  %v5165_v46 = vpack.i.bf16 %v7201_v38, %v6815_v25 }
 0x52f   : > { %5131 = vrot.lane.b32.xlu0 %v6959_v1, %s5569_s23  ;;  %v8085_v1 = vpack.i.bf16 %v6987_v7, %v6922_v56  ;;  %v8086_v56 = vpack.i.bf16 %v7065_v48, %v6847_v20  ;;  %v5185_v7 = vpack.i.bf16 %v7226_v27, %v7201_v38  ;;  %v8087_v20 = vpack.i.bf16 %v6965_v40, %v7072_v24  ;;  %v5385_v48 = vld [vmem:[%s8009_s12 + $0x18] sm:$0xff]  }
 0x531   : > { %5151 = vrot.lane.b32.xlu1 %v5150_v17, %s5569_s23 }
 0x533   : > { %5136 = vrot.lane.b32.xlu0 %v6982_v51, %s5575_s20  ;;  %v5382_v51 = vld [vmem:[%s8009_s12] sm:$0xff]  }
 0x534   : > { %4633 = vmatprep.subr.bf16.mxu0 %v5382_v51 }
 0x535   : > { %5156 = vrot.lane.b32.xlu1 %v5150_v17, %s5576_s24  ;;  %v5175_v17 = vpack.i.bf16 %v7208_v32, %v7218_v18  ;;  %4634 = vmatpush3.bf16.msra.mxu0 %v5382_v51  ;;  %v7265_v51 = vmul.f32 %v6989_v52, %v5711_v62 }
 0x536   : > { %4635 = vmatprep.subr.bf16.mxu0 %v5383_v3 }
 0x537   : > { %5146 = vrot.lane.b32.xlu0 %v8085_v1, %s5577_s25  ;;  %v8089_v1 = vpack.i.bf16 %v6953_v15, %v6965_v40  ;;  %v8091_v15 = vpack.i.bf16 %v7097_v26, %v7090_v33  ;;  %v8096_v26 = vpack.i.bf16 %v7040_v37, %v6878_v19  ;;  %v8098_v19 = vpack.i.bf16 %v7017_v21, %v6939_v22  ;;  %v5390_v37 = vld [vmem:[%s8011_s14 + $0x18] sm:$0xff]  }
 0x539   : > { %5166 = vrot.lane.b32.xlu1 %v5165_v46, %s5574_s19  ;;  %4636 = vmatpush3.bf16.msra.mxu0 %v5383_v3  ;;  %v8088_v46 = vpack.i.bf16 %v7077_v12, %v6856_v58  ;;  %v8090_v58 = vpack.i.bf16 %v7072_v24, %v7012_v47  ;;  %v5240_v12 = vpack.i.bf16 %v7265_v51, %v7208_v32 }
 0x53a   : > { %v8093_v47 = vpack.i.bf16 %v7090_v33, %v7104_v4  ;;  %v8094_v24 = vpack.i.bf16 %v7104_v4, %v7014_v43  ;;  %v8097_v4 = vpack.i.bf16 %v7033_v59, %v6887_v45  ;;  %v8099_v45 = vpack.i.bf16 %v7048_v57, %v7027_v44 }
 0x53b   : > { %5161 = vrot.lane.b32.xlu0 %v5160_v6, %s5577_s25  ;;  %v5384_v6 = vld [vmem:[%s8009_s12 + $0x10] sm:$0xff]   ;;  %v8100_v44 = vpack.i.bf16 %v7157_v41, %v7153_v8 }
 0x53c   : > { %4637 = vmatprep.subr.bf16.mxu0 %v5384_v6 }
 0x53d   : > { %5176 = vrot.lane.b32.xlu1 %v5175_v17, %s5572_s29  ;;  %4638 = vmatpush3.bf16.msra.mxu0 %v5384_v6  ;;  %v5386_v17 = vld [vmem:[%s8009_s12 + $0x20] ss:$0 sps:$4 sm:$0xff]  }
 0x53e   : > { %4639 = vmatprep.subr.bf16.mxu0 %v5385_v48  ;;  %v2814_v52 = vsel %vm2281_vm8, %v5386_v17, 0 }
 0x53f   : > { %5171 = vrot.lane.b32.xlu0 %v8086_v56, %s5575_s20 }
 0x541   : > { %5181 = vrot.lane.b32.xlu1 %v5180_v30, %s5574_s19  ;;  %4640 = vmatpush3.bf16.msra.mxu0 %v5385_v48  ;;  %v8092_v30 = vpack.i.bf16 %v6965_v40, %v6946_v49  ;;  %v7301_v49 = vmul.f32 %v7003_v50, %v5711_v62  ;;  %v8095_v40 = vpack.i.bf16 %v7090_v33, %v7030_v60 }
 0x542   : > { %4710 = vmatprep.subr.msk.bf16.mxu0 %vm2281_vm8, %v5386_v17  ;;  %v7319_v50 = vmul.f32 %v6998_v39, %v5711_v62  ;;  %v5387_v39 = vld [vmem:[%s8011_s14] sm:$0xff]  }
 0x543   : > { %5186 = vrot.lane.b32.xlu0 %v5185_v7, %s5572_s29  ;;  %v5270_v43 = vpack.i.bf16 %v7301_v49, %v7265_v51  ;;  %4663 = vmatprep.subr.bf16.mxu1 %v5387_v39 }
 0x544   : > { %v5275_v60 = vpack.i.bf16 %v7319_v50, %v7301_v49  ;;  %v5265_v59 = vpack.i.bf16 %v7017_v21, %v7319_v50  ;;  %4664 = vmatpush3.bf16.msra.mxu1 %v5387_v39  ;;  %v5388_v21 = vld [vmem:[%s8011_s14 + $0x8] sm:$0xff]  }
 0x545   : > { %5191 = vrot.lane.b32.xlu1 %v8087_v20, %s5575_s20  ;;  %4642 = vmatpush3.bf16.msra.mxu0 %v2814_v52 }
 0x546   : > { %4665 = vmatprep.subr.bf16.mxu1 %v5388_v21  ;;  %4681 = vmatprep.subr.bf16.mxu0 %v7392_v31 }
 0x547   : > { %5196 = vrot.lane.b32.xlu0 %v8088_v46, %s5576_s24 }
 0x548   : > { %4666 = vmatpush3.bf16.msra.mxu1 %v5388_v21 }
 0x549   : > { %5206 = vrot.lane.b32.xlu1 %v8089_v1, %s5571_s18 }
 0x54b   : > { %5201 = vrot.lane.b32.xlu0 %v8090_v58, %s5571_s18 }
 0x54d   : > { %5226 = vrot.lane.b32.xlu1 %v8091_v15, %s5577_s25 }
 0x54f   : > { %5211 = vrot.lane.b32.xlu0 %v8092_v30, %s8076_s28 }
 0x551   : > { %5241 = vrot.lane.b32.xlu1 %v5240_v12, %s5574_s19 }
 0x553   : > { %5216 = vrot.lane.b32.xlu0 %v8093_v47, %s5576_s24 }
 0x555   : > { %5246 = vrot.lane.b32.xlu1 %v7112_v29, %s5575_s20 }
 0x557   : > { %5221 = vrot.lane.b32.xlu0 %v8094_v24, %s5577_s25 }
 0x559   : > { %5251 = vrot.lane.b32.xlu1 %v7112_v29, %s8076_s28  ;;  %v5391_v29 = vld [vmem:[%s8011_s14 + $0x20] ss:$0 sps:$4 sm:$0xff]  }
 0x55b   : > { %5231 = vrot.lane.b32.xlu0 %v8095_v40, %s5569_s23 }
 0x55d   : > { %5261 = vrot.lane.b32.xlu1 %v8096_v26, %s5571_s18 }
 0x55f   : > { %5236 = vrot.lane.b32.xlu0 %v8097_v4, %s5575_s20 }
 0x561   : > { %5271 = vrot.lane.b32.xlu1 %v5270_v43, %s5572_s29 }
 0x563   : > { %5256 = vrot.lane.b32.xlu0 %v8098_v19, %s5574_s19 }
 0x565   : > { %5276 = vrot.lane.b32.xlu1 %v5275_v60, %s5574_s19 }
 0x567   : > { %5266 = vrot.lane.b32.xlu0 %v5265_v59, %s5572_s29 }
 0x569   : > { %5286 = vrot.lane.b32.xlu1 %v8099_v45, %s5571_s18 }
 0x56b   : > { %5281 = vrot.lane.b32.xlu0 %v7135_v54, %s5576_s24 }
 0x56d   : > { %5291 = vrot.lane.b32.xlu1 %v7139_v5, %s8076_s28 }
 0x56f   : > { %5301 = vrot.lane.b32.xlu0 %v7139_v5, %s5575_s20 }
 0x571   : > { %5296 = vrot.lane.b32.xlu1 %v7135_v54, %s5569_s23 }
 0x573   : > { %5306 = vrot.lane.b32.xlu0 %v5305_v53, %s5571_s18  ;;  %v5389_v53 = vld [vmem:[%s8011_s14 + $0x10] sm:$0xff]  }
 0x574   : > { %4667 = vmatprep.subr.bf16.mxu1 %v5389_v53 }
 0x575   : > { %5311 = vrot.lane.b32.xlu1 %v5310_v9, %s5576_s24  ;;  %v7358_v57 = vpop.permute.xlu0 %5026  ;;  %4668 = vmatpush3.bf16.msra.mxu1 %v5389_v53  ;;  %v3530_v9 = vsel %vm2281_vm8, %v5391_v29, 0 }
 0x576   : > { %v7360_v22 = vpop.permute.xlu1 %5036  ;;  %4669 = vmatprep.subr.bf16.mxu1 %v5390_v37 }
 0x577   : > { %5316 = vrot.lane.b32.xlu0 %v8100_v44, %s5577_s25  ;;  %v5039_v48 = vunpack.i.h.bf16 %v7360_v22  ;;  %v5038_v30 = vunpack.i.l.bf16 %v7360_v22 }
 0x579   : > { %5321 = vrot.lane.b32.xlu1 %v5320_v55, %s5577_s25  ;;  %v5032_v11 = vpop.permute.xlu0 %5031  ;;  %4670 = vmatpush3.bf16.msra.mxu1 %v5390_v37 }
 0x57a   : > { %v5042_v33 = vpop.permute.xlu1 %5041  ;;  %4711 = vmatprep.subr.msk.bf16.mxu1 %vm2281_vm8, %v5391_v29  ;;  %v5033_v41 = vunpack.i.l.bf16 %v5032_v11 }
 0x57b   : > { %5331 = vrot.lane.b32.xlu0 %v7188_v34, %s5576_s24  ;;  %v5044_v28 = vunpack.i.h.bf16 %v5042_v33  ;;  %v5043_v55 = vunpack.i.l.bf16 %v5042_v33 }
 0x57d   : > { %5326 = vrot.lane.b32.xlu1 %v7188_v34, %s5569_s23  ;;  %v7380_v35 = vpop.permute.xlu0 %5051  ;;  %4672 = vmatpush3.bf16.msra.mxu1 %v3530_v9  ;;  %v2642_v16 = vsel %vm2099_vm9, %v6820_v63, %v5044_v28 }
 0x57e   : > { %v5047_v54 = vpop.permute.xlu1 %5046  ;;  %4705 = vmatprep.subr.bf16.mxu1 %v7392_v31  ;;  %v5053_v8 = vunpack.i.l.bf16 %v7380_v35 }
 0x57f   : > { %5336 = vrot.lane.b32.xlu0 %v5335_v36, %s8076_s28  ;;  %v5028_v36 = vunpack.i.l.bf16 %v7358_v57  ;;  %v5048_v13 = vunpack.i.l.bf16 %v5047_v54  ;;  %s4474_s28 = sshll.u32 %s8135_s22, 6 }
 0x580   : > { %s7946_s17 = scalar_lea.vmem %s8013_s16, %s4474_s28 }
 0x581   : > { %5341 = vrot.lane.b32.xlu1 %v5340_v2, %s5577_s25  ;;  %v7398_v34 = vpop.permute.xlu0 %5071  ;;  %v5034_v2 = vunpack.i.h.bf16 %v5032_v11  ;;  %v2665_v47 = vsel %vm561_vm0, %v6654_v0, %v5048_v13 }
 0x582   : > { %v5057_v5 = vpop.permute.xlu1 %5056  ;;  %v5073_v46 = vunpack.i.l.bf16 %v7398_v34 }
 0x583   : > { %5351 = vrot.lane.b32.xlu0 %v5350_v42, %s5569_s23  ;;  %v2641_v42 = vsel %vm2099_vm9, %v5734_v14, %v5043_v55  ;;  %v5059_v24 = vunpack.i.h.bf16 %v5057_v5  ;;  %v5058_v26 = vunpack.i.l.bf16 %v5057_v5 }
 0x585   : > { %5346 = vrot.lane.b32.xlu1 %v5345_v10, %s5569_s23  ;;  %v7411_v23 = vpop.permute.xlu0 %5081  ;;  %v5049_v10 = vunpack.i.h.bf16 %v5047_v54 }
 0x586   : > { %v5062_v61 = vpop.permute.xlu1 %5061 }
 0x587   : > { %v5064_v56 = vunpack.i.h.bf16 %v5062_v61  ;;  %v5063_v3 = vunpack.i.l.bf16 %v5062_v61 }
 0x589   : > { %v2649_v6 = vsel %vm2109_vm10, %v2641_v42, %v5063_v3  ;;  %v2650_v7 = vsel %vm2109_vm10, %v2642_v16, %v5064_v56  ;;  %v7422_v20 = vpop.permute.xlu0 %5086 }
 0x58a   : > { %v2657_v1 = vsel %vm2119_vm11, %v2649_v6, %v5033_v41  ;;  %v2658_v63 = vsel %vm2119_vm11, %v2650_v7, %v5034_v2  ;;  %v5067_v17 = vpop.permute.xlu1 %5066  ;;  %v5089_v41 = vunpack.i.h.bf16 %v7422_v20  ;;  %v5088_v16 = vunpack.i.l.bf16 %v7422_v20 }
 0x58b   : > { %v2667_v58 = vsel %vm561_vm0, %v2658_v63, %v5053_v8  ;;  %v5069_v15 = vunpack.i.h.bf16 %v5067_v17  ;;  %v5068_v52 = vunpack.i.l.bf16 %v5067_v17  ;;  %v2666_v12 = vsel %vm561_vm0, %v2657_v1, %v5049_v10  ;;  %v8101_v63 = vld [vmem:[#allocation26_spill] sm:$0xff] }
 0x58c   : > { %v2676_v40 = vsel %vm2138_vm12, %v2667_v58, %v5073_v46  ;;  %v8102_v58 = vld [vmem:[#allocation24_spill] sm:$0xff] }
 0x58d   : > { %v2674_v43 = vsel %vm2138_vm12, %v2665_v47, %v5068_v52  ;;  %v2675_v4 = vsel %vm2138_vm12, %v2666_v12, %v5069_v15  ;;  %v7436_v60 = vpop.permute.xlu0 %5091  ;;  %v7439_v19 = vsel %vm2148_vm13, %v2676_v40, %v5028_v36 }
 0x58e   : > { %v2683_v59 = vsel %vm2148_vm13, %v2674_v43, %v5038_v30  ;;  %v2684_v45 = vsel %vm2148_vm13, %v2675_v4, %v5039_v48 }
 0x58f   : > { %v5077_v39 = vpop.permute.xlu1 %5076  ;;  %v2692_v44 = vsel %vm2158_vm14, %v2683_v59, %v5058_v26  ;;  %v2693_v11 = vsel %vm2158_vm14, %v2684_v45, %v5059_v24  ;;  %v8103_v59 = vld [vmem:[#allocation22_spill] sm:$0xff] }
 0x590   : > { %v5079_v21 = vunpack.i.h.bf16 %v5077_v39  ;;  %v5078_v22 = vunpack.i.l.bf16 %v5077_v39  ;;  %v2645_v45 = vsel %vm2099_vm9, %v8103_v59, %v5089_v41  ;;  %v2644_v39 = vsel %vm2099_vm9, %v6815_v25, %v5088_v16 }
 0x591   : > { %v7447_v33 = vpop.permute.xlu0 %5101 }
 0x592   : > { %v2701_v53 = vsel %vm1026_vm6, %v2692_v44, %v5078_v22  ;;  %v2702_v37 = vsel %vm1026_vm6, %v2693_v11, %v5079_v21  ;;  %v5084_v11 = vunpack.i.h.bf16 %v7411_v23 }
 0x593   : > { %v7449_v54 = vpack.c.bf16 %v2702_v37, %v2701_v53  ;;  %v5097_v29 = vpop.permute.xlu1 %5096  ;;  %v5083_v53 = vunpack.i.l.bf16 %v7411_v23 }
 0x595   : > { %v5107_v9 = vpop.permute.xlu0 %5106 }
 0x596   : > { %v5109_v10 = vunpack.i.h.bf16 %v5107_v9  ;;  %v5108_v6 = vunpack.i.l.bf16 %v5107_v9 }
 0x597   : > { %v5112_v5 = vpop.permute.xlu1 %5111 }
 0x598   : > { %v5113_v41 = vunpack.i.l.bf16 %v5112_v5 }
 0x599   : > { %v5122_v28 = vpop.permute.xlu0 %5121 }
 0x59b   : > { %v5117_v55 = vpop.permute.xlu1 %5116 }
 0x59c   : > { %v5119_v46 = vunpack.i.h.bf16 %v5117_v55  ;;  %v5118_v1 = vunpack.i.l.bf16 %v5117_v55 }
 0x59d   : > { %v7451_v61 = vpop.permute.xlu0 %5126 }
 0x59e   : > { %v2652_v21 = vsel %vm2109_vm10, %v2644_v39, %v5118_v1  ;;  %v2653_v22 = vsel %vm2109_vm10, %v2645_v45, %v5119_v46  ;;  %v5124_v46 = vunpack.i.h.bf16 %v5122_v28  ;;  %v5123_v1 = vunpack.i.l.bf16 %v5122_v28 }
 0x59f   : > { %v5142_v36 = vpop.permute.xlu1 %5141  ;;  %v2661_v25 = vsel %vm2119_vm11, %v2653_v22, %v5084_v11  ;;  %v5104_v28 = vunpack.i.h.bf16 %v7447_v33 }
 0x5a0   : > { %v5144_v52 = vunpack.i.h.bf16 %v5142_v36  ;;  %v5143_v12 = vunpack.i.l.bf16 %v5142_v36  ;;  %v5099_v36 = vunpack.i.h.bf16 %v5097_v29 }
 0x5a1   : > { %v7453_v2 = vpop.permute.xlu0 %5131 }
 0x5a3   : > { %v7455_v56 = vpop.permute.xlu1 %5151 }
 0x5a5   : > { %v5137_v3 = vpop.permute.xlu0 %5136 }
 0x5a6   : > { %v5139_v42 = vunpack.i.h.bf16 %v5137_v3  ;;  %v5138_v13 = vunpack.i.l.bf16 %v5137_v3  ;;  %v5098_v3 = vunpack.i.l.bf16 %v5097_v29 }
 0x5a7   : > { %v5157_v8 = vpop.permute.xlu1 %5156 }
 0x5a8   : > { %v5159_v7 = vunpack.i.h.bf16 %v5157_v8  ;;  %v5158_v48 = vunpack.i.l.bf16 %v5157_v8  ;;  %v2647_v17 = vsel %vm2099_vm9, %v8101_v63, %v5139_v42  ;;  %v2646_v15 = vsel %vm2099_vm9, %v8102_v58, %v5138_v13 }
 0x5a9   : > { %v5147_v47 = vpop.permute.xlu0 %5146  ;;  %v5114_v42 = vunpack.i.h.bf16 %v5112_v5  ;;  %v2660_v13 = vsel %vm2119_vm11, %v2652_v21, %v5083_v53  ;;  %v2670_v58 = vsel %vm561_vm0, %v2661_v25, %v5124_v46  ;;  %v5054_v53 = vunpack.i.h.bf16 %v7380_v35 }
 0x5aa   : > { %v2654_v30 = vsel %vm2109_vm10, %v2646_v15, %v5158_v48  ;;  %v2655_v20 = vsel %vm2109_vm10, %v2647_v17, %v5159_v7  ;;  %v2669_v17 = vsel %vm561_vm0, %v2660_v13, %v5123_v1  ;;  %v5133_v25 = vunpack.i.l.bf16 %v7453_v2 }
 0x5ab   : > { %v2662_v24 = vsel %vm2119_vm11, %v2654_v30, %v5108_v6  ;;  %v2663_v40 = vsel %vm2119_vm11, %v2655_v20, %v5109_v10  ;;  %v7467_v26 = vpop.permute.xlu1 %5166  ;;  %v5149_v10 = vunpack.i.h.bf16 %v5147_v47  ;;  %v5148_v6 = vunpack.i.l.bf16 %v5147_v47 }
 0x5ac   : > { %v2671_v43 = vsel %vm561_vm0, %v2662_v24, %v5143_v12  ;;  %v2672_v4 = vsel %vm561_vm0, %v2663_v40, %v5144_v52  ;;  %v5103_v30 = vunpack.i.l.bf16 %v7447_v33  ;;  %v5168_v33 = vunpack.i.l.bf16 %v7467_v26 }
 0x5ad   : > { %v5162_v44 = vpop.permute.xlu0 %5161  ;;  %v2678_v15 = vsel %vm2138_vm12, %v2669_v17, %v5148_v6  ;;  %v2679_v52 = vsel %vm2138_vm12, %v2670_v58, %v5149_v10  ;;  %v5094_v10 = vunpack.i.h.bf16 %v7436_v60 }
 0x5ae   : > { %v5164_v37 = vunpack.i.h.bf16 %v5162_v44  ;;  %v5163_v9 = vunpack.i.l.bf16 %v5162_v44  ;;  %v2687_v24 = vsel %vm2148_vm13, %v2678_v15, %v5103_v30  ;;  %v2688_v40 = vsel %vm2148_vm13, %v2679_v52, %v5104_v28  ;;  %v8104_v44 = vld [vmem:[#allocation23_spill] sm:$0xff] }
 0x5af   : > { %v7479_v55 = vpop.permute.xlu1 %5176  ;;  %v2734_v30 = vshll.u32 %v7449_v54, 16 }
 0x5b0   : > { %v2680_v16 = vsel %vm2138_vm12, %v2671_v43, %v5163_v9  ;;  %v2681_v8 = vsel %vm2138_vm12, %v2672_v4, %v5164_v37  ;;  %v5129_v43 = vunpack.i.h.bf16 %v7451_v61  ;;  %v5128_v4 = vunpack.i.l.bf16 %v7451_v61 }
 0x5b1   : > { %v2689_v23 = vsel %vm2148_vm13, %v2680_v16, %v5098_v3  ;;  %v2690_v7 = vsel %vm2148_vm13, %v2681_v8, %v5099_v36  ;;  %v5172_v48 = vpop.permute.xlu0 %5171  ;;  %v5154_v37 = vunpack.i.h.bf16 %v7455_v56  ;;  %v5153_v9 = vunpack.i.l.bf16 %v7455_v56 }
 0x5b2   : > { %v7490_v5 = vsel %vm2158_vm14, %v2689_v23, %v5113_v41  ;;  %v7493_v63 = vsel %vm2158_vm14, %v2690_v7, %v5114_v42  ;;  %v5173_v47 = vunpack.i.l.bf16 %v5172_v48  ;;  %v2696_v21 = vsel %vm2158_vm14, %v2687_v24, %v5128_v4 }
 0x5b3   : > { %v7487_v29 = vpop.permute.xlu1 %5181  ;;  %v2697_v22 = vsel %vm2158_vm14, %v2688_v40, %v5129_v43  ;;  %v5029_v36 = vunpack.i.h.bf16 %v7358_v57  ;;  %v5074_v3 = vunpack.i.h.bf16 %v7398_v34  ;;  %v5093_v42 = vunpack.i.l.bf16 %v7436_v60 }
 0x5b4   : > { %v2643_v11 = vsel %vm2099_vm9, %v8104_v44, %v5173_v47  ;;  %v2705_v16 = vsel %vm1026_vm6, %v2696_v21, %v5153_v9  ;;  %v2706_v35 = vsel %vm1026_vm6, %v2697_v22, %v5154_v37  ;;  %v5134_v34 = vunpack.i.h.bf16 %v7453_v2 }
 0x5b5   : > { %v7499_v12 = vpop.permute.xlu0 %5186  ;;  %v2694_v23 = vsel %vm2158_vm14, %v7439_v19, %v5093_v42  ;;  %v2712_v7 = vpack.c.bf16 %v2706_v35, %v2705_v16  ;;  %v5174_v46 = vunpack.i.h.bf16 %v5172_v48  ;;  %v2731_v2 = vshrl.u32 %v7449_v54, 16 }
 0x5b6   : > { %v2703_v58 = vsel %vm1026_vm6, %v2694_v23, %v5133_v25  ;;  %v2736_v44 = vrot.slane %v2734_v30, 4 }
 0x5b7   : > { %v7503_v20 = vpop.permute.xlu1 %5191  ;;  %v3357_v19 = vsel %vm2099_vm9, %v5734_v14, %v5174_v46  ;;  %v2748_v47 = vshrl.u32 %v2712_v7, 16  ;;  %v2751_v24 = vshll.u32 %v2712_v7, 16 }
 0x5b8   : > { %v5194_v54 = vunpack.i.h.bf16 %v7503_v20 }
 0x5b9   : > { %v5197_v59 = vpop.permute.xlu0 %5196  ;;  %v2753_v37 = vrot.slane %v2751_v24, 4 }
 0x5ba   : > { %v5198_v45 = vunpack.i.l.bf16 %v5197_v59  ;;  %v5199_v15 = vunpack.i.h.bf16 %v5197_v59 }
 0x5bb   : > { %v7509_v39 = vpop.permute.xlu1 %5206 }
 0x5bc   : > { %v2651_v61 = vsel %vm2109_vm10, %v2643_v11, %v5198_v45  ;;  %v3365_v40 = vsel %vm2109_vm10, %v3357_v19, %v5199_v15  ;;  %v5169_v45 = vunpack.i.h.bf16 %v7467_v26 }
 0x5bd   : > { %v2659_v41 = vsel %vm2119_vm11, %v2651_v61, %v5168_v33  ;;  %v5202_v13 = vpop.permute.xlu0 %5201  ;;  %v2733_v33 = vrot.slane %v2731_v2, 3  ;;  %v7582_v2 = vld [vmem:[%s8005_s8 + $0x28] sm:$0xff]  }
 0x5be   : > { %v2668_v8 = vsel %vm561_vm0, %v2659_v41, %v5054_v53  ;;  %v5204_v21 = vunpack.i.h.bf16 %v5202_v13  ;;  %v5203_v22 = vunpack.i.l.bf16 %v5202_v13  ;;  %v3373_v11 = vsel %vm2119_vm11, %v3365_v40, %v5169_v45 }
 0x5bf   : > { %v7528_v56 = vpop.permute.xlu1 %5226  ;;  %v2677_v57 = vsel %vm2138_vm12, %v2668_v8, %v5074_v3  ;;  %v2750_v53 = vrot.slane %v2748_v47, 3  ;;  %v5193_v41 = vunpack.i.l.bf16 %v7503_v20  ;;  %v5189_v8 = vunpack.i.h.bf16 %v7499_v12 }
 0x5c0   : > { %v2686_v6 = vsel %vm2148_vm13, %v2677_v57, %v5029_v36  ;;  %v3381_v26 = vsel %vm561_vm0, %v6654_v0, %v5203_v22  ;;  %v3382_v13 = vsel %vm561_vm0, %v3373_v11, %v5204_v21  ;;  %v2737_v20 = vor.u32 %v2736_v44, %v2733_v33 }
 0x5c1   : > { %v7536_v1 = vpop.permute.xlu0 %5211  ;;  %v2695_v17 = vsel %vm2158_vm14, %v2686_v6, %v5094_v10  ;;  %v5188_v10 = vunpack.i.l.bf16 %v7499_v12  ;;  %v3359_v6 = vsel %vm2099_vm9, %v7226_v27, %v5194_v54  ;;  %v7565_v7 = vor.u32 %v2753_v37, %v2750_v53 }
 0x5c2   : > { %v2704_v60 = vsel %vm1026_vm6, %v2695_v17, %v5134_v34  ;;  %v3358_v46 = vsel %vm2099_vm9, %v7201_v38, %v5193_v41  ;;  %v5214_v17 = vunpack.i.h.bf16 %v7536_v1  ;;  %v5213_v15 = vunpack.i.l.bf16 %v7536_v1 }
 0x5c3   : > { %v7540_v52 = vpop.permute.xlu1 %5241  ;;  %v2711_v28 = vpack.c.bf16 %v2704_v60, %v2703_v58  ;;  %v5183_v38 = vunpack.i.l.bf16 %v7487_v29  ;;  %v5184_v47 = vunpack.i.h.bf16 %v7487_v29  ;;  %v5208_v45 = vunpack.i.l.bf16 %v7509_v39  ;;  %v7601_v29 = vld [vmem:[%s8005_s8 + $0x30] sm:$0xff]  }
 0x5c4   : > { %v5209_v22 = vunpack.i.h.bf16 %v7509_v39  ;;  %v5228_v53 = vunpack.i.l.bf16 %v7528_v56 }
 0x5c5   : > { %v5217_v48 = vpop.permute.xlu0 %5216  ;;  %v2739_v4 = vshrl.u32 %v2711_v28, 16  ;;  %v2742_v59 = vshll.u32 %v2711_v28, 16 }
 0x5c6   : > { %v5218_v25 = vunpack.i.l.bf16 %v5217_v48  ;;  %v5219_v57 = vunpack.i.h.bf16 %v5217_v48 }
 0x5c7   : > { %v7548_v43 = vpop.permute.xlu1 %5246  ;;  %v2741_v3 = vrot.slane %v2739_v4, 3  ;;  %v2744_v42 = vrot.slane %v2742_v59, 4 }
 0x5c8   : > { %v3366_v60 = vsel %vm2109_vm10, %v3358_v46, %v5218_v25  ;;  %v3367_v30 = vsel %vm2109_vm10, %v3359_v6, %v5219_v57  ;;  %v5249_v25 = vunpack.i.h.bf16 %v7548_v43 }
 0x5c9   : > { %v5222_v14 = vpop.permute.xlu0 %5221  ;;  %v2745_v23 = vor.u32 %v2744_v42, %v2741_v3  ;;  %v3374_v59 = vsel %vm2119_vm11, %v3366_v60, %v5183_v38  ;;  %v3375_v21 = vsel %vm2119_vm11, %v3367_v30, %v5184_v47  ;;  %v5178_v42 = vunpack.i.l.bf16 %v7479_v55 }
 0x5ca   : > { %v5224_v9 = vunpack.i.h.bf16 %v5222_v14  ;;  %v5223_v61 = vunpack.i.l.bf16 %v5222_v14  ;;  %v3383_v11 = vsel %vm561_vm0, %v3374_v59, %v5208_v45  ;;  %v3384_v37 = vsel %vm561_vm0, %v3375_v21, %v5209_v22 }
 0x5cb   : > { %v7553_v36 = vpop.permute.xlu1 %5251  ;;  %v2746_v27 = vsel %vm1130_vm5, %v2737_v20, %v2745_v23  ;;  %v2755_v28 = vsel %vm1130_vm5, %v2745_v23, %v7565_v7  ;;  %v3392_v39 = vsel %vm2138_vm12, %v3383_v11, %v5228_v53  ;;  %v5244_v23 = vunpack.i.h.bf16 %v7540_v52 }
 0x5cc   : > { %v3390_v16 = vsel %vm2138_vm12, %v3381_v26, %v5223_v61  ;;  %v3391_v35 = vsel %vm2138_vm12, %v3382_v13, %v5224_v9  ;;  %4643 = vmatprep.mubr.msk.bf16.mxu0 %vm2268_vm15, %v2746_v27  ;;  %v5229_v9 = vunpack.i.h.bf16 %v7528_v56  ;;  %v5179_v13 = vunpack.i.h.bf16 %v7479_v55 }
 0x5cd   : > { %v5232_v34 = vpop.permute.xlu0 %5231  ;;  %v3399_v58 = vsel %vm2148_vm13, %v3390_v16, %v5188_v10  ;;  %v3400_v12 = vsel %vm2148_vm13, %v3391_v35, %v5189_v8  ;;  %4644 = vmatmul.mubr.msk.bf16.vlgmr.msra.gmra.mrb[16].mxu0 %vm2268_vm15, %v2755_v28  ;;  %v5248_v16 = vunpack.i.l.bf16 %v7548_v43  ;;  %v5253_v56 = vunpack.i.l.bf16 %v7553_v36 }
 0x5ce   : > { %v5234_v19 = vunpack.i.h.bf16 %v5232_v34  ;;  %v5233_v1 = vunpack.i.l.bf16 %v5232_v34  ;;  %v3408_v24 = vsel %vm2158_vm14, %v3399_v58, %v5213_v15  ;;  %v3409_v40 = vsel %vm2158_vm14, %v3400_v12, %v5214_v17  ;;  %4682 = vmatpush3.bf16.msra.mxu0 %v7392_v31 }
 0x5cf   : > { %v7567_v0 = vpop.permute.xlu1 %5261  ;;  %4683 = vmatprep.subr.bf16.mxu0 %v7582_v2  ;;  %v3393_v41 = vsel %vm2138_vm12, %v3384_v37, %v5229_v9  ;;  %v5254_v35 = vunpack.i.h.bf16 %v7553_v36  ;;  %v3401_v8 = vsel %vm2148_vm13, %v3392_v39, %v5178_v42  ;;  %v5243_v55 = vunpack.i.l.bf16 %v7540_v52 }
 0x5d0   : > { %v3417_v33 = vsel %vm1026_vm6, %v3408_v24, %v5233_v1  ;;  %v3418_v44 = vsel %vm1026_vm6, %v3409_v40, %v5234_v19  ;;  %v3402_v34 = vsel %vm2148_vm13, %v3393_v41, %v5179_v13  ;;  %v3361_v43 = vsel %vm2099_vm9, %v7208_v32, %v5249_v25  ;;  %v8105_v1 = vld [vmem:[#allocation25_spill] sm:$0xff] }
 0x5d1   : > { %v5237_v48 = vpop.permute.xlu0 %5236  ;;  %v3426_v61 = vpack.c.bf16 %v3418_v44, %v3417_v33  ;;  %v3360_v36 = vsel %vm2099_vm9, %v7218_v18, %v5248_v16  ;;  %v3410_v12 = vsel %vm2158_vm14, %v3401_v8, %v5253_v56  ;;  %v3411_v60 = vsel %vm2158_vm14, %v3402_v34, %v5254_v35 }
 0x5d2   : > { %4684 = vmatpush3.bf16.msra.mxu0 %v7582_v2  ;;  %v5239_v6 = vunpack.i.h.bf16 %v5237_v48  ;;  %v5238_v46 = vunpack.i.l.bf16 %v5237_v48  ;;  %v5264_v52 = vunpack.i.h.bf16 %v7567_v0  ;;  %v5263_v38 = vunpack.i.l.bf16 %v7567_v0 }
 0x5d3   : > { %v7591_v4 = vpop.permute.xlu1 %5271  ;;  %4693 = vmatprep.subr.bf16.mxu0 %v7601_v29  ;;  %v3447_v10 = vshrl.u32 %v3426_v61, 16  ;;  %v3450_v57 = vshll.u32 %v3426_v61, 16 }
 0x5d4   : > { %v3364_v30 = vsel %vm2099_vm9, %v7319_v50, %v5239_v6  ;;  %v5274_v32 = vunpack.i.h.bf16 %v7591_v4  ;;  %v5273_v18 = vunpack.i.l.bf16 %v7591_v4  ;;  %v2648_v48 = vsel %vm2099_vm9, %v8105_v1, %v5238_v46 }
 0x5d5   : > { %v7606_v54 = vpop.permute.xlu0 %5256  ;;  %v7640_v27 = vrot.slane %v3447_v10, 3  ;;  %v7642_v28 = vrot.slane %v3450_v57, 4 }
 0x5d6   : > { %v5259_v47 = vunpack.i.h.bf16 %v7606_v54  ;;  %v5258_v24 = vunpack.i.l.bf16 %v7606_v54 }
 0x5d7   : > { %v7609_v14 = vpop.permute.xlu1 %5276  ;;  %v3453_v11 = vor.u32 %v7642_v28, %v7640_v27 }
 0x5d8   : > { %v5279_v0 = vunpack.i.h.bf16 %v7609_v14  ;;  %v5278_v22 = vunpack.i.l.bf16 %v7609_v14 }
 0x5d9   : > { %v7617_v3 = vpop.permute.xlu0 %5266 }
 0x5da   : > { %v5269_v33 = vunpack.i.h.bf16 %v7617_v3  ;;  %v5268_v44 = vunpack.i.l.bf16 %v7617_v3 }
 0x5db   : > { %v7621_v26 = vpop.permute.xlu1 %5286 }
 0x5dc   : > { %v5289_v39 = vunpack.i.h.bf16 %v7621_v26  ;;  %v5288_v42 = vunpack.i.l.bf16 %v7621_v26 }
 0x5dd   : > { %v5282_v20 = vpop.permute.xlu0 %5281 }
 0x5de   : > { %v5283_v17 = vunpack.i.l.bf16 %v5282_v20  ;;  %v5284_v15 = vunpack.i.h.bf16 %v5282_v20 }
 0x5df   : > { %v7632_v58 = vpop.permute.xlu1 %5291 }
 0x5e0   : > { %v3368_v40 = vsel %vm2109_vm10, %v3360_v36, %v5283_v17  ;;  %v3369_v45 = vsel %vm2109_vm10, %v3361_v43, %v5284_v15  ;;  %v5294_v16 = vunpack.i.h.bf16 %v7632_v58  ;;  %v5293_v56 = vunpack.i.l.bf16 %v7632_v58 }
 0x5e1   : > { %v5302_v19 = vpop.permute.xlu0 %5301  ;;  %v3376_v54 = vsel %vm2119_vm11, %v3368_v40, %v5243_v55  ;;  %v3377_v41 = vsel %vm2119_vm11, %v3369_v45, %v5244_v23  ;;  %v8106_v45 = vld [vmem:[#allocation19_spill] sm:$0xff] }
 0x5e2   : > { %v5304_v53 = vunpack.i.h.bf16 %v5302_v19  ;;  %v5303_v10 = vunpack.i.l.bf16 %v5302_v19  ;;  %v3385_v6 = vsel %vm561_vm0, %v3376_v54, %v5288_v42  ;;  %v3386_v46 = vsel %vm561_vm0, %v3377_v41, %v5289_v39  ;;  %v8107_v54 = vld [vmem:[#allocation20_spill] sm:$0xff] }
 0x5e3   : > { %v5297_v59 = vpop.permute.xlu1 %5296 }
 0x5e4   : > { %v5299_v50 = vunpack.i.h.bf16 %v5297_v59  ;;  %v5298_v21 = vunpack.i.l.bf16 %v5297_v59  ;;  %v3363_v20 = vsel %vm2099_vm9, %v7301_v49, %v5304_v53  ;;  %v3362_v28 = vsel %vm2099_vm9, %v7265_v51, %v5303_v10 }
 0x5e5   : > { %v7665_v61 = vpop.permute.xlu0 %5306 }
 0x5e6   : > { %v3419_v37 = vsel %vm1026_vm6, %v3410_v12, %v5298_v21  ;;  %v3420_v9 = vsel %vm1026_vm6, %v3411_v60, %v5299_v50 }
 0x5e7   : > { %v3427_v13 = vpack.c.bf16 %v3420_v9, %v3419_v37  ;;  %v5312_v25 = vpop.permute.xlu1 %5311 }
 0x5e8   : > { %v5314_v35 = vunpack.i.h.bf16 %v5312_v25  ;;  %v5313_v8 = vunpack.i.l.bf16 %v5312_v25 }
 0x5e9   : > { %v3455_v57 = vshrl.u32 %v3427_v13, 16  ;;  %v3458_v34 = vshll.u32 %v3427_v13, 16  ;;  %v5317_v55 = vpop.permute.xlu0 %5316 }
 0x5ea   : > { %v2656_v26 = vsel %vm2109_vm10, %v2648_v48, %v5313_v8  ;;  %v3372_v23 = vsel %vm2109_vm10, %v3364_v30, %v5314_v35  ;;  %v5319_v15 = vunpack.i.h.bf16 %v5317_v55  ;;  %v5318_v60 = vunpack.i.l.bf16 %v5317_v55 }
 0x5eb   : > { %v3457_v17 = vrot.slane %v3455_v57, 3  ;;  %v3460_v43 = vrot.slane %v3458_v34, 4  ;;  %v2664_v58 = vsel %vm2119_vm11, %v2656_v26, %v5258_v24  ;;  %v3380_v36 = vsel %vm2119_vm11, %v3372_v23, %v5259_v47  ;;  %v5322_v12 = vpop.permute.xlu1 %5321  ;;  %v8108_v57 = vld [vmem:[#allocation21_spill] sm:$0xff] }
 0x5ec   : > { %v2673_v27 = vsel %vm561_vm0, %v2664_v58, %v5263_v38  ;;  %v3389_v49 = vsel %vm561_vm0, %v3380_v36, %v5264_v52  ;;  %v5309_v30 = vunpack.i.h.bf16 %v7665_v61  ;;  %v5324_v19 = vunpack.i.h.bf16 %v5322_v12 }
 0x5ed   : > { %v5323_v1 = vunpack.i.l.bf16 %v5322_v12  ;;  %v5308_v48 = vunpack.i.l.bf16 %v7665_v61  ;;  %v2682_v24 = vsel %vm2138_vm12, %v2673_v27, %v5318_v60  ;;  %v3398_v47 = vsel %vm2138_vm12, %v3389_v49, %v5319_v15  ;;  %v5332_v40 = vpop.permute.xlu0 %5331 }
 0x5ee   : > { %v3461_v59 = vor.u32 %v3460_v43, %v3457_v17  ;;  %v2691_v38 = vsel %vm2148_vm13, %v2682_v24, %v8106_v45  ;;  %v3407_v52 = vsel %vm2148_vm13, %v3398_v47, %v8106_v45  ;;  %v3395_v50 = vsel %vm2138_vm12, %v3386_v46, %v5324_v19 }
 0x5ef   : > { %v3394_v51 = vsel %vm2138_vm12, %v3385_v6, %v5323_v1  ;;  %v5327_v21 = vpop.permute.xlu1 %5326  ;;  %v2700_v53 = vsel %vm2158_vm14, %v2691_v38, %v8107_v54  ;;  %v3416_v37 = vsel %vm2158_vm14, %v3407_v52, %v8107_v54  ;;  %v3404_v61 = vsel %vm2148_vm13, %v3395_v50, %v5274_v32 }
 0x5f0   : > { %v3403_v9 = vsel %vm2148_vm13, %v3394_v51, %v5273_v18  ;;  %v5334_v39 = vunpack.i.h.bf16 %v5332_v40  ;;  %v5333_v42 = vunpack.i.l.bf16 %v5332_v40  ;;  %v5329_v41 = vunpack.i.h.bf16 %v5327_v21 }
 0x5f1   : > { %v5328_v13 = vunpack.i.l.bf16 %v5327_v21  ;;  %v3412_v25 = vsel %vm2158_vm14, %v3403_v9, %v5293_v56  ;;  %v3413_v35 = vsel %vm2158_vm14, %v3404_v61, %v5294_v16  ;;  %v3462_v8 = vsel %vm1130_vm5, %v3453_v11, %v3461_v59  ;;  %v5337_v10 = vpop.permute.xlu0 %5336 }
 0x5f2   : > { %v3425_v34 = vsel %vm1026_vm6, %v3416_v37, %v8108_v57  ;;  %v3370_v18 = vsel %vm2109_vm10, %v3362_v28, %v5333_v42  ;;  %v3371_v4 = vsel %vm2109_vm10, %v3363_v20, %v5334_v39  ;;  %v3422_v6 = vsel %vm1026_vm6, %v3413_v35, %v5329_v41  ;;  %4673 = vmatprep.mubr.msk.bf16.mxu1 %vm2268_vm15, %v3462_v8 }
 0x5f3   : > { %v3421_v32 = vsel %vm1026_vm6, %v3412_v25, %v5328_v13  ;;  %v5342_v26 = vpop.permute.xlu1 %5341  ;;  %v3378_v16 = vsel %vm2119_vm11, %v3370_v18, %v5278_v22  ;;  %v3379_v11 = vsel %vm2119_vm11, %v3371_v4, %v5279_v0  ;;  %v5339_v23 = vunpack.i.h.bf16 %v5337_v10 }
 0x5f4   : > { %v3428_v56 = vpack.c.bf16 %v3422_v6, %v3421_v32  ;;  %v5338_v55 = vunpack.i.l.bf16 %v5337_v10  ;;  %v5344_v46 = vunpack.i.h.bf16 %v5342_v26  ;;  %v5343_v20 = vunpack.i.l.bf16 %v5342_v26 }
 0x5f5   : > { %v3387_v17 = vsel %vm561_vm0, %v3378_v16, %v5308_v48  ;;  %v3388_v36 = vsel %vm561_vm0, %v3379_v11, %v5309_v30  ;;  %v5352_v12 = vpop.permute.xlu0 %5351  ;;  %v3430_v15 = vpack.c.bf16 %v3425_v34, %v3425_v34  ;;  %v2709_v37 = vsel %vm1026_vm6, %v2700_v53, %v8108_v57  ;;  %v8109_v16 = vld [vmem:[#allocation4_spill] sm:$0xff]  ;;  %v8110_v11 = vld [vmem:[#allocation3_spill] sm:$0xff] }
 0x5f6   : > { %v3464_v43 = vshrl.u32 %v3428_v56, 16  ;;  %v3467_v58 = vshll.u32 %v3428_v56, 16  ;;  %v3396_v60 = vsel %vm2138_vm12, %v3387_v17, %v5343_v20  ;;  %v3397_v22 = vsel %vm2138_vm12, %v3388_v36, %v5344_v46  ;;  %v8116_v46 = vld [vmem:[#allocation8_spill] sm:$0xff]  ;;  %v5395_v17 = vld [vmem:[%s8005_s8 + $0x38] sm:$0xff]  }
 0x5f7   : > { %v5354_v14 = vunpack.i.h.bf16 %v5352_v12  ;;  %v5353_v27 = vunpack.i.l.bf16 %v5352_v12  ;;  %v5347_v0 = vpop.permute.xlu1 %5346  ;;  %v3405_v19 = vsel %vm2148_vm13, %v3396_v60, %v5268_v44  ;;  %v3406_v1 = vsel %vm2148_vm13, %v3397_v22, %v5269_v33  ;;  %v8121_v12 = vld [vmem:[#allocation12_spill] sm:$0xff]  ;;  %v8124_v22 = vld [vmem:[#allocation14_spill] sm:$0xff] }
 0x5f8   : > { %v3466_v49 = vrot.slane %v3464_v43, 3  ;;  %v3469_v28 = vrot.slane %v3467_v58, 4  ;;  %v3414_v30 = vsel %vm2158_vm14, %v3405_v19, %v5338_v55  ;;  %v3415_v48 = vsel %vm2158_vm14, %v3406_v1, %v5339_v23  ;;  %v8113_v23 = vld [vmem:[#allocation5_spill] sm:$0xff]  ;;  %v8118_v43 = vld [vmem:[#allocation10_spill] sm:$0xff] }
 0x5f9   : > { %v5349_v24 = vunpack.i.h.bf16 %v5347_v0  ;;  %v5348_v47 = vunpack.i.l.bf16 %v5347_v0  ;;  %v3423_v45 = vsel %vm1026_vm6, %v3414_v30, %v5353_v27  ;;  %v3424_v38 = vsel %vm1026_vm6, %v3415_v48, %v5354_v14  ;;  %v8119_v58 = vld [vmem:[#allocation9_spill] sm:$0xff]  ;;  %v8127_v0 = vld [vmem:[#allocation16_spill] sm:$0xff]  ;;  %v8130_v19 = vld [vmem:[#allocation18_spill] sm:$0xff] }
 0x5fa   : > { %v3470_v40 = vor.u32 %v3469_v28, %v3466_v49  ;;  %v3482_v52 = vshrl.u32 %v3430_v15, 16  ;;  %v3429_v51 = vpack.c.bf16 %v3424_v38, %v3423_v45  ;;  %v3485_v33 = vshll.u32 %v3430_v15, 16  ;;  %v8122_v15 = vld [vmem:[#allocation11_spill] sm:$0xff]  ;;  %v8125_v14 = vld [vmem:[#allocation13_spill] sm:$0xff] }
 0x5fb   : > { %v2707_v44 = vsel %vm1026_vm6, %v7490_v5, %v5348_v47  ;;  %v2708_v3 = vsel %vm1026_vm6, %v7493_v63, %v5349_v24  ;;  %v2714_v42 = vpack.c.bf16 %v2709_v37, %v2709_v37  ;;  %v8111_v56 = vpack.c.bf16 %v8109_v16, %v8110_v11  ;;  %v8128_v49 = vld [vmem:[#allocation15_spill] sm:$0xff]  ;;  %v8131_v1 = vld [vmem:[#allocation17_spill] sm:$0xff] }
 0x5fc   : > { %v2713_v50 = vpack.c.bf16 %v2708_v3, %v2707_v44  ;;  %v3471_v21 = vsel %vm1130_vm5, %v3461_v59, %v3470_v40  ;;  %v3484_v54 = vrot.slane %v3482_v52, 3  ;;  %v3473_v9 = vshrl.u32 %v3429_v51, 16 }
 0x5fd   : > { %v3476_v61 = vshll.u32 %v3429_v51, 16  ;;  %4674 = vmatmul.mubr.msk.bf16.vlgmr.msra.gmra.mrb[32].mxu1 %vm2268_vm15, %v3471_v21  ;;  %v3487_v39 = vrot.slane %v3485_v33, 4  ;;  %v2766_v25 = vshrl.u32 %v2714_v42, 16  ;;  %v2769_v8 = vshll.u32 %v2714_v42, 16 }
 0x5fe   : > { %v2757_v41 = vshrl.u32 %v2713_v50, 16  ;;  %v2760_v13 = vshll.u32 %v2713_v50, 16  ;;  %4707 = vmatpush3.bf16.msra.mxu1 %v7392_v31  ;;  %v3475_v5 = vrot.slane %v3473_v9, 3  ;;  %v8120_v36 = vpack.c.bf16 %v8118_v43, %v8119_v58 }
 0x5ff   : > { %v3478_v63 = vrot.slane %v3476_v61, 4  ;;  %4706 = vmatprep.subr.bf16.mxu1 %v7582_v2  ;;  %v3488_v53 = vor.u32 %v3487_v39, %v3484_v54  ;;  %v2768_v57 = vrot.slane %v2766_v25, 3  ;;  %v2771_v18 = vrot.slane %v2769_v8, 4 }
 0x600   : > { %v2759_v59 = vrot.slane %v2757_v41, 3  ;;  %v2762_v35 = vrot.slane %v2760_v13, 4  ;;  %v8123_v60 = vpack.c.bf16 %v8121_v12, %v8122_v15  ;;  %v8126_v27 = vpack.c.bf16 %v8124_v22, %v8125_v14 }
 0x601   : > { %v3479_v10 = vor.u32 %v3478_v63, %v3475_v5  ;;  %v2772_v6 = vor.u32 %v2771_v18, %v2768_v57  ;;  %v8129_v28 = vpack.c.bf16 %v8127_v0, %v8128_v49 }
 0x602   : > { %v2763_v34 = vor.u32 %v2762_v35, %v2759_v59  ;;  %4708 = vmatpush3.bf16.msra.mxu1 %v7582_v2  ;;  %v8112_v2 = vld [vmem:[#allocation7_spill] sm:$0xff] }
 0x603   : > { %v3480_v4 = vsel %vm1130_vm5, %v3470_v40, %v3479_v10  ;;  %v3489_v32 = vsel %vm1130_vm5, %v3479_v10, %v3488_v53  ;;  %v8114_v55 = vpack.c.bf16 %v8112_v2, %v8113_v23  ;;  %v7801_v40 = vld [vmem:[%s8012_s15] ss:$0 sm:$0xff] }
 0x604   : > { %4677 = vmatprep.mubr.msk.bf16.mxu1 %vm2268_vm15, %v3480_v4  ;;  %v2764_v31 = vsel %vm1130_vm5, %v7565_v7, %v2763_v34  ;;  %v2773_v26 = vsel %vm1130_vm5, %v2763_v34, %v2772_v6  ;;  %v8115_v7 = vld [vmem:[#allocation6_spill] sm:$0xff] }
 0x605   : > { %4647 = vmatprep.mubr.msk.bf16.mxu0 %vm2268_vm15, %v2764_v31  ;;  %4678 = vmatmul.mubr.msk.bf16.gmra.mrb[36].mxu1 %vm2268_vm15, %v3489_v32  ;;  %v8117_v20 = vpack.c.bf16 %v8115_v7, %v8116_v46  ;;  %v8133_v53 = vld [vmem:[#allocation2_spill] sm:$0xff] }
 0x606   : > { %4689 = vmatprep.mubr.msk.bf16.mxu1 %vm561_vm0, %v8111_v56  ;;  %4648 = vmatmul.mubr.msk.bf16.gmra.mrb[20].mxu0 %vm2268_vm15, %v2773_v26 }
 0x607   : > { %4685 = vmatprep.mubr.msk.bf16.mxu0 %vm561_vm0, %v8114_v55 }
 0x60d   : > { %4690 = vmatmul.mubr.msk.bf16.vlgmr.msra.gmra.mrb[40].mxu1 %vm561_vm0, %v8117_v20 }
 0x60e   : > { %4686 = vmatmul.mubr.msk.bf16.vlgmr.msra.gmra.mrb[24].mxu0 %vm561_vm0, %v8120_v36 }
 0x60f   : > { %4694 = vmatpush3.bf16.msra.mxu0 %v7601_v29  ;;  %4697 = vmatprep.mubr.msk.bf16.mxu0 %vm561_vm0, %v8123_v60  ;;  %v8132_v29 = vpack.c.bf16 %v8130_v19, %v8131_v1 }
 0x610   : > { %4695 = vmatprep.subr.bf16.mxu0 %v5395_v17 }
 0x613   : > { %4696 = vmatpush3.bf16.msra.mxu0 %v5395_v17 }
 0x616   : > { %4698 = vmatmul.mubr.msk.bf16.vlgmr.msra.gmra.mrb[28].mxu0 %vm561_vm0, %v8126_v27 }
 0x617   : > { %4701 = vmatprep.mubr.msk.bf16.mxu0 %vm561_vm0, %v8129_v28 }
 0x61e   : > { %4702 = vmatmul.mubr.msk.bf16.gmra.mrb[32].mxu0 %vm561_vm0, %v8132_v29 }
 0x6a0   : > { %v7790_v30 = vpop.f32.mrb[16].mxu0 }
 0x6a1   : > { %v7792_v48 = vpop.f32.mrb[17].mxu0 }
 0x6a2   : > { %v7794_v24 = vpop.f32.mrb[18].mxu0 }
 0x6a3   : > { %v7796_v47 = vpop.f32.mrb[19].mxu0 }
 0x6d0   : > { %v4675_v45 = vpop.f32.mrb[32].mxu1 }
 0x6d1   : > { %v3575_v38 = vadd.f32 %v4675_v45, %v7801_v40  ;;  %v3566_v52 = vpop.f32.mrb[33].mxu1 }
 0x6d2   : > { %v4676_v51 = vpop.f32.mrb[34].mxu1  ;;  %v3567_v33 = vadd.f32 %v7801_v40, %v3566_v52 }
 0x6d3   : > { %v3578_v44 = vadd.f32 %v4676_v51, %v7801_v40  ;;  %4118 = vrot.lane.b32.xlu1 %v3575_v38, %s5575_s20  ;;  %v3569_v3 = vpop.f32.mrb[35].mxu1 }
 0x6d4   : > { %v3570_v50 = vadd.f32 %v7801_v40, %v3569_v3 }
 0x6d5   : > { %4120 = vrot.lane.b32.xlu0 %v3578_v44, %s5575_s20 }
 0x6d7   : > { %4114 = vrot.lane.b32.xlu1 %v3567_v33, %s5575_s20 }
 0x6d8   : > { %v4679_v21 = vpop.f32.mrb[36].mxu1 }
 0x6d9   : > { %v3591_v54 = vadd.f32 %v4679_v21, %v7801_v40  ;;  %v7811_v37 = vpop.f32.mrb[37].mxu1  ;;  %4116 = vrot.lane.b32.xlu0 %v3570_v50, %s5575_s20  ;;  %v7814_v9 = vpop.f32.mrb[20].mxu0 }
 0x6da   : > { %v4680_v61 = vpop.f32.mrb[38].mxu1  ;;  %v7816_v39 = vpop.f32.mrb[21].mxu0 }
 0x6db   : > { %v3594_v42 = vadd.f32 %v4680_v61, %v7801_v40  ;;  %v7819_v41 = vpop.f32.mrb[39].mxu1  ;;  %4126 = vrot.lane.b32.xlu1 %v3591_v54, %s5575_s20  ;;  %v7822_v13 = vpop.f32.mrb[22].mxu0 }
 0x6dc   : > { %v7824_v5 = vpop.f32.mrb[23].mxu0 }
 0x6dd   : > { %4128 = vrot.lane.b32.xlu0 %v3594_v42, %s5575_s20 }
 0x6e0   : > { %v4691_v63 = vpop.f32.mrb[40].mxu1 }
 0x6e1   : > { %v3762_v25 = vpop.f32.mrb[41].mxu1  ;;  %v4687_v59 = vpop.f32.mrb[24].mxu0 }
 0x6e2   : > { %v4692_v35 = vpop.f32.mrb[42].mxu1  ;;  %v3746_v8 = vpop.f32.mrb[25].mxu0 }
 0x6e3   : > { %v3784_v10 = vadd.f32 %v4692_v35, %v4691_v63  ;;  %v3853_v57 = vmul.f32 %v4692_v35, %v8133_v53  ;;  %v3765_v34 = vpop.f32.mrb[43].mxu1  ;;  %v4688_v18 = vpop.f32.mrb[26].mxu0  ;;  %v3793_v51 = vmul.f32 %v3746_v8, %v5711_v62 }
 0x6e4   : > { %v3782_v4 = vadd.f32 %v3765_v34, %v3762_v25  ;;  %v3783_v32 = vadd.f32 %v4691_v63, %v3765_v34  ;;  %v3749_v11 = vpop.f32.mrb[27].mxu0  ;;  %v3780_v56 = vadd.f32 %v4688_v18, %v4687_v59  ;;  %v3781_v2 = vadd.f32 %v4688_v18, %v3762_v25 }
 0x6e5   : > { %v3801_v31 = vmul.f32 %v3784_v10, %v5711_v62  ;;  %v3823_v6 = vrot.slane %v3784_v10, 1  ;;  %v7830_v26 = vmul.f32 %v3784_v10, %v8133_v53  ;;  %v3878_v16 = vrot.slane %v3853_v57, 2 }
 0x6e6   : > { %v3790_v23 = vadd.f32 %v4691_v63, %v3782_v4  ;;  %v3791_v55 = vadd.f32 %v4692_v35, %v3783_v32  ;;  %v3778_v20 = vadd.f32 %v3749_v11, %v3746_v8  ;;  %v3779_v17 = vadd.f32 %v4687_v59, %v3749_v11 }
 0x6e7   : > { %v3842_v7 = vadd.f32 %v3823_v6, %v3801_v31  ;;  %v3876_v46 = vrot.slane %v7830_v26, 2  ;;  %v3788_v43 = vadd.f32 %v3780_v56, %v3762_v25  ;;  %v3789_v58 = vadd.f32 %v3781_v2, %v3765_v34 }
 0x6e8   : > { %v3799_v36 = vmul.f32 %v3790_v23, %v5711_v62  ;;  %v3800_v12 = vmul.f32 %v3791_v55, %v5711_v62  ;;  %v3819_v60 = vrot.slane %v3790_v23, 1  ;;  %v3821_v22 = vrot.slane %v3791_v55, 1 }
 0x6e9   : > { %v3879_v15 = vsel %vm817_vm4, %v3876_v46, %v3878_v16  ;;  %v7839_v14 = vmul.f32 %v3790_v23, %v8133_v53  ;;  %v3797_v0 = vmul.f32 %v3788_v43, %v5711_v62  ;;  %v3815_v49 = vrot.slane %v3788_v43, 1  ;;  %v4699_v19 = vpop.f32.mrb[28].mxu0  ;;  %v7872_v23 = vld [vmem:[%s8006_s9 + $0x3] ss:$0 sm:$0xff] }
 0x6ea   : > { %v3897_v27 = vadd.f32 %v3879_v15, %v3842_v7  ;;  %v7843_v28 = vmul.f32 %v3788_v43, %v8133_v53  ;;  %v3798_v1 = vmul.f32 %v3789_v58, %v5711_v62  ;;  %v3817_v29 = vrot.slane %v3789_v58, 1  ;;  %v4075_v52 = vpop.f32.mrb[29].mxu0 }
 0x6eb   : > { %v3822_v45 = vsel %vm721_vm2, %v3819_v60, %v3821_v22  ;;  %v3824_v38 = vsel %vm721_vm2, %v3821_v22, %v3823_v6  ;;  %v4700_v33 = vpop.f32.mrb[30].mxu0  ;;  %v3849_v61 = vmul.f32 %v3789_v58, %v8133_v53  ;;  %v3872_v35 = vrot.slane %v7839_v14, 2 }
 0x6ec   : > { %v7849_v44 = vadd.f32 %v3822_v45, %v3799_v36  ;;  %v7851_v3 = vadd.f32 %v3824_v38, %v3800_v12  ;;  %v3868_v50 = vrot.slane %v7843_v28, 2  ;;  %v3818_v21 = vsel %vm721_vm2, %v3815_v49, %v3817_v29  ;;  %v7857_v42 = vpop.f32.mrb[31].mxu0 }
 0x6ed   : > { %v3820_v54 = vsel %vm721_vm2, %v3817_v29, %v3819_v60  ;;  %v3838_v63 = vadd.f32 %v3818_v21, %v3797_v0  ;;  %v3786_v8 = vadd.f32 %v4687_v59, %v3778_v20  ;;  %v7861_v10 = vmul.f32 %v3791_v55, %v8133_v53 }
 0x6ee   : > { %v3839_v25 = vadd.f32 %v3820_v54, %v3798_v1  ;;  %v3870_v57 = vrot.slane %v3849_v61, 2  ;;  %v3787_v34 = vadd.f32 %v4688_v18, %v3779_v17  ;;  %v3794_v4 = vmul.f32 %v3778_v20, %v5711_v62 }
 0x6ef   : > { %v3795_v32 = vmul.f32 %v3786_v8, %v5711_v62  ;;  %v3810_v31 = vrot.slane %v3778_v20, 1  ;;  %v3811_v6 = vrot.slane %v3786_v8, 1  ;;  %v3845_v16 = vmul.f32 %v3778_v20, %v8133_v53 }
 0x6f0   : > { %v3871_v11 = vsel %vm817_vm4, %v3868_v50, %v3870_v57  ;;  %v3873_v56 = vsel %vm817_vm4, %v3870_v57, %v3872_v35  ;;  %v3796_v2 = vmul.f32 %v3787_v34, %v5711_v62  ;;  %v3813_v59 = vrot.slane %v3787_v34, 1 }
 0x6f1   : > { %v3894_v18 = vadd.f32 %v3873_v56, %v3839_v25  ;;  %v3812_v55 = vsel %vm721_vm2, %v3810_v31, %v3811_v6  ;;  %v3834_v7 = vadd.f32 %v3810_v31, %v3793_v51  ;;  %v3846_v17 = vmul.f32 %v3786_v8, %v8133_v53  ;;  %v7876_v43 = vpop.f32.mrb[32].mxu0 }
 0x6f2   : > { %v3814_v20 = vsel %vm721_vm2, %v3811_v6, %v3813_v59  ;;  %v3816_v58 = vsel %vm721_vm2, %v3813_v59, %v3815_v49  ;;  %v3835_v36 = vadd.f32 %v3812_v55, %v3794_v4  ;;  %v3847_v62 = vmul.f32 %v3787_v34, %v8133_v53  ;;  %v4091_v12 = vpop.f32.mrb[33].mxu0 }
 0x6f3   : > { %v3837_v15 = vadd.f32 %v3816_v58, %v3796_v2  ;;  %v3863_v60 = vrot.slane %v3845_v16, 2  ;;  %v3864_v22 = vrot.slane %v3846_v17, 2  ;;  %v4084_v14 = vadd.f32 %v4699_v19, %v7872_v23  ;;  %v7882_v0 = vpop.f32.mrb[34].mxu0 }
 0x6f4   : > { %v3874_v28 = vrot.slane %v7861_v10, 2  ;;  %v3866_v1 = vrot.slane %v3847_v62, 2  ;;  %v4087_v29 = vadd.f32 %v4700_v33, %v7872_v23  ;;  %v4094_v45 = vpop.f32.mrb[35].mxu0  ;;  %v3583_v49 = vadd.f32 %v7801_v40, %v7811_v37  ;;  %v4449_v37 = vld [vmem:[%s8006_s9 + $0x2] ss:$0 sm:$0xff] }
 0x6f5   : > { %v3586_v53 = vadd.f32 %v7801_v40, %v7819_v41  ;;  %v3906_v38 = vmul.f32 0.11111111, %v3897_v27  ;;  %v4076_v51 = vadd.f32 %v7872_v23, %v4075_v52  ;;  %4200 = vrot.lane.b32.xlu1 %v4084_v14, %s5574_s19  ;;  %v3836_v19 = vadd.f32 %v3814_v20, %v3795_v32 }
 0x6f6   : > { %4202 = vrot.lane.b32.xlu0 %v4087_v29, %s5574_s19  ;;  %v3865_v21 = vsel %vm817_vm4, %v3863_v60, %v3864_v22  ;;  %v3867_v33 = vsel %vm817_vm4, %v3864_v22, %v3866_v1  ;;  %v3889_v54 = vadd.f32 %v3863_v60, %v3834_v7  ;;  %v3869_v40 = vsel %vm817_vm4, %v3866_v1, %v3868_v50 }
 0x6f7   : > { %v3890_v61 = vadd.f32 %v3865_v21, %v3835_v36  ;;  %v3893_v41 = vadd.f32 %v3871_v11, %v3838_v63  ;;  %v3903_v27 = vmul.f32 0.11111111, %v3894_v18  ;;  %v3891_v52 = vadd.f32 %v3867_v33, %v3836_v19 }
 0x6f8   : > { %v3898_v25 = vmul.f32 0.11111111, %v3889_v54  ;;  %v3892_v8 = vadd.f32 %v3869_v40, %v3837_v15  ;;  %v3875_v10 = vsel %vm817_vm4, %v3872_v35, %v3874_v28  ;;  %v3877_v50 = vsel %vm817_vm4, %v3874_v28, %v3876_v46 }
 0x6f9   : > { %4122 = vrot.lane.b32.xlu1 %v3583_v49, %s5575_s20  ;;  %v3899_v57 = vmul.f32 0.11111111, %v3890_v61  ;;  %v3902_v34 = vmul.f32 0.11111111, %v3893_v41  ;;  %v3917_v4 = vadd.f32 %v4449_v37, %v3903_v27  ;;  %v3895_v32 = vadd.f32 %v3875_v10, %v7849_v44 }
 0x6fa   : > { %4124 = vrot.lane.b32.xlu0 %v3586_v53, %s5575_s20  ;;  %v3900_v31 = vmul.f32 0.11111111, %v3891_v52  ;;  %v3912_v6 = vadd.f32 %v4449_v37, %v3898_v25  ;;  %v3901_v16 = vmul.f32 0.11111111, %v3892_v8  ;;  %v4079_v2 = vadd.f32 %v7872_v23, %v7857_v42 }
 0x6fb   : > { %v3913_v63 = vadd.f32 %v4449_v37, %v3899_v57  ;;  %v3916_v11 = vadd.f32 %v4449_v37, %v3902_v34  ;;  %v4156_v56 = vrot.slane %v3917_v4, 7  ;;  %v3904_v35 = vmul.f32 0.11111111, %v3895_v32 }
 0x6fc   : > { %v3914_v59 = vadd.f32 %v4449_v37, %v3900_v31  ;;  %v3915_v18 = vadd.f32 %v4449_v37, %v3901_v16  ;;  %v3896_v44 = vadd.f32 %v3877_v50, %v7851_v3  ;;  %v4147_v7 = vrot.slane %v3912_v6, 7 }
 0x6fd   : > { %4196 = vrot.lane.b32.xlu1 %v4076_v51, %s5574_s19  ;;  %v4148_v55 = vrot.slane %v3913_v63, 7  ;;  %v4154_v17 = vrot.slane %v3916_v11, 7  ;;  %v3918_v20 = vadd.f32 %v4449_v37, %v3904_v35  ;;  %v3920_v36 = vadd.f32 %v4449_v37, %v3906_v38 }
 0x6fe   : > { %4198 = vrot.lane.b32.xlu0 %v4079_v2, %s5574_s19  ;;  %v4150_v26 = vrot.slane %v3914_v59, 7  ;;  %v4152_v46 = vrot.slane %v3915_v18, 7  ;;  %v3905_v58 = vmul.f32 0.11111111, %v3896_v44  ;;  %v4092_v62 = vadd.f32 %v7872_v23, %v4091_v12 }
 0x6ff   : > { %v4149_v42 = vsel %vm736_vm1, %v4147_v7, %v4148_v55  ;;  %v4157_v15 = vsel %vm736_vm1, %v4154_v17, %v4156_v56  ;;  %v4158_v60 = vrot.slane %v3918_v20, 7  ;;  %v4162_v12 = vrot.slane %v3920_v36, 7 }
 0x700   : > { %v4151_v3 = vsel %vm736_vm1, %v4148_v55, %v4150_v26  ;;  %v4153_v22 = vsel %vm736_vm1, %v4150_v26, %v4152_v46  ;;  %v4155_v14 = vsel %vm736_vm1, %v4152_v46, %v4154_v17  ;;  %v3919_v28 = vadd.f32 %v4449_v37, %v3905_v58 }
 0x701   : > { %4204 = vrot.lane.b32.xlu1 %v4092_v62, %s5574_s19  ;;  %v4159_v1 = vsel %vm736_vm1, %v4156_v56, %v4158_v60  ;;  %v4095_v49 = vadd.f32 %v7872_v23, %v4094_v45  ;;  %v4100_v45 = vadd.f32 %v7876_v43, %v7872_v23  ;;  %v4103_v51 = vadd.f32 %v7882_v0, %v7872_v23  ;;  %v4388_v23 = vld [vmem:[%s8010_s13] ss:$0 sm:$0xff] }
 0x702   : > { %4166 = vrot.lane.b32.xlu0 %v4151_v3, %s5576_s24  ;;  %v4160_v29 = vrot.slane %v3919_v28, 7  ;;  %v2854_v0 = vadd.f32 %v4388_v23, %v7796_v47  ;;  %v2851_v34 = vadd.f32 %v4388_v23, %v7792_v48  ;;  %v2859_v50 = vadd.f32 %v7790_v30, %v4388_v23 }
 0x703   : > { %v2862_v48 = vadd.f32 %v7794_v24, %v4388_v23  ;;  %v2867_v18 = vadd.f32 %v4388_v23, %v7816_v39  ;;  %v2870_v24 = vadd.f32 %v4388_v23, %v7824_v5  ;;  %v2875_v62 = vadd.f32 %v7814_v9, %v4388_v23 }
 0x704   : > { %v4161_v53 = vsel %vm736_vm1, %v4158_v60, %v4160_v29  ;;  %v4163_v38 = vsel %vm736_vm1, %v4160_v29, %v4162_v12 }
 0x705   : > { %4164 = vrot.lane.b32.xlu1 %v4149_v42, %s5576_s24 }
 0x706   : > { %4206 = vrot.lane.b32.xlu0 %v4095_v49, %s5574_s19 }
 0x709   : > { %4168 = vrot.lane.b32.xlu1 %v4153_v22, %s5576_s24 }
 0x70a   : > { %4170 = vrot.lane.b32.xlu0 %v4155_v14, %s5576_s24 }
 0x70d   : > { %4172 = vrot.lane.b32.xlu1 %v4157_v15, %s5576_s24  ;;  %v2878_v15 = vadd.f32 %v7822_v13, %v4388_v23 }
 0x70e   : > { %4174 = vrot.lane.b32.xlu0 %v4159_v1, %s5576_s24 }
 0x711   : > { %4176 = vrot.lane.b32.xlu1 %v4161_v53, %s5576_s24 }
 0x712   : > { %4178 = vrot.lane.b32.xlu0 %v4163_v38, %s5576_s24 }
 0x715   : > { %4208 = vrot.lane.b32.xlu1 %v4100_v45, %s5574_s19 }
 0x716   : > { %4210 = vrot.lane.b32.xlu0 %v4103_v51, %s5574_s19 }
 0x745   : > { %v4119_v19 = vpop.permute.xlu1 %4118 }
 0x746   : > { %v4222_v11 = vsel %vm2099_vm9, %v2859_v50, %v4119_v19 }
 0x747   : > { %v4121_v21 = vpop.permute.xlu0 %4120 }
 0x748   : > { %v4223_v35 = vsel %vm2099_vm9, %v2862_v48, %v4121_v21 }
 0x749   : > { %v4115_v33 = vpop.permute.xlu1 %4114 }
 0x74a   : > { %v4220_v31 = vsel %vm2099_vm9, %v2851_v34, %v4115_v33 }
 0x74b   : > { %v4117_v54 = vpop.permute.xlu0 %4116 }
 0x74c   : > { %v4221_v10 = vsel %vm2099_vm9, %v2854_v0, %v4117_v54 }
 0x74d   : > { %v4127_v61 = vpop.permute.xlu1 %4126 }
 0x74e   : > { %v4226_v60 = vsel %vm2099_vm9, %v2875_v62, %v4127_v61 }
 0x74f   : > { %v4129_v37 = vpop.permute.xlu0 %4128 }
 0x750   : > { %v4227_v3 = vsel %vm2099_vm9, %v2878_v15, %v4129_v37 }
 0x767   : > { %v4201_v40 = vpop.permute.xlu1 %4200 }
 0x768   : > { %v4203_v41 = vpop.permute.xlu0 %4202 }
 0x76b   : > { %v4123_v27 = vpop.permute.xlu1 %4122 }
 0x76c   : > { %v4125_v52 = vpop.permute.xlu0 %4124  ;;  %v4224_v7 = vsel %vm2099_vm9, %v2867_v18, %v4123_v27 }
 0x76d   : > { %v4225_v20 = vsel %vm2099_vm9, %v2870_v24, %v4125_v52 }
 0x76f   : > { %v4197_v25 = vpop.permute.xlu1 %4196 }
 0x770   : > { %v4199_v43 = vpop.permute.xlu0 %4198 }
 0x773   : > { %v4205_v8 = vpop.permute.xlu1 %4204 }
 0x774   : > { %v4167_v57 = vpop.permute.xlu0 %4166 }
 0x775   : > { %v4229_v4 = vsel %vm2109_vm10, %v4221_v10, %v4167_v57 }
 0x776   : > { %v4237_v32 = vsel %vm2119_vm11, %v4229_v4, %v4199_v43 }
 0x777   : > { %4245 = vst.msk [vmem:[%s7946_s17 + $0x8] sm:$0xff] %vm561_vm0, %v4237_v32  ;;  %v4165_v47 = vpop.permute.xlu1 %4164 }
 0x778   : > { %v4228_v6 = vsel %vm2109_vm10, %v4220_v31, %v4165_v47  ;;  %v4207_v16 = vpop.permute.xlu0 %4206 }
 0x779   : > { %v4236_v63 = vsel %vm2119_vm11, %v4228_v6, %v4197_v25 }
 0x77a   : > { %4244 = vst.msk [vmem:[%s7946_s17] sm:$0xff] %vm561_vm0, %v4236_v63 }
 0x77b   : > { %v4169_v56 = vpop.permute.xlu1 %4168 }
 0x77c   : > { %v4230_v2 = vsel %vm2109_vm10, %v4222_v11, %v4169_v56  ;;  %v4171_v59 = vpop.permute.xlu0 %4170 }
 0x77d   : > { %v4238_v30 = vsel %vm2119_vm11, %v4230_v2, %v4201_v40  ;;  %v4231_v44 = vsel %vm2109_vm10, %v4223_v35, %v4171_v59 }
 0x77e   : > { %4246 = vst.msk [vmem:[%s7946_s17 + $0x10] sm:$0xff] %vm561_vm0, %v4238_v30  ;;  %v4239_v55 = vsel %vm2119_vm11, %v4231_v44, %v4203_v41 }
 0x77f   : > { %4247 = vst.msk [vmem:[%s7946_s17 + $0x18] sm:$0xff] %vm561_vm0, %v4239_v55  ;;  %v4173_v17 = vpop.permute.xlu1 %4172 }
 0x780   : > { %v4232_v39 = vsel %vm2109_vm10, %v4224_v7, %v4173_v17  ;;  %v4175_v26 = vpop.permute.xlu0 %4174 }
 0x781   : > { %v4240_v46 = vsel %vm2119_vm11, %v4232_v39, %v4205_v8  ;;  %v4233_v58 = vsel %vm2109_vm10, %v4225_v20, %v4175_v26 }
 0x782   : > { %4248 = vst.msk [vmem:[%s7946_s17 + $0x20] sm:$0xff] %vm561_vm0, %v4240_v46  ;;  %v4241_v5 = vsel %vm2119_vm11, %v4233_v58, %v4207_v16 }
 0x783   : > { %4249 = vst.msk [vmem:[%s7946_s17 + $0x28] sm:$0xff] %vm561_vm0, %v4241_v5  ;;  %v4177_v36 = vpop.permute.xlu1 %4176 }
 0x784   : > { %v4179_v42 = vpop.permute.xlu0 %4178  ;;  %v4234_v22 = vsel %vm2109_vm10, %v4226_v60, %v4177_v36 }
 0x785   : > { %v4235_v28 = vsel %vm2109_vm10, %v4227_v3, %v4179_v42 }
 0x787   : > { %v4209_v14 = vpop.permute.xlu1 %4208 }
 0x788   : > { %v4242_v1 = vsel %vm2119_vm11, %v4234_v22, %v4209_v14  ;;  %v4211_v29 = vpop.permute.xlu0 %4210 }
 0x789   : > { %4250 = vst.msk [vmem:[%s7946_s17 + $0x30] sm:$0xff] %vm561_vm0, %v4242_v1  ;;  %v4243_v12 = vsel %vm2119_vm11, %v4235_v28, %v4211_v29 }
 0x78a   : > { %4251 = vst.msk [vmem:[%s7946_s17 + $0x38] sm:$0xff] %vm561_vm0, %v4243_v12 }
 0x78b PF: > { %s26_s21 = sadd.s32 1, %s5566_s21  }
 0x78c   : > { %p23_p4 = scmp.ge.s32.totalorder %s26_s21, 4  }
 0x78e   :  { %25 = sbr.rel (!%p23_p4) target bundleno = 2 (0x2), region = 120 }

</bundles_post_ra>
